<compile_context>
chip_gen: v5e
topology: v5e:2x2
jax: 0.10.0
libtpu: 0.0.40
codegen_flags: <defaults>
</compile_context>

<pallas_src>
import functools

import jax
import jax.numpy as jnp
from jax.experimental import pallas as pl
from jax.experimental.pallas import tpu as pltpu

BN_EPS = 1e-5          # nn.BatchNorm2d default
LEAKY_SLOPE = 0.01     # nn.LeakyReLU default


def _default_vmem_limit():
    """Per-generation scoped VMEM: large on v5e/v6e (128 MiB physical), conservative
    on v7x (64 MiB physical per TensorCore), safe fallback otherwise."""
    try:
        kind = jax.devices()[0].device_kind.lower()
    except Exception:
        kind = ""
    if "v7" in kind:
        return 48 * 1024 * 1024
    if "v5" in kind or "v6" in kind:
        return 64 * 1024 * 1024
    return 32 * 1024 * 1024


VMEM_LIMIT = _default_vmem_limit()


def _pick_tm(M, target=4096):
    """Row tile and zero-padded row count for the 1-D row-tiled kernels."""
    if M <= target:
        return M, M
    return target, pl.cdiv(M, target) * target


def _pick_th(H, W):
    """Output-row tile for the 3x3 conv: whole image when small, otherwise a
    divisor of H (multiple of 8) that keeps the MXU matmul M = TH*(W+2) large
    while bounding per-tile VMEM."""
    if H * W <= 2048:
        return H
    divs = [t for t in range(8, H, 8) if H % t == 0]
    if not divs:
        return H
    for t in divs:
        if t * W >= 512:
            return t
    return divs[-1]


# ---------------------------------------------------------------------------
# Kernel 1: fused [BN+ReLU prologue] + zero-halo + 3x3 conv + BN partial stats
# ---------------------------------------------------------------------------
def _conv3x3_kernel(x_ref, sc_ref, sh_ref, w_ref, y_ref, st_ref, xflat, acc,
                    *, TH, H, W, Cin, Cout, fuse_bn):
    # x_ref : (H, W, Cin)            bf16  whole unpadded, un-normalized image
    # sc/sh : (1, Cin)               f32   BN scale/shift of the input (prologue)
    # w_ref : (9, Cin, Cout)         bf16  tap k = dh*3 + dw
    # y_ref : (TH, W, Cout)          bf16  raw conv output tile (pre-BN)
    # st_ref: (2, Cout)              f32   per-tile [sum, sum_sq] of f32 output
    # xflat : ((TH+2)*(W+2)+2, Cin)  bf16  scratch: flattened zero-padded slab
    # acc   : (TH*(W+2), Cout)       f32   scratch: MXU accumulator
    Wp = W + 2
    r0 = pl.program_id(1) * TH

    # Prologue: build the zero-padded, optionally BN+ReLU-normalized slab.
    # Halo rows/columns must stay exactly zero, so normalization is applied
    # only to valid interior rows.
    xflat[...] = jnp.zeros_like(xflat)
    if fuse_bn:
        scale = sc_ref[...]
        shift = sh_ref[...]

    def fill_row(r):
        src = r0 - 1 + r                       # input row feeding slab row r
        row = x_ref[src]                       # (W, Cin)
        if fuse_bn:
            row = jnp.maximum(row.astype(jnp.float32) * scale + shift, 0.0)
        xflat[r * Wp + 1:r * Wp + 1 + W, :] = row.astype(xflat.dtype)

    for r in range(TH + 2):                    # static unroll
        if r == 0:
            pl.when(r0 > 0)(functools.partial(fill_row, 0))
        elif r == TH + 1:
            pl.when(r0 + TH < H)(functools.partial(fill_row, r))
        else:
            fill_row(r)

    # 9 row-batched MXU matmuls: (TH*(W+2), Cin) @ (Cin, Cout), f32 accumulate.
    # Each tap's LHS is a contiguous run of the flattened padded slab.
    first = True
    for dh in range(3):
        for dw in range(3):
            start = dh * Wp + dw
            lhs = xflat[start:start + TH * Wp, :]
            contrib = jnp.dot(lhs, w_ref[dh * 3 + dw],
                              preferred_element_type=jnp.float32)
            if first:
                acc[...] = contrib
                first = False
            else:
                acc[...] += contrib

    # Epilogue: extract valid columns, emit raw output and exact per-tile
    # BatchNorm partial statistics (one reduction per tile, not per row).
    s = jnp.zeros((1, Cout), jnp.float32)
    ss = jnp.zeros((1, Cout), jnp.float32)
    for i in range(TH):
        blk = acc[i * Wp:i * Wp + W, :]        # (W, Cout) f32
        y_ref[i] = blk.astype(y_ref.dtype)
        s = s + jnp.sum(blk, axis=0, keepdims=True)
        ss = ss + jnp.sum(blk * blk, axis=0, keepdims=True)
    st_ref[...] = jnp.concatenate([s, ss], axis=0)


def conv3x3_raw(x, w, in_scale=None, in_shift=None, th=None):
    """3x3 conv (zero pad 1, no bias) with an optional fused BatchNorm+ReLU
    prologue on the input.  x: (N,H,W,Cin) bf16, w: (9,Cin,Cout) f32.
    Returns (raw conv output bf16 (N,H,W,Cout), per-tile stats f32 (N,HT,2,Cout))."""
    N, H, W, Cin = x.shape
    Cout = w.shape[-1]
    fuse_bn = in_scale is not None
    TH = th if th is not None else _pick_th(H, W)
    assert H % TH == 0, (H, TH)
    HT = H // TH

    sc = in_scale if fuse_bn else jnp.ones((Cin,), jnp.float32)
    sh = in_shift if fuse_bn else jnp.zeros((Cin,), jnp.float32)
    sc = sc.reshape(1, Cin).astype(jnp.float32)
    sh = sh.reshape(1, Cin).astype(jnp.float32)

    kernel = functools.partial(_conv3x3_kernel, TH=TH, H=H, W=W,
                               Cin=Cin, Cout=Cout, fuse_bn=fuse_bn)
    flops = 2 * N * H * (W + 2) * 9 * Cin * Cout
    bytes_accessed = (N * H * W * (Cin + Cout) + 9 * Cin * Cout) * 2 \
        + N * HT * 2 * Cout * 4

    y, stats = pl.pallas_call(
        kernel,
        grid=(N, HT),
        in_specs=[
            # whole image per step; constant block index across the H axis so
            # it is DMA'd once per core while output tiles stream.
            pl.BlockSpec((None, H, W, Cin), lambda n, h: (n, 0, 0, 0)),
            pl.BlockSpec((1, Cin), lambda n, h: (0, 0)),
            pl.BlockSpec((1, Cin), lambda n, h: (0, 0)),
            # TODO(synk): pipeline_mode=pl.Buffered(1) would save one weight
            # buffer of VMEM on v7x (block index never changes).
            pl.BlockSpec((9, Cin, Cout), lambda n, h: (0, 0, 0)),
        ],
        out_specs=[
            pl.BlockSpec((None, TH, W, Cout), lambda n, h: (n, h, 0, 0)),
            pl.BlockSpec((None, None, 2, Cout), lambda n, h: (n, h, 0, 0)),
        ],
        out_shape=[
            jax.ShapeDtypeStruct((N, H, W, Cout), jnp.bfloat16),
            jax.ShapeDtypeStruct((N, HT, 2, Cout), jnp.float32),
        ],
        scratch_shapes=[
            pltpu.VMEM(((TH + 2) * (W + 2) + 2, Cin), jnp.bfloat16),
            pltpu.VMEM((TH * (W + 2), Cout), jnp.float32),
        ],
        compiler_params=pltpu.CompilerParams(
            dimension_semantics=("parallel", "parallel"),   # megacore split
            vmem_limit_bytes=VMEM_LIMIT),
        cost_estimate=pl.CostEstimate(flops=flops, transcendentals=0,
                                      bytes_accessed=bytes_accessed),
    )(x, sc, sh, w.astype(jnp.bfloat16))
    return y, stats


# ---------------------------------------------------------------------------
# BatchNorm finalization (tiny, XLA) and standalone BN+ReLU (encoder outputs)
# ---------------------------------------------------------------------------
def bn_scale_shift(stats, gamma, beta, count):
    """Exact full-batch (training-mode) BatchNorm affine from per-tile sums."""
    s = jnp.sum(stats[:, :, 0, :], axis=(0, 1))
    ss = jnp.sum(stats[:, :, 1, :], axis=(0, 1))
    mean = s / count
    var = jnp.maximum(ss / count - mean * mean, 0.0)     # biased variance
    inv = jax.lax.rsqrt(var + BN_EPS)
    scale = gamma * inv
    shift = beta - mean * scale
    return scale, shift


def _scale_shift_relu_kernel(x_ref, sc_ref, sh_ref, o_ref):
    xf = x_ref[...].astype(jnp.float32)
    o_ref[...] = jnp.maximum(xf * sc_ref[...] + sh_ref[...], 0.0).astype(o_ref.dtype)


def scale_shift_relu(x, scale, shift):
    """Standalone BN+ReLU — used only where the activated tensor must be
    materialized (encoder outputs feed both maxpool and the skip concat).
    Pixels are folded into the lane dim so stores stay lane-dense for C<128."""
    N, H, W, C = x.shape
    M = N * H * W
    G = 1
    if C < 128:
        G = max(1, 128 // C)
        while G > 1 and M % G != 0:
            G //= 2
    Mg, Cg = M // G, G * C
    sc = jnp.tile(scale.reshape(1, C).astype(jnp.float32), (1, G))
    sh = jnp.tile(shift.reshape(1, C).astype(jnp.float32), (1, G))
    tm, Mp = _pick_tm(Mg)
    xg = x.reshape(Mg, Cg)
    if Mp != Mg:
        xg = jnp.pad(xg, ((0, Mp - Mg), (0, 0)))
    out = pl.pallas_call(
        _scale_shift_relu_kernel,
        grid=(Mp // tm,),
        in_specs=[pl.BlockSpec((tm, Cg), lambda i: (i, 0)),
                  pl.BlockSpec((1, Cg), lambda i: (0, 0)),
                  pl.BlockSpec((1, Cg), lambda i: (0, 0))],
        out_specs=pl.BlockSpec((tm, Cg), lambda i: (i, 0)),
        out_shape=jax.ShapeDtypeStruct((Mp, Cg), jnp.bfloat16),
        compiler_params=pltpu.CompilerParams(
            dimension_semantics=("parallel",), vmem_limit_bytes=VMEM_LIMIT),
        cost_estimate=pl.CostEstimate(flops=3 * Mp * Cg, transcendentals=0,
                                      bytes_accessed=4 * Mp * Cg + 8 * Cg),
    )(xg, sc, sh)
    return out[:Mg].reshape(N, H, W, C)


# ---------------------------------------------------------------------------
# Kernel 2: 1x1 conv = row-tiled matmul with fused BN+ReLU prologue + bias/act
# ---------------------------------------------------------------------------
def _mm_bias_act_kernel(x_ref, sc_ref, sh_ref, w_ref, b_ref, o_ref, *, fuse_bn, act):
    x = x_ref[...]
    if fuse_bn:                                # consumer-side BN+ReLU prologue
        x = jnp.maximum(x.astype(jnp.float32) * sc_ref[...] + sh_ref[...],
                        0.0).astype(jnp.bfloat16)
    y = jnp.dot(x, w_ref[...], preferred_element_type=jnp.float32) + b_ref[...]
    if act == "relu":
        y = jnp.maximum(y, 0.0)
    elif act == "leaky":
        y = jnp.where(y >= 0.0, y, LEAKY_SLOPE * y)
    o_ref[...] = y.astype(o_ref.dtype)


def conv1x1(x, p, act="linear", in_scale=None, in_shift=None,
            out_dtype=jnp.bfloat16):
    """1x1 conv (+bias, +activation) as a row-tiled MXU matmul, optionally
    consuming a raw pre-BN input by fusing BatchNorm+ReLU into its prologue."""
    N, H, W, Cin = x.shape
    Cout = p["w"].shape[1]
    M = N * H * W
    fuse_bn = in_scale is not None
    tm, Mp = _pick_tm(M)
    xf = x.reshape(M, Cin)
    if Mp != M:
        xf = jnp.pad(xf, ((0, Mp - M), (0, 0)))
    sc = in_scale if fuse_bn else jnp.ones((Cin,), jnp.float32)
    sh = in_shift if fuse_bn else jnp.zeros((Cin,), jnp.float32)
    sc = sc.reshape(1, Cin).astype(jnp.float32)
    sh = sh.reshape(1, Cin).astype(jnp.float32)
    # TODO(synk): for Cout < 128 a pixel-folded / transposed output layout would
    # make the stores fully lane-dense; kept in (M, Cout) form to stay within
    # reshape-free Mosaic lowering.
    out = pl.pallas_call(
        functools.partial(_mm_bias_act_kernel, fuse_bn=fuse_bn, act=act),
        grid=(Mp // tm,),
        in_specs=[pl.BlockSpec((tm, Cin), lambda i: (i, 0)),
                  pl.BlockSpec((1, Cin), lambda i: (0, 0)),
                  pl.BlockSpec((1, Cin), lambda i: (0, 0)),
                  pl.BlockSpec((Cin, Cout), lambda i: (0, 0)),
                  pl.BlockSpec((1, Cout), lambda i: (0, 0))],
        out_specs=pl.BlockSpec((tm, Cout), lambda i: (i, 0)),
        out_shape=jax.ShapeDtypeStruct((Mp, Cout), out_dtype),
        compiler_params=pltpu.CompilerParams(
            dimension_semantics=("parallel",), vmem_limit_bytes=VMEM_LIMIT),
        cost_estimate=pl.CostEstimate(
            flops=2 * Mp * Cin * Cout, transcendentals=0,
            bytes_accessed=(Mp * Cin + Cin * Cout + Mp * Cout) * 2
            + (2 * Cin + Cout) * 4),
    )(xf, sc, sh, p["w"].astype(jnp.bfloat16),
      p["b"].reshape(1, Cout).astype(jnp.float32))
    return out[:M].reshape(N, H, W, Cout)


# ---------------------------------------------------------------------------
# JAX glue (pure data movement, stays in XLA)
# ---------------------------------------------------------------------------
def maxpool2(x):
    N, H, W, C = x.shape
    return jnp.max(x.reshape(N, H // 2, 2, W // 2, 2, C), axis=(2, 4))


def pixel_shuffle2(x):
    """nn.PixelShuffle(2): channel c*4 + i*2 + j goes to pixel (2h+i, 2w+j)."""
    N, H, W, C4 = x.shape
    C = C4 // 4
    x = x.reshape(N, H, W, C, 2, 2)
    x = x.transpose(0, 1, 4, 2, 5, 3)          # N, H, i, W, j, C
    return x.reshape(N, 2 * H, 2 * W, C)


def replication_pad_1010(x):
    """nn.ReplicationPad2d((left=1, right=0, top=1, bottom=0))."""
    return jnp.pad(x, ((0, 0), (1, 0), (1, 0), (0, 0)), mode="edge")


def avgpool2_s1(x):
    """nn.AvgPool2d(2, stride=1); the 4-term sum is done in f32."""
    xf = x.astype(jnp.float32)
    y = (xf[:, :-1, :-1, :] + xf[:, 1:, :-1, :]
         + xf[:, :-1, 1:, :] + xf[:, 1:, 1:, :]) * 0.25
    return y.astype(x.dtype)


# ---------------------------------------------------------------------------
# Model
# ---------------------------------------------------------------------------
def init_params(key, in_ch, feats):
    state = {"key": key}

    def nk():
        state["key"], sub = jax.random.split(state["key"])
        return sub

    def conv3_w(cin, cout):
        w = jax.random.normal(nk(), (3, 3, cin, cout), jnp.float32)
        return (w * (1.0 / (9 * cin) ** 0.5)).reshape(9, cin, cout)

    def block(cin, cout):
        return dict(w1=conv3_w(cin, cout),
                    g1=jnp.ones((cout,), jnp.float32),
                    b1=jnp.zeros((cout,), jnp.float32),
                    w2=conv3_w(cout, cout),
                    g2=jnp.ones((cout,), jnp.float32),
                    b2=jnp.zeros((cout,), jnp.float32))

    def conv1(cin, cout):
        w = jax.random.normal(nk(), (cin, cout), jnp.float32) * (1.0 / cin ** 0.5)
        b = jax.random.normal(nk(), (cout,), jnp.float32) * 0.01
        return dict(w=w, b=b)

    f = feats
    p = {}
    p["enc1"] = block(in_ch, f)
    p["enc2"] = block(f, 2 * f)
    p["enc3"] = block(2 * f, 4 * f)
    p["enc4"] = block(4 * f, 8 * f)
    p["bottleneck"] = block(8 * f, 16 * f)
    p["upconv4"] = conv1(16 * f, 8 * f)
    p["conv4"] = conv1(2 * f, 8 * f)
    p["dec4"] = block(16 * f, 8 * f)
    p["upconv3"] = conv1(8 * f, 4 * f)
    p["conv3"] = conv1(f, 4 * f)
    p["dec3"] = block(8 * f, 4 * f)
    p["upconv2"] = conv1(4 * f, 2 * f)
    p["conv2"] = conv1(2 * f // 4, 2 * f)
    p["dec2"] = block(4 * f, 2 * f)
    p["upconv1"] = conv1(2 * f, f)
    p["conv1"] = conv1(f // 4, f)
    p["dec1"] = block(2 * f, f)
    p["final"] = conv1(f, in_ch)
    return p


def conv_block_raw(x, p, in_scale=None, in_shift=None):
    """UNet._block with BN1+ReLU fused into conv2's prologue.  Returns conv2's
    raw output and the BN2 scale/shift for the *consumer* to fuse."""
    N, H, W, _ = x.shape
    cnt = N * H * W
    y1, st1 = conv3x3_raw(x, p["w1"], in_scale, in_shift)
    s1, t1 = bn_scale_shift(st1, p["g1"], p["b1"], cnt)
    y2, st2 = conv3x3_raw(y1, p["w2"], s1, t1)
    s2, t2 = bn_scale_shift(st2, p["g2"], p["b2"], cnt)
    return y2, s2, t2


def unet_forward(params, x_nchw):
    x = jnp.transpose(x_nchw, (0, 2, 3, 1)).astype(jnp.bfloat16)   # NCHW -> NHWC

    def enc_block(x_in, p):
        # Encoder outputs must be materialized post-BN+ReLU: they feed both
        # the maxpool path and the skip concat.
        y, s, t = conv_block_raw(x_in, p)
        return scale_shift_relu(y, s, t)

    enc1 = enc_block(x, params["enc1"])
    enc2 = enc_block(maxpool2(enc1), params["enc2"])
    enc3 = enc_block(maxpool2(enc2), params["enc3"])
    enc4 = enc_block(maxpool2(enc3), params["enc4"])
    bott, bs, bt = conv_block_raw(maxpool2(enc4), params["bottleneck"])

    def up_stage(dec_raw, s, t, enc, up_p, cv_p, dec_p):
        # upconv consumes the raw previous-block output; its BN+ReLU is fused
        # into the matmul prologue, LeakyReLU into the epilogue.
        d = conv1x1(dec_raw, up_p, act="leaky", in_scale=s, in_shift=t)
        d = pixel_shuffle2(d)                    # PixelShuffle(2)
        d = conv1x1(d, cv_p, act="linear")       # 1x1 conv
        # TODO(synk): fold replication-pad + avgpool into the 1x1-conv epilogue
        # and feed dec/enc to the decoder block as split-K inputs instead of a
        # materialized concat (saves ~3 HBM round trips per stage).
        d = replication_pad_1010(d)              # ReplicationPad2d((1,0,1,0))
        d = avgpool2_s1(d)                       # AvgPool2d(2, stride=1)
        d = jnp.concatenate([d, enc], axis=-1)   # cat((dec, enc), dim=C)
        return conv_block_raw(d, dec_p)

    d, s, t = up_stage(bott, bs, bt, enc4, params["upconv4"], params["conv4"], params["dec4"])
    d, s, t = up_stage(d, s, t, enc3, params["upconv3"], params["conv3"], params["dec3"])
    d, s, t = up_stage(d, s, t, enc2, params["upconv2"], params["conv2"], params["dec2"])
    d, s, t = up_stage(d, s, t, enc1, params["upconv1"], params["conv1"], params["dec1"])

    # final 1x1 conv consumes the raw dec1 output (BN+ReLU fused) + F.relu.
    out = conv1x1(d, params["final"], act="relu", in_scale=s, in_shift=t,
                  out_dtype=jnp.float32)
    return {"generated": jnp.transpose(out, (0, 3, 1, 2))}   # back to NCHW


# ---------------------------------------------------------------------------
# Pure-JAX references (self-checks)
# ---------------------------------------------------------------------------
def _ref_conv3x3(x, w9):
    w = w9.reshape(3, 3, w9.shape[1], w9.shape[2])
    return jax.lax.conv_general_dilated(
        x, w, window_strides=(1, 1), padding="SAME",
        dimension_numbers=("NHWC", "HWIO", "NHWC"))


def _ref_block(x, p):
    def bn_relu(y, g, b):
        m = jnp.mean(y, axis=(0, 1, 2))
        v = jnp.var(y, axis=(0, 1, 2))
        return jnp.maximum((y - m) * jax.lax.rsqrt(v + BN_EPS) * g + b, 0.0)
    y = bn_relu(_ref_conv3x3(x, p["w1"]), p["g1"], p["b1"])
    return bn_relu(_ref_conv3x3(y, p["w2"]), p["g2"], p["b2"])


if __name__ == "__main__":
    key = jax.random.PRNGKey(0)
    pkey, xkey, hkey, wkey = jax.random.split(key, 4)

    N, C, H, W = 2, 4, 16, 16                 # shape_originals[0] == 4
    FEATURES = 32                             # init_features default

    params = init_params(pkey, C, FEATURES)
    x = jax.random.normal(xkey, (N, C, H, W), jnp.float32)

    # --- unit test: H-tiled, haloed 3x3 conv kernel vs XLA reference --------
    xt = jax.random.normal(hkey, (1, 32, 16, 8), jnp.float32).astype(jnp.bfloat16)
    wt = jax.random.normal(wkey, (9, 8, 16), jnp.float32) / (72.0 ** 0.5)
    wt = wt.astype(jnp.bfloat16).astype(jnp.float32)   # same quantized weights
    y_tiled, _ = jax.jit(lambda a, b: conv3x3_raw(a, b, th=8))(xt, wt)
    y_ref = _ref_conv3x3(xt.astype(jnp.float32), wt)
    err = float(jnp.max(jnp.abs(y_tiled.astype(jnp.float32) - y_ref)))
    assert err < 0.1, f"haloed conv3x3 mismatch: {err}"

    # --- unit test: fused (conv -> BN -> ReLU) x2 block vs XLA reference ----
    xb = jnp.transpose(x, (0, 2, 3, 1)).astype(jnp.bfloat16)

    def block_fn(xi, p):
        y, s, t = conv_block_raw(xi, p)
        return scale_shift_relu(y, s, t)

    blk = jax.jit(block_fn)(xb, params["enc1"])
    pq = {k: (v.astype(jnp.bfloat16).astype(jnp.float32)
              if k in ("w1", "w2") else v) for k, v in params["enc1"].items()}
    blk_ref = _ref_block(xb.astype(jnp.float32), pq)
    err = float(jnp.max(jnp.abs(blk.astype(jnp.float32) - blk_ref)))
    assert err < 0.2, f"conv block mismatch: {err}"

    # --- full forward ---------------------------------------------------------
    fwd = jax.jit(unet_forward)
    out = fwd(params, x)
    jax.block_until_ready(out["generated"])

    assert out["generated"].shape == (N, C, H, W)
    assert out["generated"].dtype == jnp.float32
    assert bool(jnp.all(jnp.isfinite(out["generated"])))
    assert bool(jnp.all(out["generated"] >= 0.0))   # final ReLU
    print("KERNEL_OK")
</pallas_src>

<mosaic_0001>
module attributes {stable_mosaic.version = 11 : i64} {
  func.func @_conv3x3_kernel(%arg0: i32, %arg1: i32, %arg2: memref<1x32x16x8xbf16, #tpu.memory_space<vmem>>, %arg3: memref<1x8xf32, #tpu.memory_space<vmem>>, %arg4: memref<1x8xf32, #tpu.memory_space<vmem>>, %arg5: memref<9x8x16xbf16, #tpu.memory_space<vmem>>, %arg6: memref<1x8x16x16xbf16, #tpu.memory_space<vmem>>, %arg7: memref<1x1x2x16xf32, #tpu.memory_space<vmem>>, %arg8: memref<182x8xbf16, #tpu.memory_space<vmem>>, %arg9: memref<144x16xf32, #tpu.memory_space<vmem>>) attributes {dimension_semantics = [#tpu.dimension_semantics<parallel>, #tpu.dimension_semantics<parallel>], iteration_bounds = array<i64: 1, 4>, scalar_prefetch = 0 : i64, scratch_operands = 2 : i64, tpu.core_type = #tpu.core_type<tc>, window_params = [{transform_indices = @transform_0, window_bounds = array<i64: 1, 32, 16, 8>}, {pipeline_mode = #tpu.pipeline_mode<synchronous>, transform_indices = @transform_1, window_bounds = array<i64: 1, 8>}, {pipeline_mode = #tpu.pipeline_mode<synchronous>, transform_indices = @transform_2, window_bounds = array<i64: 1, 8>}, {pipeline_mode = #tpu.pipeline_mode<synchronous>, transform_indices = @transform_3, window_bounds = array<i64: 9, 8, 16>}, {transform_indices = @transform_4, window_bounds = array<i64: 1, 8, 16, 16>}, {transform_indices = @transform_5, window_bounds = array<i64: 1, 1, 2, 16>}]} {
    %c8_i32 = arith.constant 8 : i32
    %0 = arith.muli %arg1, %c8_i32 : i32
    %cst = arith.constant 0.000000e+00 : bf16
    %1 = vector.broadcast %cst : bf16 to vector<182x8xbf16>
    %c0 = arith.constant 0 : index
    %c0_0 = arith.constant 0 : index
    %2 = vector.load %arg8[%c0, %c0_0] : memref<182x8xbf16, #tpu.memory_space<vmem>>, vector<182x8xbf16>
    tpu.vector_store %arg8[%c0, %c0_0], %1 {strides = array<i32>} : memref<182x8xbf16, #tpu.memory_space<vmem>>, vector<182x8xbf16>,
    %c0_i32 = arith.constant 0 : i32
    %3 = arith.cmpi sgt, %0, %c0_i32 : i32
    %4 = arith.extui %3 : i1 to i32
    %c0_i32_1 = arith.constant 0 : i32
    %5 = arith.cmpi ne, %4, %c0_i32_1 : i32
    scf.if %5 {
      %c1_i32_186 = arith.constant 1 : i32
      %221 = arith.subi %0, %c1_i32_186 : i32
      %c0_i32_187 = arith.constant 0 : i32
      %222 = arith.addi %221, %c0_i32_187 : i32
      %c0_188 = arith.constant 0 : index
      %223 = arith.index_cast %222 : i32 to index
      %c0_189 = arith.constant 0 : index
      %c0_190 = arith.constant 0 : index
      %224 = vector.load %arg2[%c0_188, %223, %c0_189, %c0_190] : memref<1x32x16x8xbf16, #tpu.memory_space<vmem>>, vector<1x1x16x8xbf16>
      %225 = vector.shape_cast %224 : vector<1x1x16x8xbf16> to vector<16x8xbf16>
      %c1_191 = arith.constant 1 : index
      %c0_192 = arith.constant 0 : index
      %226 = vector.load %arg8[%c1_191, %c0_192] : memref<182x8xbf16, #tpu.memory_space<vmem>>, vector<16x8xbf16>
      tpu.vector_store %arg8[%c1_191, %c0_192], %225 {strides = array<i32>} : memref<182x8xbf16, #tpu.memory_space<vmem>>, vector<16x8xbf16>,
    } else {
    }
    %c1_i32 = arith.constant 1 : i32
    %6 = arith.subi %0, %c1_i32 : i32
    %c1_i32_2 = arith.constant 1 : i32
    %7 = arith.addi %6, %c1_i32_2 : i32
    %c0_3 = arith.constant 0 : index
    %8 = arith.index_cast %7 : i32 to index
    %c0_4 = arith.constant 0 : index
    %c0_5 = arith.constant 0 : index
    %9 = vector.load %arg2[%c0_3, %8, %c0_4, %c0_5] : memref<1x32x16x8xbf16, #tpu.memory_space<vmem>>, vector<1x1x16x8xbf16>
    %10 = vector.shape_cast %9 : vector<1x1x16x8xbf16> to vector<16x8xbf16>
    %c19 = arith.constant 19 : index
    %c0_6 = arith.constant 0 : index
    %11 = vector.load %arg8[%c19, %c0_6] : memref<182x8xbf16, #tpu.memory_space<vmem>>, vector<16x8xbf16>
    tpu.vector_store %arg8[%c19, %c0_6], %10 {strides = array<i32>} : memref<182x8xbf16, #tpu.memory_space<vmem>>, vector<16x8xbf16>,
    %c1_i32_7 = arith.constant 1 : i32
    %12 = arith.subi %0, %c1_i32_7 : i32
    %c2_i32 = arith.constant 2 : i32
    %13 = arith.addi %12, %c2_i32 : i32
    %c0_8 = arith.constant 0 : index
    %14 = arith.index_cast %13 : i32 to index
    %c0_9 = arith.constant 0 : index
    %c0_10 = arith.constant 0 : index
    %15 = vector.load %arg2[%c0_8, %14, %c0_9, %c0_10] : memref<1x32x16x8xbf16, #tpu.memory_space<vmem>>, vector<1x1x16x8xbf16>
    %16 = vector.shape_cast %15 : vector<1x1x16x8xbf16> to vector<16x8xbf16>
    %c37 = arith.constant 37 : index
    %c0_11 = arith.constant 0 : index
    %17 = vector.load %arg8[%c37, %c0_11] : memref<182x8xbf16, #tpu.memory_space<vmem>>, vector<16x8xbf16>
    tpu.vector_store %arg8[%c37, %c0_11], %16 {strides = array<i32>} : memref<182x8xbf16, #tpu.memory_space<vmem>>, vector<16x8xbf16>,
    %c1_i32_12 = arith.constant 1 : i32
    %18 = arith.subi %0, %c1_i32_12 : i32
    %c3_i32 = arith.constant 3 : i32
    %19 = arith.addi %18, %c3_i32 : i32
    %c0_13 = arith.constant 0 : index
    %20 = arith.index_cast %19 : i32 to index
    %c0_14 = arith.constant 0 : index
    %c0_15 = arith.constant 0 : index
    %21 = vector.load %arg2[%c0_13, %20, %c0_14, %c0_15] : memref<1x32x16x8xbf16, #tpu.memory_space<vmem>>, vector<1x1x16x8xbf16>
    %22 = vector.shape_cast %21 : vector<1x1x16x8xbf16> to vector<16x8xbf16>
    %c55 = arith.constant 55 : index
    %c0_16 = arith.constant 0 : index
    %23 = vector.load %arg8[%c55, %c0_16] : memref<182x8xbf16, #tpu.memory_space<vmem>>, vector<16x8xbf16>
    tpu.vector_store %arg8[%c55, %c0_16], %22 {strides = array<i32>} : memref<182x8xbf16, #tpu.memory_space<vmem>>, vector<16x8xbf16>,
    %c1_i32_17 = arith.constant 1 : i32
    %24 = arith.subi %0, %c1_i32_17 : i32
    %c4_i32 = arith.constant 4 : i32
    %25 = arith.addi %24, %c4_i32 : i32
    %c0_18 = arith.constant 0 : index
    %26 = arith.index_cast %25 : i32 to index
    %c0_19 = arith.constant 0 : index
    %c0_20 = arith.constant 0 : index
    %27 = vector.load %arg2[%c0_18, %26, %c0_19, %c0_20] : memref<1x32x16x8xbf16, #tpu.memory_space<vmem>>, vector<1x1x16x8xbf16>
    %28 = vector.shape_cast %27 : vector<1x1x16x8xbf16> to vector<16x8xbf16>
    %c73 = arith.constant 73 : index
    %c0_21 = arith.constant 0 : index
    %29 = vector.load %arg8[%c73, %c0_21] : memref<182x8xbf16, #tpu.memory_space<vmem>>, vector<16x8xbf16>
    tpu.vector_store %arg8[%c73, %c0_21], %28 {strides = array<i32>} : memref<182x8xbf16, #tpu.memory_space<vmem>>, vector<16x8xbf16>,
    %c1_i32_22 = arith.constant 1 : i32
    %30 = arith.subi %0, %c1_i32_22 : i32
    %c5_i32 = arith.constant 5 : i32
    %31 = arith.addi %30, %c5_i32 : i32
    %c0_23 = arith.constant 0 : index
    %32 = arith.index_cast %31 : i32 to index
    %c0_24 = arith.constant 0 : index
    %c0_25 = arith.constant 0 : index
    %33 = vector.load %arg2[%c0_23, %32, %c0_24, %c0_25] : memref<1x32x16x8xbf16, #tpu.memory_space<vmem>>, vector<1x1x16x8xbf16>
    %34 = vector.shape_cast %33 : vector<1x1x16x8xbf16> to vector<16x8xbf16>
    %c91 = arith.constant 91 : index
    %c0_26 = arith.constant 0 : index
    %35 = vector.load %arg8[%c91, %c0_26] : memref<182x8xbf16, #tpu.memory_space<vmem>>, vector<16x8xbf16>
    tpu.vector_store %arg8[%c91, %c0_26], %34 {strides = array<i32>} : memref<182x8xbf16, #tpu.memory_space<vmem>>, vector<16x8xbf16>,
    %c1_i32_27 = arith.constant 1 : i32
    %36 = arith.subi %0, %c1_i32_27 : i32
    %c6_i32 = arith.constant 6 : i32
    %37 = arith.addi %36, %c6_i32 : i32
    %c0_28 = arith.constant 0 : index
    %38 = arith.index_cast %37 : i32 to index
    %c0_29 = arith.constant 0 : index
    %c0_30 = arith.constant 0 : index
    %39 = vector.load %arg2[%c0_28, %38, %c0_29, %c0_30] : memref<1x32x16x8xbf16, #tpu.memory_space<vmem>>, vector<1x1x16x8xbf16>
    %40 = vector.shape_cast %39 : vector<1x1x16x8xbf16> to vector<16x8xbf16>
    %c109 = arith.constant 109 : index
    %c0_31 = arith.constant 0 : index
    %41 = vector.load %arg8[%c109, %c0_31] : memref<182x8xbf16, #tpu.memory_space<vmem>>, vector<16x8xbf16>
    tpu.vector_store %arg8[%c109, %c0_31], %40 {strides = array<i32>} : memref<182x8xbf16, #tpu.memory_space<vmem>>, vector<16x8xbf16>,
    %c1_i32_32 = arith.constant 1 : i32
    %42 = arith.subi %0, %c1_i32_32 : i32
    %c7_i32 = arith.constant 7 : i32
    %43 = arith.addi %42, %c7_i32 : i32
    %c0_33 = arith.constant 0 : index
    %44 = arith.index_cast %43 : i32 to index
    %c0_34 = arith.constant 0 : index
    %c0_35 = arith.constant 0 : index
    %45 = vector.load %arg2[%c0_33, %44, %c0_34, %c0_35] : memref<1x32x16x8xbf16, #tpu.memory_space<vmem>>, vector<1x1x16x8xbf16>
    %46 = vector.shape_cast %45 : vector<1x1x16x8xbf16> to vector<16x8xbf16>
    %c127 = arith.constant 127 : index
    %c0_36 = arith.constant 0 : index
    %47 = vector.load %arg8[%c127, %c0_36] : memref<182x8xbf16, #tpu.memory_space<vmem>>, vector<16x8xbf16>
    tpu.vector_store %arg8[%c127, %c0_36], %46 {strides = array<i32>} : memref<182x8xbf16, #tpu.memory_space<vmem>>, vector<16x8xbf16>,
    %c1_i32_37 = arith.constant 1 : i32
    %48 = arith.subi %0, %c1_i32_37 : i32
    %c8_i32_38 = arith.constant 8 : i32
    %49 = arith.addi %48, %c8_i32_38 : i32
    %c0_39 = arith.constant 0 : index
    %50 = arith.index_cast %49 : i32 to index
    %c0_40 = arith.constant 0 : index
    %c0_41 = arith.constant 0 : index
    %51 = vector.load %arg2[%c0_39, %50, %c0_40, %c0_41] : memref<1x32x16x8xbf16, #tpu.memory_space<vmem>>, vector<1x1x16x8xbf16>
    %52 = vector.shape_cast %51 : vector<1x1x16x8xbf16> to vector<16x8xbf16>
    %c145 = arith.constant 145 : index
    %c0_42 = arith.constant 0 : index
    %53 = vector.load %arg8[%c145, %c0_42] : memref<182x8xbf16, #tpu.memory_space<vmem>>, vector<16x8xbf16>
    tpu.vector_store %arg8[%c145, %c0_42], %52 {strides = array<i32>} : memref<182x8xbf16, #tpu.memory_space<vmem>>, vector<16x8xbf16>,
    %c8_i32_43 = arith.constant 8 : i32
    %54 = arith.addi %0, %c8_i32_43 : i32
    %c32_i32 = arith.constant 32 : i32
    %55 = arith.cmpi slt, %54, %c32_i32 : i32
    %56 = arith.extui %55 : i1 to i32
    %c0_i32_44 = arith.constant 0 : i32
    %57 = arith.cmpi ne, %56, %c0_i32_44 : i32
    scf.if %57 {
      %c1_i32_186 = arith.constant 1 : i32
      %221 = arith.subi %0, %c1_i32_186 : i32
      %c9_i32 = arith.constant 9 : i32
      %222 = arith.addi %221, %c9_i32 : i32
      %c0_187 = arith.constant 0 : index
      %223 = arith.index_cast %222 : i32 to index
      %c0_188 = arith.constant 0 : index
      %c0_189 = arith.constant 0 : index
      %224 = vector.load %arg2[%c0_187, %223, %c0_188, %c0_189] : memref<1x32x16x8xbf16, #tpu.memory_space<vmem>>, vector<1x1x16x8xbf16>
      %225 = vector.shape_cast %224 : vector<1x1x16x8xbf16> to vector<16x8xbf16>
      %c163 = arith.constant 163 : index
      %c0_190 = arith.constant 0 : index
      %226 = vector.load %arg8[%c163, %c0_190] : memref<182x8xbf16, #tpu.memory_space<vmem>>, vector<16x8xbf16>
      tpu.vector_store %arg8[%c163, %c0_190], %225 {strides = array<i32>} : memref<182x8xbf16, #tpu.memory_space<vmem>>, vector<16x8xbf16>,
    } else {
    }
    %c0_45 = arith.constant 0 : index
    %c0_46 = arith.constant 0 : index
    %58 = vector.load %arg8[%c0_45, %c0_46] : memref<182x8xbf16, #tpu.memory_space<vmem>>, vector<144x8xbf16>
    %c0_47 = arith.constant 0 : index
    %c0_48 = arith.constant 0 : index
    %c0_49 = arith.constant 0 : index
    %59 = vector.load %arg5[%c0_47, %c0_48, %c0_49] : memref<9x8x16xbf16, #tpu.memory_space<vmem>>, vector<1x8x16xbf16>
    %60 = vector.shape_cast %59 : vector<1x8x16xbf16> to vector<8x16xbf16>
    %cst_50 = arith.constant dense<0.000000e+00> : vector<144x16xf32>
    %61 = tpu.matmul %58, %60, %cst_50 {dimension_numbers = #tpu.dot_dimension_numbers<[1], [0], [0], [1], [0, 0, 1, 1], [], []>} : vector<144x8xbf16>, vector<8x16xbf16>, vector<144x16xf32> -> vector<144x16xf32>
    %c0_51 = arith.constant 0 : index
    %c0_52 = arith.constant 0 : index
    %62 = vector.load %arg9[%c0_51, %c0_52] : memref<144x16xf32, #tpu.memory_space<vmem>>, vector<144x16xf32>
    tpu.vector_store %arg9[%c0_51, %c0_52], %61 {strides = array<i32>} : memref<144x16xf32, #tpu.memory_space<vmem>>, vector<144x16xf32>,
    %c1 = arith.constant 1 : index
    %c0_53 = arith.constant 0 : index
    %63 = vector.load %arg8[%c1, %c0_53] : memref<182x8xbf16, #tpu.memory_space<vmem>>, vector<144x8xbf16>
    %c1_54 = arith.constant 1 : index
    %c0_55 = arith.constant 0 : index
    %c0_56 = arith.constant 0 : index
    %64 = vector.load %arg5[%c1_54, %c0_55, %c0_56] : memref<9x8x16xbf16, #tpu.memory_space<vmem>>, vector<1x8x16xbf16>
    %65 = vector.shape_cast %64 : vector<1x8x16xbf16> to vector<8x16xbf16>
    %cst_57 = arith.constant dense<0.000000e+00> : vector<144x16xf32>
    %66 = tpu.matmul %63, %65, %cst_57 {dimension_numbers = #tpu.dot_dimension_numbers<[1], [0], [0], [1], [0, 0, 1, 1], [], []>} : vector<144x8xbf16>, vector<8x16xbf16>, vector<144x16xf32> -> vector<144x16xf32>
    %c0_58 = arith.constant 0 : index
    %c0_59 = arith.constant 0 : index
    %67 = vector.load %arg9[%c0_58, %c0_59] : memref<144x16xf32, #tpu.memory_space<vmem>>, vector<144x16xf32>
    %68 = arith.addf %67, %66 : vector<144x16xf32>
    %c0_60 = arith.constant 0 : index
    %c0_61 = arith.constant 0 : index
    %69 = vector.load %arg9[%c0_60, %c0_61] : memref<144x16xf32, #tpu.memory_space<vmem>>, vector<144x16xf32>
    tpu.vector_store %arg9[%c0_60, %c0_61], %68 {strides = array<i32>} : memref<144x16xf32, #tpu.memory_space<vmem>>, vector<144x16xf32>,
    %c2 = arith.constant 2 : index
    %c0_62 = arith.constant 0 : index
    %70 = vector.load %arg8[%c2, %c0_62] : memref<182x8xbf16, #tpu.memory_space<vmem>>, vector<144x8xbf16>
    %c2_63 = arith.constant 2 : index
    %c0_64 = arith.constant 0 : index
    %c0_65 = arith.constant 0 : index
    %71 = vector.load %arg5[%c2_63, %c0_64, %c0_65] : memref<9x8x16xbf16, #tpu.memory_space<vmem>>, vector<1x8x16xbf16>
    %72 = vector.shape_cast %71 : vector<1x8x16xbf16> to vector<8x16xbf16>
    %cst_66 = arith.constant dense<0.000000e+00> : vector<144x16xf32>
    %73 = tpu.matmul %70, %72, %cst_66 {dimension_numbers = #tpu.dot_dimension_numbers<[1], [0], [0], [1], [0, 0, 1, 1], [], []>} : vector<144x8xbf16>, vector<8x16xbf16>, vector<144x16xf32> -> vector<144x16xf32>
    %c0_67 = arith.constant 0 : index
    %c0_68 = arith.constant 0 : index
    %74 = vector.load %arg9[%c0_67, %c0_68] : memref<144x16xf32, #tpu.memory_space<vmem>>, vector<144x16xf32>
    %75 = arith.addf %74, %73 : vector<144x16xf32>
    %c0_69 = arith.constant 0 : index
    %c0_70 = arith.constant 0 : index
    %76 = vector.load %arg9[%c0_69, %c0_70] : memref<144x16xf32, #tpu.memory_space<vmem>>, vector<144x16xf32>
    tpu.vector_store %arg9[%c0_69, %c0_70], %75 {strides = array<i32>} : memref<144x16xf32, #tpu.memory_space<vmem>>, vector<144x16xf32>,
    %c18 = arith.constant 18 : index
    %c0_71 = arith.constant 0 : index
    %77 = vector.load %arg8[%c18, %c0_71] : memref<182x8xbf16, #tpu.memory_space<vmem>>, vector<144x8xbf16>
    %c3 = arith.constant 3 : index
    %c0_72 = arith.constant 0 : index
    %c0_73 = arith.constant 0 : index
    %78 = vector.load %arg5[%c3, %c0_72, %c0_73] : memref<9x8x16xbf16, #tpu.memory_space<vmem>>, vector<1x8x16xbf16>
    %79 = vector.shape_cast %78 : vector<1x8x16xbf16> to vector<8x16xbf16>
    %cst_74 = arith.constant dense<0.000000e+00> : vector<144x16xf32>
    %80 = tpu.matmul %77, %79, %cst_74 {dimension_numbers = #tpu.dot_dimension_numbers<[1], [0], [0], [1], [0, 0, 1, 1], [], []>} : vector<144x8xbf16>, vector<8x16xbf16>, vector<144x16xf32> -> vector<144x16xf32>
    %c0_75 = arith.constant 0 : index
    %c0_76 = arith.constant 0 : index
    %81 = vector.load %arg9[%c0_75, %c0_76] : memref<144x16xf32, #tpu.memory_space<vmem>>, vector<144x16xf32>
    %82 = arith.addf %81, %80 : vector<144x16xf32>
    %c0_77 = arith.constant 0 : index
    %c0_78 = arith.constant 0 : index
    %83 = vector.load %arg9[%c0_77, %c0_78] : memref<144x16xf32, #tpu.memory_space<vmem>>, vector<144x16xf32>
    tpu.vector_store %arg9[%c0_77, %c0_78], %82 {strides = array<i32>} : memref<144x16xf32, #tpu.memory_space<vmem>>, vector<144x16xf32>,
    %c19_79 = arith.constant 19 : index
    %c0_80 = arith.constant 0 : index
    %84 = vector.load %arg8[%c19_79, %c0_80] : memref<182x8xbf16, #tpu.memory_space<vmem>>, vector<144x8xbf16>
    %c4 = arith.constant 4 : index
    %c0_81 = arith.constant 0 : index
    %c0_82 = arith.constant 0 : index
    %85 = vector.load %arg5[%c4, %c0_81, %c0_82] : memref<9x8x16xbf16, #tpu.memory_space<vmem>>, vector<1x8x16xbf16>
    %86 = vector.shape_cast %85 : vector<1x8x16xbf16> to vector<8x16xbf16>
    %cst_83 = arith.constant dense<0.000000e+00> : vector<144x16xf32>
    %87 = tpu.matmul %84, %86, %cst_83 {dimension_numbers = #tpu.dot_dimension_numbers<[1], [0], [0], [1], [0, 0, 1, 1], [], []>} : vector<144x8xbf16>, vector<8x16xbf16>, vector<144x16xf32> -> vector<144x16xf32>
    %c0_84 = arith.constant 0 : index
    %c0_85 = arith.constant 0 : index
    %88 = vector.load %arg9[%c0_84, %c0_85] : memref<144x16xf32, #tpu.memory_space<vmem>>, vector<144x16xf32>
    %89 = arith.addf %88, %87 : vector<144x16xf32>
    %c0_86 = arith.constant 0 : index
    %c0_87 = arith.constant 0 : index
    %90 = vector.load %arg9[%c0_86, %c0_87] : memref<144x16xf32, #tpu.memory_space<vmem>>, vector<144x16xf32>
    tpu.vector_store %arg9[%c0_86, %c0_87], %89 {strides = array<i32>} : memref<144x16xf32, #tpu.memory_space<vmem>>, vector<144x16xf32>,
    %c20 = arith.constant 20 : index
    %c0_88 = arith.constant 0 : index
    %91 = vector.load %arg8[%c20, %c0_88] : memref<182x8xbf16, #tpu.memory_space<vmem>>, vector<144x8xbf16>
    %c5 = arith.constant 5 : index
    %c0_89 = arith.constant 0 : index
    %c0_90 = arith.constant 0 : index
    %92 = vector.load %arg5[%c5, %c0_89, %c0_90] : memref<9x8x16xbf16, #tpu.memory_space<vmem>>, vector<1x8x16xbf16>
    %93 = vector.shape_cast %92 : vector<1x8x16xbf16> to vector<8x16xbf16>
    %cst_91 = arith.constant dense<0.000000e+00> : vector<144x16xf32>
    %94 = tpu.matmul %91, %93, %cst_91 {dimension_numbers = #tpu.dot_dimension_numbers<[1], [0], [0], [1], [0, 0, 1, 1], [], []>} : vector<144x8xbf16>, vector<8x16xbf16>, vector<144x16xf32> -> vector<144x16xf32>
    %c0_92 = arith.constant 0 : index
    %c0_93 = arith.constant 0 : index
    %95 = vector.load %arg9[%c0_92, %c0_93] : memref<144x16xf32, #tpu.memory_space<vmem>>, vector<144x16xf32>
    %96 = arith.addf %95, %94 : vector<144x16xf32>
    %c0_94 = arith.constant 0 : index
    %c0_95 = arith.constant 0 : index
    %97 = vector.load %arg9[%c0_94, %c0_95] : memref<144x16xf32, #tpu.memory_space<vmem>>, vector<144x16xf32>
    tpu.vector_store %arg9[%c0_94, %c0_95], %96 {strides = array<i32>} : memref<144x16xf32, #tpu.memory_space<vmem>>, vector<144x16xf32>,
    %c36 = arith.constant 36 : index
    %c0_96 = arith.constant 0 : index
    %98 = vector.load %arg8[%c36, %c0_96] : memref<182x8xbf16, #tpu.memory_space<vmem>>, vector<144x8xbf16>
    %c6 = arith.constant 6 : index
    %c0_97 = arith.constant 0 : index
    %c0_98 = arith.constant 0 : index
    %99 = vector.load %arg5[%c6, %c0_97, %c0_98] : memref<9x8x16xbf16, #tpu.memory_space<vmem>>, vector<1x8x16xbf16>
    %100 = vector.shape_cast %99 : vector<1x8x16xbf16> to vector<8x16xbf16>
    %cst_99 = arith.constant dense<0.000000e+00> : vector<144x16xf32>
    %101 = tpu.matmul %98, %100, %cst_99 {dimension_numbers = #tpu.dot_dimension_numbers<[1], [0], [0], [1], [0, 0, 1, 1], [], []>} : vector<144x8xbf16>, vector<8x16xbf16>, vector<144x16xf32> -> vector<144x16xf32>
    %c0_100 = arith.constant 0 : index
    %c0_101 = arith.constant 0 : index
    %102 = vector.load %arg9[%c0_100, %c0_101] : memref<144x16xf32, #tpu.memory_space<vmem>>, vector<144x16xf32>
    %103 = arith.addf %102, %101 : vector<144x16xf32>
    %c0_102 = arith.constant 0 : index
    %c0_103 = arith.constant 0 : index
    %104 = vector.load %arg9[%c0_102, %c0_103] : memref<144x16xf32, #tpu.memory_space<vmem>>, vector<144x16xf32>
    tpu.vector_store %arg9[%c0_102, %c0_103], %103 {strides = array<i32>} : memref<144x16xf32, #tpu.memory_space<vmem>>, vector<144x16xf32>,
    %c37_104 = arith.constant 37 : index
    %c0_105 = arith.constant 0 : index
    %105 = vector.load %arg8[%c37_104, %c0_105] : memref<182x8xbf16, #tpu.memory_space<vmem>>, vector<144x8xbf16>
    %c7 = arith.constant 7 : index
    %c0_106 = arith.constant 0 : index
    %c0_107 = arith.constant 0 : index
    %106 = vector.load %arg5[%c7, %c0_106, %c0_107] : memref<9x8x16xbf16, #tpu.memory_space<vmem>>, vector<1x8x16xbf16>
    %107 = vector.shape_cast %106 : vector<1x8x16xbf16> to vector<8x16xbf16>
    %cst_108 = arith.constant dense<0.000000e+00> : vector<144x16xf32>
    %108 = tpu.matmul %105, %107, %cst_108 {dimension_numbers = #tpu.dot_dimension_numbers<[1], [0], [0], [1], [0, 0, 1, 1], [], []>} : vector<144x8xbf16>, vector<8x16xbf16>, vector<144x16xf32> -> vector<144x16xf32>
    %c0_109 = arith.constant 0 : index
    %c0_110 = arith.constant 0 : index
    %109 = vector.load %arg9[%c0_109, %c0_110] : memref<144x16xf32, #tpu.memory_space<vmem>>, vector<144x16xf32>
    %110 = arith.addf %109, %108 : vector<144x16xf32>
    %c0_111 = arith.constant 0 : index
    %c0_112 = arith.constant 0 : index
    %111 = vector.load %arg9[%c0_111, %c0_112] : memref<144x16xf32, #tpu.memory_space<vmem>>, vector<144x16xf32>
    tpu.vector_store %arg9[%c0_111, %c0_112], %110 {strides = array<i32>} : memref<144x16xf32, #tpu.memory_space<vmem>>, vector<144x16xf32>,
    %c38 = arith.constant 38 : index
    %c0_113 = arith.constant 0 : index
    %112 = vector.load %arg8[%c38, %c0_113] : memref<182x8xbf16, #tpu.memory_space<vmem>>, vector<144x8xbf16>
    %c8 = arith.constant 8 : index
    %c0_114 = arith.constant 0 : index
    %c0_115 = arith.constant 0 : index
    %113 = vector.load %arg5[%c8, %c0_114, %c0_115] : memref<9x8x16xbf16, #tpu.memory_space<vmem>>, vector<1x8x16xbf16>
    %114 = vector.shape_cast %113 : vector<1x8x16xbf16> to vector<8x16xbf16>
    %cst_116 = arith.constant dense<0.000000e+00> : vector<144x16xf32>
    %115 = tpu.matmul %112, %114, %cst_116 {dimension_numbers = #tpu.dot_dimension_numbers<[1], [0], [0], [1], [0, 0, 1, 1], [], []>} : vector<144x8xbf16>, vector<8x16xbf16>, vector<144x16xf32> -> vector<144x16xf32>
    %c0_117 = arith.constant 0 : index
    %c0_118 = arith.constant 0 : index
    %116 = vector.load %arg9[%c0_117, %c0_118] : memref<144x16xf32, #tpu.memory_space<vmem>>, vector<144x16xf32>
    %117 = arith.addf %116, %115 : vector<144x16xf32>
    %c0_119 = arith.constant 0 : index
    %c0_120 = arith.constant 0 : index
    %118 = vector.load %arg9[%c0_119, %c0_120] : memref<144x16xf32, #tpu.memory_space<vmem>>, vector<144x16xf32>
    tpu.vector_store %arg9[%c0_119, %c0_120], %117 {strides = array<i32>} : memref<144x16xf32, #tpu.memory_space<vmem>>, vector<144x16xf32>,
    %cst_121 = arith.constant 0.000000e+00 : f32
    %119 = vector.broadcast %cst_121 : f32 to vector<1x16xf32>
    %cst_122 = arith.constant 0.000000e+00 : f32
    %120 = vector.broadcast %cst_122 : f32 to vector<1x16xf32>
    %c0_123 = arith.constant 0 : index
    %c0_124 = arith.constant 0 : index
    %121 = vector.load %arg9[%c0_123, %c0_124] : memref<144x16xf32, #tpu.memory_space<vmem>>, vector<16x16xf32>
    %122 = arith.truncf %121 : vector<16x16xf32> to vector<16x16xbf16>
    %c0_125 = arith.constant 0 : index
    %c0_126 = arith.constant 0 : index
    %c0_127 = arith.constant 0 : index
    %c0_128 = arith.constant 0 : index
    %123 = vector.load %arg6[%c0_125, %c0_126, %c0_127, %c0_128] : memref<1x8x16x16xbf16, #tpu.memory_space<vmem>>, vector<1x1x16x16xbf16>
    %124 = vector.shape_cast %123 : vector<1x1x16x16xbf16> to vector<16x16xbf16>
    %125 = vector.shape_cast %122 : vector<16x16xbf16> to vector<1x1x16x16xbf16>
    tpu.vector_store %arg6[%c0_125, %c0_126, %c0_127, %c0_128], %125 {strides = array<i32>} : memref<1x8x16x16xbf16, #tpu.memory_space<vmem>>, vector<1x1x16x16xbf16>,
    %cst_129 = arith.constant dense<0.000000e+00> : vector<16xf32>
    %126 = vector.multi_reduction <add>, %121, %cst_129 [0] : vector<16x16xf32> to vector<16xf32>
    %127 = vector.shape_cast %126 : vector<16xf32> to vector<1x16xf32>
    %128 = arith.addf %119, %127 : vector<1x16xf32>
    %129 = arith.mulf %121, %121 : vector<16x16xf32>
    %cst_130 = arith.constant dense<0.000000e+00> : vector<16xf32>
    %130 = vector.multi_reduction <add>, %129, %cst_130 [0] : vector<16x16xf32> to vector<16xf32>
    %131 = vector.shape_cast %130 : vector<16xf32> to vector<1x16xf32>
    %132 = arith.addf %120, %131 : vector<1x16xf32>
    %c18_131 = arith.constant 18 : index
    %c0_132 = arith.constant 0 : index
    %133 = vector.load %arg9[%c18_131, %c0_132] : memref<144x16xf32, #tpu.memory_space<vmem>>, vector<16x16xf32>
    %134 = arith.truncf %133 : vector<16x16xf32> to vector<16x16xbf16>
    %c0_133 = arith.constant 0 : index
    %c1_134 = arith.constant 1 : index
    %c0_135 = arith.constant 0 : index
    %c0_136 = arith.constant 0 : index
    %135 = vector.load %arg6[%c0_133, %c1_134, %c0_135, %c0_136] : memref<1x8x16x16xbf16, #tpu.memory_space<vmem>>, vector<1x1x16x16xbf16>
    %136 = vector.shape_cast %135 : vector<1x1x16x16xbf16> to vector<16x16xbf16>
    %137 = vector.shape_cast %134 : vector<16x16xbf16> to vector<1x1x16x16xbf16>
    tpu.vector_store %arg6[%c0_133, %c1_134, %c0_135, %c0_136], %137 {strides = array<i32>} : memref<1x8x16x16xbf16, #tpu.memory_space<vmem>>, vector<1x1x16x16xbf16>,
    %cst_137 = arith.constant dense<0.000000e+00> : vector<16xf32>
    %138 = vector.multi_reduction <add>, %133, %cst_137 [0] : vector<16x16xf32> to vector<16xf32>
    %139 = vector.shape_cast %138 : vector<16xf32> to vector<1x16xf32>
    %140 = arith.addf %128, %139 : vector<1x16xf32>
    %141 = arith.mulf %133, %133 : vector<16x16xf32>
    %cst_138 = arith.constant dense<0.000000e+00> : vector<16xf32>
    %142 = vector.multi_reduction <add>, %141, %cst_138 [0] : vector<16x16xf32> to vector<16xf32>
    %143 = vector.shape_cast %142 : vector<16xf32> to vector<1x16xf32>
    %144 = arith.addf %132, %143 : vector<1x16xf32>
    %c36_139 = arith.constant 36 : index
    %c0_140 = arith.constant 0 : index
    %145 = vector.load %arg9[%c36_139, %c0_140] : memref<144x16xf32, #tpu.memory_space<vmem>>, vector<16x16xf32>
    %146 = arith.truncf %145 : vector<16x16xf32> to vector<16x16xbf16>
    %c0_141 = arith.constant 0 : index
    %c2_142 = arith.constant 2 : index
    %c0_143 = arith.constant 0 : index
    %c0_144 = arith.constant 0 : index
    %147 = vector.load %arg6[%c0_141, %c2_142, %c0_143, %c0_144] : memref<1x8x16x16xbf16, #tpu.memory_space<vmem>>, vector<1x1x16x16xbf16>
    %148 = vector.shape_cast %147 : vector<1x1x16x16xbf16> to vector<16x16xbf16>
    %149 = vector.shape_cast %146 : vector<16x16xbf16> to vector<1x1x16x16xbf16>
    tpu.vector_store %arg6[%c0_141, %c2_142, %c0_143, %c0_144], %149 {strides = array<i32>} : memref<1x8x16x16xbf16, #tpu.memory_space<vmem>>, vector<1x1x16x16xbf16>,
    %cst_145 = arith.constant dense<0.000000e+00> : vector<16xf32>
    %150 = vector.multi_reduction <add>, %145, %cst_145 [0] : vector<16x16xf32> to vector<16xf32>
    %151 = vector.shape_cast %150 : vector<16xf32> to vector<1x16xf32>
    %152 = arith.addf %140, %151 : vector<1x16xf32>
    %153 = arith.mulf %145, %145 : vector<16x16xf32>
    %cst_146 = arith.constant dense<0.000000e+00> : vector<16xf32>
    %154 = vector.multi_reduction <add>, %153, %cst_146 [0] : vector<16x16xf32> to vector<16xf32>
    %155 = vector.shape_cast %154 : vector<16xf32> to vector<1x16xf32>
    %156 = arith.addf %144, %155 : vector<1x16xf32>
    %c54 = arith.constant 54 : index
    %c0_147 = arith.constant 0 : index
    %157 = vector.load %arg9[%c54, %c0_147] : memref<144x16xf32, #tpu.memory_space<vmem>>, vector<16x16xf32>
    %158 = arith.truncf %157 : vector<16x16xf32> to vector<16x16xbf16>
    %c0_148 = arith.constant 0 : index
    %c3_149 = arith.constant 3 : index
    %c0_150 = arith.constant 0 : index
    %c0_151 = arith.constant 0 : index
    %159 = vector.load %arg6[%c0_148, %c3_149, %c0_150, %c0_151] : memref<1x8x16x16xbf16, #tpu.memory_space<vmem>>, vector<1x1x16x16xbf16>
    %160 = vector.shape_cast %159 : vector<1x1x16x16xbf16> to vector<16x16xbf16>
    %161 = vector.shape_cast %158 : vector<16x16xbf16> to vector<1x1x16x16xbf16>
    tpu.vector_store %arg6[%c0_148, %c3_149, %c0_150, %c0_151], %161 {strides = array<i32>} : memref<1x8x16x16xbf16, #tpu.memory_space<vmem>>, vector<1x1x16x16xbf16>,
    %cst_152 = arith.constant dense<0.000000e+00> : vector<16xf32>
    %162 = vector.multi_reduction <add>, %157, %cst_152 [0] : vector<16x16xf32> to vector<16xf32>
    %163 = vector.shape_cast %162 : vector<16xf32> to vector<1x16xf32>
    %164 = arith.addf %152, %163 : vector<1x16xf32>
    %165 = arith.mulf %157, %157 : vector<16x16xf32>
    %cst_153 = arith.constant dense<0.000000e+00> : vector<16xf32>
    %166 = vector.multi_reduction <add>, %165, %cst_153 [0] : vector<16x16xf32> to vector<16xf32>
    %167 = vector.shape_cast %166 : vector<16xf32> to vector<1x16xf32>
    %168 = arith.addf %156, %167 : vector<1x16xf32>
    %c72 = arith.constant 72 : index
    %c0_154 = arith.constant 0 : index
    %169 = vector.load %arg9[%c72, %c0_154] : memref<144x16xf32, #tpu.memory_space<vmem>>, vector<16x16xf32>
    %170 = arith.truncf %169 : vector<16x16xf32> to vector<16x16xbf16>
    %c0_155 = arith.constant 0 : index
    %c4_156 = arith.constant 4 : index
    %c0_157 = arith.constant 0 : index
    %c0_158 = arith.constant 0 : index
    %171 = vector.load %arg6[%c0_155, %c4_156, %c0_157, %c0_158] : memref<1x8x16x16xbf16, #tpu.memory_space<vmem>>, vector<1x1x16x16xbf16>
    %172 = vector.shape_cast %171 : vector<1x1x16x16xbf16> to vector<16x16xbf16>
    %173 = vector.shape_cast %170 : vector<16x16xbf16> to vector<1x1x16x16xbf16>
    tpu.vector_store %arg6[%c0_155, %c4_156, %c0_157, %c0_158], %173 {strides = array<i32>} : memref<1x8x16x16xbf16, #tpu.memory_space<vmem>>, vector<1x1x16x16xbf16>,
    %cst_159 = arith.constant dense<0.000000e+00> : vector<16xf32>
    %174 = vector.multi_reduction <add>, %169, %cst_159 [0] : vector<16x16xf32> to vector<16xf32>
    %175 = vector.shape_cast %174 : vector<16xf32> to vector<1x16xf32>
    %176 = arith.addf %164, %175 : vector<1x16xf32>
    %177 = arith.mulf %169, %169 : vector<16x16xf32>
    %cst_160 = arith.constant dense<0.000000e+00> : vector<16xf32>
    %178 = vector.multi_reduction <add>, %177, %cst_160 [0] : vector<16x16xf32> to vector<16xf32>
    %179 = vector.shape_cast %178 : vector<16xf32> to vector<1x16xf32>
    %180 = arith.addf %168, %179 : vector<1x16xf32>
    %c90 = arith.constant 90 : index
    %c0_161 = arith.constant 0 : index
    %181 = vector.load %arg9[%c90, %c0_161] : memref<144x16xf32, #tpu.memory_space<vmem>>, vector<16x16xf32>
    %182 = arith.truncf %181 : vector<16x16xf32> to vector<16x16xbf16>
    %c0_162 = arith.constant 0 : index
    %c5_163 = arith.constant 5 : index
    %c0_164 = arith.constant 0 : index
    %c0_165 = arith.constant 0 : index
    %183 = vector.load %arg6[%c0_162, %c5_163, %c0_164, %c0_165] : memref<1x8x16x16xbf16, #tpu.memory_space<vmem>>, vector<1x1x16x16xbf16>
    %184 = vector.shape_cast %183 : vector<1x1x16x16xbf16> to vector<16x16xbf16>
    %185 = vector.shape_cast %182 : vector<16x16xbf16> to vector<1x1x16x16xbf16>
    tpu.vector_store %arg6[%c0_162, %c5_163, %c0_164, %c0_165], %185 {strides = array<i32>} : memref<1x8x16x16xbf16, #tpu.memory_space<vmem>>, vector<1x1x16x16xbf16>,
    %cst_166 = arith.constant dense<0.000000e+00> : vector<16xf32>
    %186 = vector.multi_reduction <add>, %181, %cst_166 [0] : vector<16x16xf32> to vector<16xf32>
    %187 = vector.shape_cast %186 : vector<16xf32> to vector<1x16xf32>
    %188 = arith.addf %176, %187 : vector<1x16xf32>
    %189 = arith.mulf %181, %181 : vector<16x16xf32>
    %cst_167 = arith.constant dense<0.000000e+00> : vector<16xf32>
    %190 = vector.multi_reduction <add>, %189, %cst_167 [0] : vector<16x16xf32> to vector<16xf32>
    %191 = vector.shape_cast %190 : vector<16xf32> to vector<1x16xf32>
    %192 = arith.addf %180, %191 : vector<1x16xf32>
    %c108 = arith.constant 108 : index
    %c0_168 = arith.constant 0 : index
    %193 = vector.load %arg9[%c108, %c0_168] : memref<144x16xf32, #tpu.memory_space<vmem>>, vector<16x16xf32>
    %194 = arith.truncf %193 : vector<16x16xf32> to vector<16x16xbf16>
    %c0_169 = arith.constant 0 : index
    %c6_170 = arith.constant 6 : index
    %c0_171 = arith.constant 0 : index
    %c0_172 = arith.constant 0 : index
    %195 = vector.load %arg6[%c0_169, %c6_170, %c0_171, %c0_172] : memref<1x8x16x16xbf16, #tpu.memory_space<vmem>>, vector<1x1x16x16xbf16>
    %196 = vector.shape_cast %195 : vector<1x1x16x16xbf16> to vector<16x16xbf16>
    %197 = vector.shape_cast %194 : vector<16x16xbf16> to vector<1x1x16x16xbf16>
    tpu.vector_store %arg6[%c0_169, %c6_170, %c0_171, %c0_172], %197 {strides = array<i32>} : memref<1x8x16x16xbf16, #tpu.memory_space<vmem>>, vector<1x1x16x16xbf16>,
    %cst_173 = arith.constant dense<0.000000e+00> : vector<16xf32>
    %198 = vector.multi_reduction <add>, %193, %cst_173 [0] : vector<16x16xf32> to vector<16xf32>
    %199 = vector.shape_cast %198 : vector<16xf32> to vector<1x16xf32>
    %200 = arith.addf %188, %199 : vector<1x16xf32>
    %201 = arith.mulf %193, %193 : vector<16x16xf32>
    %cst_174 = arith.constant dense<0.000000e+00> : vector<16xf32>
    %202 = vector.multi_reduction <add>, %201, %cst_174 [0] : vector<16x16xf32> to vector<16xf32>
    %203 = vector.shape_cast %202 : vector<16xf32> to vector<1x16xf32>
    %204 = arith.addf %192, %203 : vector<1x16xf32>
    %c126 = arith.constant 126 : index
    %c0_175 = arith.constant 0 : index
    %205 = vector.load %arg9[%c126, %c0_175] : memref<144x16xf32, #tpu.memory_space<vmem>>, vector<16x16xf32>
    %206 = arith.truncf %205 : vector<16x16xf32> to vector<16x16xbf16>
    %c0_176 = arith.constant 0 : index
    %c7_177 = arith.constant 7 : index
    %c0_178 = arith.constant 0 : index
    %c0_179 = arith.constant 0 : index
    %207 = vector.load %arg6[%c0_176, %c7_177, %c0_178, %c0_179] : memref<1x8x16x16xbf16, #tpu.memory_space<vmem>>, vector<1x1x16x16xbf16>
    %208 = vector.shape_cast %207 : vector<1x1x16x16xbf16> to vector<16x16xbf16>
    %209 = vector.shape_cast %206 : vector<16x16xbf16> to vector<1x1x16x16xbf16>
    tpu.vector_store %arg6[%c0_176, %c7_177, %c0_178, %c0_179], %209 {strides = array<i32>} : memref<1x8x16x16xbf16, #tpu.memory_space<vmem>>, vector<1x1x16x16xbf16>,
    %cst_180 = arith.constant dense<0.000000e+00> : vector<16xf32>
    %210 = vector.multi_reduction <add>, %205, %cst_180 [0] : vector<16x16xf32> to vector<16xf32>
    %211 = vector.shape_cast %210 : vector<16xf32> to vector<1x16xf32>
    %212 = arith.addf %200, %211 : vector<1x16xf32>
    %213 = arith.mulf %205, %205 : vector<16x16xf32>
    %cst_181 = arith.constant dense<0.000000e+00> : vector<16xf32>
    %214 = vector.multi_reduction <add>, %213, %cst_181 [0] : vector<16x16xf32> to vector<16xf32>
    %215 = vector.shape_cast %214 : vector<16xf32> to vector<1x16xf32>
    %216 = arith.addf %204, %215 : vector<1x16xf32>
    %217 = tpu.concatenate %212, %216 in 0 : vector<1x16xf32>, vector<1x16xf32> -> vector<2x16xf32>
    %c0_182 = arith.constant 0 : index
    %c0_183 = arith.constant 0 : index
    %c0_184 = arith.constant 0 : index
    %c0_185 = arith.constant 0 : index
    %218 = vector.load %arg7[%c0_182, %c0_183, %c0_184, %c0_185] : memref<1x1x2x16xf32, #tpu.memory_space<vmem>>, vector<1x1x2x16xf32>
    %219 = vector.shape_cast %218 : vector<1x1x2x16xf32> to vector<2x16xf32>
    %220 = vector.shape_cast %217 : vector<2x16xf32> to vector<1x1x2x16xf32>
    tpu.vector_store %arg7[%c0_182, %c0_183, %c0_184, %c0_185], %220 {strides = array<i32>} : memref<1x1x2x16xf32, #tpu.memory_space<vmem>>, vector<1x1x2x16xf32>,
    return
  }
  func.func @transform_0(%arg0: i32, %arg1: i32) -> (i32, i32, i32, i32) {
    %c0_i32 = arith.constant 0 : i32
    %c0_i32_0 = arith.constant 0 : i32
    %c0_i32_1 = arith.constant 0 : i32
    %c0_i32_2 = arith.constant 0 : i32
    return %arg0, %c0_i32, %c0_i32_0, %c0_i32_1 : i32, i32, i32, i32
  }
  func.func @transform_1(%arg0: i32, %arg1: i32) -> (i32, i32) {
    %c0_i32 = arith.constant 0 : i32
    %c0_i32_0 = arith.constant 0 : i32
    %c0_i32_1 = arith.constant 0 : i32
    return %c0_i32, %c0_i32_0 : i32, i32
  }
  func.func @transform_2(%arg0: i32, %arg1: i32) -> (i32, i32) {
    %c0_i32 = arith.constant 0 : i32
    %c0_i32_0 = arith.constant 0 : i32
    %c0_i32_1 = arith.constant 0 : i32
    return %c0_i32, %c0_i32_0 : i32, i32
  }
  func.func @transform_3(%arg0: i32, %arg1: i32) -> (i32, i32, i32) {
    %c0_i32 = arith.constant 0 : i32
    %c0_i32_0 = arith.constant 0 : i32
    %c0_i32_1 = arith.constant 0 : i32
    %c0_i32_2 = arith.constant 0 : i32
    return %c0_i32, %c0_i32_0, %c0_i32_1 : i32, i32, i32
  }
  func.func @transform_4(%arg0: i32, %arg1: i32) -> (i32, i32, i32, i32) {
    %c0_i32 = arith.constant 0 : i32
    %c0_i32_0 = arith.constant 0 : i32
    %c0_i32_1 = arith.constant 0 : i32
    return %arg0, %arg1, %c0_i32, %c0_i32_0 : i32, i32, i32, i32
  }
  func.func @transform_5(%arg0: i32, %arg1: i32) -> (i32, i32, i32, i32) {
    %c0_i32 = arith.constant 0 : i32
    %c0_i32_0 = arith.constant 0 : i32
    %c0_i32_1 = arith.constant 0 : i32
    return %arg0, %arg1, %c0_i32, %c0_i32_0 : i32, i32, i32, i32
  }
}

</mosaic_0001>

<bundles_post_ra>
// kernel: _lambda_.1
= control target key start
LH: loop header
LB: loop body
LE: loop exit
PB: predicated region body
PF: predicated region fallthrough
CT: control target
= control target key end

     0   :  { %11 = vsyncpa [#allocation5], 0  ;;  %s5089_s0 = inlined_call_operand.vmem [shape: bf16[1,32,16,8], index: 0, kind: input, shape index: {}]   ;;  %s5090_s1 = inlined_call_operand.vmem [shape: f32[1,8], index: 1, kind: input, shape index: {}]   ;;  %s5091_s2 = inlined_call_operand.vmem [shape: f32[1,8], index: 2, kind: input, shape index: {}]   ;;  %s5092_s3 = inlined_call_operand.vmem [shape: bf16[9,8,16], index: 3, kind: input, shape index: {}]   ;;  %s5093_s4 = inlined_call_operand.vmem [shape: bf16[1,32,16,16], index: 4, kind: output, shape index: {0}]   ;;  %s5094_s5 = inlined_call_operand.hbm [shape: f32[1,4,2,16], index: 5, kind: output, shape index: {1}]  }
   0x1   :  { %13 = vsyncpa [#allocation5 + $0x1], 0  ;;  %s4021_s18 = smov 0   ;;  %s4023_s19 = smov 0  }
   0x2   :  { %s4025_s20 = smov 0   ;;  %s4027_s1 = smov 0  }
   0x3   :  { %s4029_s2 = smov 0   ;;  %s4031_s21 = smov 0  }
   0x4 LB: > { %s3278_s22 = sadd.s32 4294967295, %s3988_s21   ;;  %s3279_s23 = sadd.s32 4294967294, %s3988_s21   ;;  %s3988_s21 = sphi %s4031_s21, %s19_s21   ;;  %s3984_s2 = sphi %s4029_s2, %s5125_s2   ;;  %s3980_s1 = sphi %s4027_s1, %s5124_s1   ;;  %s3976_s20 = sphi %s4025_s20, %s5123_s20   ;;  %s3972_s19 = sphi %s4023_s19, %s5122_s19   ;;  %s3968_s18 = sphi %s4021_s18, %s5121_s18  }
   0x5   : > { %s28_s24 = sadd.s32 1, %s3984_s2  ;;  %s157_s25 = sadd.s32 1, %s3976_s20 }
   0x6   : > { %p29_p0 = scmp.ge.s32.totalorder %s28_s24, 4  ;;  %p167_p1 = scmp.ne.s32.totalorder %s3976_s20, %s3972_s19 }
   0x7   : > { %p168_p2 = scmp.eq.s32.totalorder %s3278_s22, 3  ;;  %p173_p3 = scmp.ne.s32.totalorder %s3972_s19, %s3968_s18 }
   0x8   : > { %s5127_s24 = smov (%p29_p0, %s28_s24), 0  ;;  %p174_p5 = scmp.eq.s32.totalorder %s3279_s23, 3 }
   0x9   : > { %p4061_p4 = por %p168_p2, %p167_p1  ;;  %s153_s27 = ssub.s32 %s3984_s2, %s5127_s24 }
   0xa   : > { %p3282_p6 = scmp.ge.s32.totalorder %s3988_s21, 1  ;;  %p155_p7 = scmp.eq.s32.totalorder %s153_s27, 0 }
   0xb   : > { %p4068_p8 = por %p174_p5, %p173_p3  ;;  %p209_p9 = scmp.lt.s32.totalorder %s3988_s21, 5 }
   0xc   : > { %s4074_s29 = scalar_select %p155_p7, %s3976_s20, %s157_s25  }
   0xd   : > { %p210_p10 = pnand %p3282_p6, %p209_p9 }
   0xe   : > { %s244_s30 = sand.u32 (!%p210_p10), 1, %s3972_s19   ;;  %s4078_s6 = sshll.u32 (!%p210_p10), %s3980_s1, 3 }
   0xf   : > { %213 = sbr.rel (%p210_p10) target bundleno = 633 (0x279), region = 36  ;;  %s4082_s7 = sshll.u32 (!%p210_p10), %s244_s30, 1 }
  0x10   : > { %p255_p11 = scmp.lt.s32.totalorder (!%p210_p10), %s4078_s6, 31  ;;  %s246_s13 = scalar_lea.vmem (!%p210_p10), [#allocation4], %s4082_s7 }
  0x11   : > { %p3288_p12 = scmp.le.s32.totalorder (!%p210_p10), %s4078_s6, 0 }
  0x14   : > { %vm265_vm0 = vcmask 60416   ;;  %v3990_v0 = vmov 0   ;;  %s256_s8 = scalar_select %p255_p11, %s4078_s6, 31  ;;  %vm288_vm1 = vcmask 59392  }
  0x15   : > { %266 = vst.msk [vmem:[#allocation2] sm:$0xf] %vm265_vm0, %v3990_v0  ;;  %s3289_s14 = sadd.s32 (!%p3288_p12), 4294967295, %s4078_s6 }
  0x16   : > { %267 = vst.msk [vmem:[#allocation2 + $0x4] sm:$0xf] %vm265_vm0, %v3990_v0  ;;  %s3758_s9 = sshll.u32 %s256_s8, 3  ;;  %s3759_s15 = sshll.u32 (!%p3288_p12), %s3289_s14, 3 }
  0x17   : > { %268 = vst.msk [vmem:[#allocation2 + $0x8] sm:$0xf] %vm265_vm0, %v3990_v0  ;;  %s4094_s12 = scalar_lea.vmem %s5093_s4, %s3758_s9  ;;  %s297_s22 = scalar_lea.vmem (!%p3288_p12), %s5089_s0, %s3759_s15 }
  0x18   : > { %269 = vst.msk [vmem:[#allocation2 + $0xc] sm:$0xf] %vm265_vm0, %v3990_v0 }
  0x19   : > { %270 = vst.msk [vmem:[#allocation2 + $0x10] sm:$0xf] %vm265_vm0, %v3990_v0 }
  0x1a   : > { %271 = vst.msk [vmem:[#allocation2 + $0x14] sm:$0xf] %vm265_vm0, %v3990_v0 }
  0x1b   : > { %272 = vst.msk [vmem:[#allocation2 + $0x18] sm:$0xf] %vm265_vm0, %v3990_v0 }
  0x1c   : > { %273 = vst.msk [vmem:[#allocation2 + $0x1c] sm:$0xf] %vm265_vm0, %v3990_v0 }
  0x1d   : > { %274 = vst.msk [vmem:[#allocation2 + $0x20] sm:$0xf] %vm265_vm0, %v3990_v0 }
  0x1e   : > { %275 = vst.msk [vmem:[#allocation2 + $0x24] sm:$0xf] %vm265_vm0, %v3990_v0 }
  0x1f   : > { %276 = vst.msk [vmem:[#allocation2 + $0x28] sm:$0xf] %vm265_vm0, %v3990_v0 }
  0x20   : > { %277 = vst.msk [vmem:[#allocation2 + $0x2c] sm:$0xf] %vm265_vm0, %v3990_v0 }
  0x21   : > { %278 = vst.msk [vmem:[#allocation2 + $0x30] sm:$0xf] %vm265_vm0, %v3990_v0 }
  0x22   : > { %279 = vst.msk [vmem:[#allocation2 + $0x34] sm:$0xf] %vm265_vm0, %v3990_v0 }
  0x23   : > { %280 = vst.msk [vmem:[#allocation2 + $0x38] sm:$0xf] %vm265_vm0, %v3990_v0 }
  0x24   : > { %281 = vst.msk [vmem:[#allocation2 + $0x3c] sm:$0xf] %vm265_vm0, %v3990_v0 }
  0x25   : > { %282 = vst.msk [vmem:[#allocation2 + $0x40] sm:$0xf] %vm265_vm0, %v3990_v0 }
  0x26   : > { %283 = vst.msk [vmem:[#allocation2 + $0x44] sm:$0xf] %vm265_vm0, %v3990_v0 }
  0x27   : > { %284 = vst.msk [vmem:[#allocation2 + $0x48] sm:$0xf] %vm265_vm0, %v3990_v0  ;;  %293 = sbr.rel (%p3288_p12) target bundleno = 56 (0x38), region = 40 }
  0x28   : > { %285 = vst.msk [vmem:[#allocation2 + $0x4c] sm:$0xf] %vm265_vm0, %v3990_v0 }
  0x29   : > { %286 = vst.msk [vmem:[#allocation2 + $0x50] sm:$0xf] %vm265_vm0, %v3990_v0 }
  0x2a   : > { %287 = vst.msk [vmem:[#allocation2 + $0x54] sm:$0xf] %vm265_vm0, %v3990_v0 }
  0x2b   : > { %289 = vst.msk [vmem:[#allocation2 + $0x58] sm:$0x7] %vm288_vm1, %v3990_v0 }
  0x2c   : > { %vm324_vm2 = vsmask.f32 7938  ;;  %vm300_vm3 = vsmask.f32 256  ;;  %vm330_vm4 = vcmask 57344  }
  0x2d   : > { %v298_v1 = vld [vmem:[%s297_s22] sm:$0xf]  ;;  %v299_v2 = vld [vmem:[%s297_s22 + $0x4] sm:$0xf]  ;;  %vm301_vm5 = vsmask.f32 4368  ;;  %vm325_vm6 = vmand %vm265_vm0, %vm324_vm2 }
  0x2e   : > { %v304_v3 = vshrl.u32 %v298_v1, 16  ;;  %v307_v4 = vshll.u32 %v298_v1, 16  ;;  %v312_v5 = vshrl.u32 %v299_v2, 16  ;;  %v315_v6 = vshll.u32 %v299_v2, 16  ;;  %vm302_vm7 = vmor %vm300_vm3, %vm301_vm5  ;;  %v326_v9 = vld [vmem:[#allocation2] sm:$0xf] }
  0x2f   : > { %vm331_vm8 = vmand %vm330_vm4, %vm300_vm3  ;;  %v332_v10 = vld [vmem:[#allocation2 + $0x8] sm:$0x1] }
  0x30   : > { %v306_v7 = vrot.slane %v304_v3, 7  ;;  %v314_v8 = vrot.slane %v312_v5, 7 }
  0x32   : > { %v309_v11 = vor.u32 %v307_v4, %v306_v7  ;;  %v310_v12 = vrot.slane %v306_v7, 4  ;;  %v317_v13 = vor.u32 %v315_v6, %v314_v8  ;;  %v319_v14 = vrot.slane %v314_v8, 4 }
  0x34   : > { %v327_v15 = vsel %vm325_vm6, %v309_v11, %v326_v9  ;;  %v318_v16 = vsel %vm302_vm7, %v310_v12, %v317_v13  ;;  %v333_v17 = vsel %vm331_vm8, %v319_v14, %v332_v10 }
  0x35   : > { %328 = vst [vmem:[#allocation2] sm:$0xf] %v327_v15 }
  0x36   : > { %329 = vst.msk [vmem:[#allocation2 + $0x4] sm:$0xf] %vm265_vm0, %v318_v16 }
  0x37   : > { %334 = vst [vmem:[#allocation2 + $0x8] sm:$0x1] %v333_v17 }
  0x38 PF: > { %s3761_s23 = sshll.u32 %s3980_s1, 6  ;;  %vm365_vm9 = vcmask 60417   ;;  %vm366_vm10 = vsmask.f32 7942  ;;  %vm340_vm11 = vsmask.f32 1280 }
  0x39   : > { %s4126_s8 = scalar_lea.vmem %s5089_s0, %s3761_s23  ;;  %vm341_vm12 = vsmask.f32 5392  ;;  %vm372_vm13 = vcmask 58368   ;;  %vm408_vm14 = vcmask 60418   ;;  %v368_v24 = vld [vmem:[#allocation2 + $0x8] sm:$0xe]  ;;  %vm4134_vm3 = vmand %vm365_vm9, %vm366_vm10 }
  0x3a   : > { %v338_v18 = vld [vmem:[%s4126_s8] sm:$0xf]  ;;  %v339_v19 = vld [vmem:[%s4126_s8 + $0x4] sm:$0xf]  ;;  %v3296_v25 = vld [vmem:[%s4126_s8 + $0x8] sm:$0xf] }
  0x3b   : > { %v344_v20 = vshrl.u32 %v338_v18, 16  ;;  %v347_v21 = vshll.u32 %v338_v18, 16  ;;  %v353_v22 = vshrl.u32 %v339_v19, 16  ;;  %v356_v23 = vshll.u32 %v339_v19, 16  ;;  %v3297_v30 = vld [vmem:[%s4126_s8 + $0xc] sm:$0xf]  ;;  %vm4141_vm5 = vmor %vm340_vm11, %vm341_vm12 }
  0x3c   : > { %vm409_vm15 = vsmask.f32 7946  ;;  %vm383_vm2 = vsmask.f32 2304  ;;  %v374_v32 = vld [vmem:[#allocation2 + $0x10] sm:$0x3]  ;;  %vm4148_vm7 = vmand %vm372_vm13, %vm340_vm11 }
  0x3d   : > { %v346_v26 = vrot.slane %v344_v20, 6  ;;  %v349_v27 = vrot.slane %v347_v21, 7  ;;  %v355_v28 = vrot.slane %v353_v22, 6  ;;  %v358_v29 = vrot.slane %v356_v23, 7  ;;  %s641_s9 = sadd.s32 8, %s4078_s6  ;;  %vm4156_vm8 = vmand %vm408_vm14, %vm409_vm15 }
  0x3e   : > { %v387_v33 = vshrl.u32 %v3296_v25, 16  ;;  %v390_v34 = vshll.u32 %v3296_v25, 16  ;;  %vm384_vm4 = vsmask.f32 6416  ;;  %v396_v35 = vshrl.u32 %v3297_v30, 16  ;;  %vm4182_vm13 = vmand %vm288_vm1, %vm383_vm2  ;;  %p3322_p13 = scmp.ge.s32.totalorder %s641_s9, 32 }
  0x3f   : > { %v350_v36 = vor.u32 %v349_v27, %v346_v26  ;;  %v359_v38 = vor.u32 %v358_v29, %v355_v28  ;;  %v411_v39 = vld [vmem:[#allocation2 + $0x10] sm:$0xc]  ;;  %v399_v40 = vshll.u32 %v3297_v30, 16  ;;  %vm451_vm6 = vcmask 60419   ;;  %v454_v47 = vld [vmem:[#allocation2 + $0x18] sm:$0x8]  ;;  %vm4163_vm9 = vmor %vm383_vm2, %vm384_vm4 }
  0x40   : > { %v3300_v41 = vld [vmem:[%s4126_s8 + $0x10] sm:$0xf]  ;;  %v389_v43 = vrot.slane %v387_v33, 5  ;;  %v392_v44 = vrot.slane %v390_v34, 6  ;;  %v398_v45 = vrot.slane %v396_v35, 5  ;;  %vm498_vm2 = vcmask 57344  }
  0x41   : > { %v430_v46 = vshll.u32 %v3300_v41, 16  ;;  %v369_v48 = vsel %vm4134_vm3, %v350_v36, %v368_v24  ;;  %v351_v49 = vrot.slane %v350_v36, 4  ;;  %v361_v50 = vrot.slane %v359_v38, 4  ;;  %v3301_v53 = vld [vmem:[%s4126_s8 + $0x14] sm:$0xf] }
  0x42   : > { %v401_v52 = vrot.slane %v399_v40, 6  ;;  %370 = vst [vmem:[#allocation2 + $0x8] sm:$0xe] %v369_v48  ;;  %v393_v54 = vor.u32 %v392_v44, %v389_v43  ;;  %vm452_vm10 = vsmask.f32 7950  ;;  %v433_v57 = vshrl.u32 %v3300_v41, 16 }
  0x43   : > { %v432_v56 = vrot.slane %v430_v46, 5  ;;  %v360_v58 = vsel %vm4141_vm5, %v351_v49, %v359_v38  ;;  %v375_v59 = vsel %vm4148_vm7, %v361_v50, %v374_v32  ;;  %v417_v61 = vld [vmem:[#allocation2 + $0x18] sm:$0x7]  ;;  %vm4172_vm11 = vmand %vm451_vm6, %vm452_vm10  ;;  %vm426_vm12 = vsmask.f32 3328 }
  0x44   : > { %v402_v60 = vor.u32 %v401_v52, %v398_v45  ;;  %v3304_v63 = vld [vmem:[%s4126_s8 + $0x18] sm:$0xf]  ;;  %371 = vst.msk [vmem:[#allocation2 + $0xc] sm:$0xf] %vm265_vm0, %v360_v58  ;;  %v412_v0 = vsel %vm4156_vm8, %v393_v54, %v411_v39  ;;  %v394_v1 = vrot.slane %v393_v54, 4  ;;  %v435_v5 = vrot.slane %v433_v57, 4  ;;  %vm4208_vm10 = vmand %vm265_vm0, %vm426_vm12 }
  0x45   : > { %v455_v3 = vsel %vm4172_vm11, %v432_v56, %v454_v47  ;;  %vm427_vm14 = vsmask.f32 7440  ;;  %376 = vst [vmem:[#allocation2 + $0x10] sm:$0x3] %v375_v59  ;;  %v439_v6 = vshll.u32 %v3301_v53, 16  ;;  %v443_v7 = vshrl.u32 %v3301_v53, 16 }
  0x46   : > { %v404_v4 = vrot.slane %v402_v60, 4  ;;  %413 = vst [vmem:[#allocation2 + $0x10] sm:$0xc] %v412_v0  ;;  %v403_v8 = vsel %vm4163_vm9, %v394_v1, %v402_v60  ;;  %v473_v9 = vshrl.u32 %v3304_v63, 16  ;;  %v476_v10 = vshll.u32 %v3304_v63, 16  ;;  %vm4195_vm15 = vmor %vm426_vm12, %vm427_vm14 }
  0x47   : > { %vm492_vm1 = vsmask.f32 7938  ;;  %414 = vst.msk [vmem:[#allocation2 + $0x14] sm:$0xf] %vm265_vm0, %v403_v8  ;;  %v436_v12 = vor.u32 %v435_v5, %v432_v56  ;;  %v441_v13 = vrot.slane %v439_v6, 5  ;;  %v445_v14 = vrot.slane %v443_v7, 4 }
  0x48   : > { %v418_v11 = vsel %vm4182_vm13, %v404_v4, %v417_v61  ;;  %v494_v15 = vld [vmem:[#allocation2 + $0x24] sm:$0xf]  ;;  %v475_v17 = vrot.slane %v473_v9, 7  ;;  %v3305_v18 = vld [vmem:[%s4126_s8 + $0x1c] sm:$0xf]  ;;  %vm4202_vm4 = vmand %vm265_vm0, %vm492_vm1 }
  0x49   : > { %419 = vst [vmem:[#allocation2 + $0x18] sm:$0x7] %v418_v11  ;;  %v437_v19 = vrot.slane %v436_v12, 4  ;;  %v446_v20 = vor.u32 %v445_v14, %v441_v13  ;;  %vm469_vm6 = vsmask.f32 256  ;;  %v481_v22 = vshrl.u32 %v3305_v18, 16 }
  0x4a   : > { %456 = vst [vmem:[#allocation2 + $0x18] sm:$0x8] %v455_v3  ;;  %v460_v24 = vld [vmem:[#allocation2 + $0x20] sm:$0xf]  ;;  %v478_v25 = vor.u32 %v476_v10, %v475_v17  ;;  %vm470_vm14 = vsmask.f32 4368  ;;  %vm4216_vm1 = vmand %vm498_vm2, %vm469_vm6 }
  0x4b   : > { %v479_v26 = vrot.slane %v475_v17, 4  ;;  %v484_v27 = vshll.u32 %v3305_v18, 16  ;;  %v442_v28 = vsel %vm4195_vm15, %v437_v19, %v441_v13  ;;  %v447_v29 = vrot.slane %v446_v20, 4  ;;  %v500_v33 = vld [vmem:[#allocation2 + $0x2c] sm:$0x1]  ;;  %vm4225_vm12 = vmor %vm469_vm6, %vm470_vm14 }
  0x4c   : > { %v483_v30 = vrot.slane %v481_v22, 7  ;;  %v3308_v34 = vld [vmem:[%s4126_s8 + $0x20] sm:$0xf]  ;;  %457 = vst.msk [vmem:[#allocation2 + $0x1c] sm:$0xf] %vm265_vm0, %v442_v28  ;;  %v495_v35 = vsel %vm4202_vm4, %v478_v25, %v494_v15 }
  0x4d   : > { %v510_v38 = vshrl.u32 %v3308_v34, 16  ;;  %v513_v39 = vshll.u32 %v3308_v34, 16  ;;  %v3309_v40 = vld [vmem:[%s4126_s8 + $0x24] sm:$0xf]  ;;  %v461_v41 = vsel %vm4208_vm10, %v447_v29, %v460_v24  ;;  %496 = vst [vmem:[#allocation2 + $0x24] sm:$0xf] %v495_v35 }
  0x4e   : > { %v486_v43 = vor.u32 %v484_v27, %v483_v30  ;;  %v488_v44 = vrot.slane %v483_v30, 4  ;;  %v519_v45 = vshrl.u32 %v3309_v40, 16  ;;  %462 = vst [vmem:[#allocation2 + $0x20] sm:$0xf] %v461_v41  ;;  %v522_v48 = vshll.u32 %v3309_v40, 16 }
  0x4f   : > { %v512_v46 = vrot.slane %v510_v38, 6  ;;  %v515_v47 = vrot.slane %v513_v39, 7  ;;  %v531_v52 = vld [vmem:[#allocation2 + $0x2c] sm:$0xe]  ;;  %v3312_v54 = vld [vmem:[%s4126_s8 + $0x28] sm:$0xf] }
  0x50   : > { %v487_v49 = vsel %vm4225_vm12, %v479_v26, %v486_v43  ;;  %v501_v50 = vsel %vm4216_vm1, %v488_v44, %v500_v33  ;;  %v521_v53 = vrot.slane %v519_v45, 6  ;;  %v524_v57 = vrot.slane %v522_v48, 7  ;;  %v535_v60 = vld [vmem:[#allocation2 + $0x34] sm:$0x3]  ;;  %v3313_v61 = vld [vmem:[%s4126_s8 + $0x2c] sm:$0xf] }
  0x51   : > { %497 = vst.msk [vmem:[#allocation2 + $0x28] sm:$0xf] %vm265_vm0, %v487_v49  ;;  %v516_v56 = vor.u32 %v515_v47, %v512_v46  ;;  %v545_v58 = vshrl.u32 %v3312_v54, 16  ;;  %v548_v59 = vshll.u32 %v3312_v54, 16  ;;  %v566_v4 = vld [vmem:[#allocation2 + $0x34] sm:$0xc] }
  0x52   : > { %502 = vst [vmem:[#allocation2 + $0x2c] sm:$0x1] %v501_v50  ;;  %v525_v1 = vor.u32 %v524_v57, %v521_v53  ;;  %v3316_v5 = vld [vmem:[%s4126_s8 + $0x30] sm:$0xf]  ;;  %v554_v7 = vshrl.u32 %v3313_v61, 16  ;;  %v557_v8 = vshll.u32 %v3313_v61, 16 }
  0x53   : > { %v532_v63 = vsel %vm4134_vm3, %v516_v56, %v531_v52  ;;  %v517_v0 = vrot.slane %v516_v56, 4  ;;  %v547_v3 = vrot.slane %v545_v58, 5  ;;  %v550_v6 = vrot.slane %v548_v59, 6  ;;  %v601_v12 = vld [vmem:[#allocation2 + $0x3c] sm:$0x8] }
  0x54   : > { %533 = vst [vmem:[#allocation2 + $0x2c] sm:$0xe] %v532_v63  ;;  %v580_v9 = vshll.u32 %v3316_v5, 16  ;;  %v527_v11 = vrot.slane %v525_v1, 4  ;;  %v3317_v13 = vld [vmem:[%s4126_s8 + $0x34] sm:$0xf] }
  0x55   : > { %v526_v10 = vsel %vm4141_vm5, %v517_v0, %v525_v1  ;;  %v583_v14 = vshrl.u32 %v3316_v5, 16  ;;  %v551_v15 = vor.u32 %v550_v6, %v547_v3  ;;  %v556_v17 = vrot.slane %v554_v7, 5  ;;  %v3320_v26 = vld [vmem:[%s4126_s8 + $0x38] sm:$0xf]  ;;  %v570_v30 = vld [vmem:[#allocation2 + $0x3c] sm:$0x7] }
  0x56   : > { %534 = vst.msk [vmem:[#allocation2 + $0x30] sm:$0xf] %vm265_vm0, %v526_v10  ;;  %v559_v18 = vrot.slane %v557_v8, 6  ;;  %v582_v19 = vrot.slane %v580_v9, 5  ;;  %v536_v20 = vsel %vm4148_vm7, %v527_v11, %v535_v60  ;;  %v589_v24 = vshll.u32 %v3317_v13, 16 }
  0x57   : > { %v585_v22 = vrot.slane %v583_v14, 4  ;;  %v593_v25 = vshrl.u32 %v3317_v13, 16  ;;  %537 = vst [vmem:[#allocation2 + $0x34] sm:$0x3] %v536_v20  ;;  %v567_v27 = vsel %vm4156_vm8, %v551_v15, %v566_v4  ;;  %v552_v28 = vrot.slane %v551_v15, 4 }
  0x58   : > { %v560_v29 = vor.u32 %v559_v18, %v556_v17  ;;  %v602_v33 = vsel %vm4172_vm11, %v582_v19, %v601_v12  ;;  %568 = vst [vmem:[#allocation2 + $0x34] sm:$0xc] %v567_v27  ;;  %v591_v35 = vrot.slane %v589_v24, 5  ;;  %v615_v39 = vshrl.u32 %v3320_v26, 16  ;;  %v3321_v44 = vld [vmem:[%s4126_s8 + $0x3c] sm:$0xf] }
  0x59   : > { %v586_v34 = vor.u32 %v585_v22, %v582_v19  ;;  %v595_v38 = vrot.slane %v593_v25, 4  ;;  %603 = vst [vmem:[#allocation2 + $0x3c] sm:$0x8] %v602_v33  ;;  %v618_v43 = vshll.u32 %v3320_v26, 16  ;;  %v623_v47 = vshrl.u32 %v3321_v44, 16 }
  0x5a   : > { %v561_v40 = vsel %vm4163_vm9, %v552_v28, %v560_v29  ;;  %v562_v41 = vrot.slane %v560_v29, 4  ;;  %v617_v46 = vrot.slane %v615_v39, 7  ;;  %v605_v48 = vld [vmem:[#allocation2 + $0x44] sm:$0xf]  ;;  %v634_v49 = vld [vmem:[#allocation2 + $0x48] sm:$0xf] }
  0x5b   : > { %569 = vst.msk [vmem:[#allocation2 + $0x38] sm:$0xf] %vm265_vm0, %v561_v40  ;;  %v587_v51 = vrot.slane %v586_v34, 4  ;;  %v596_v45 = vor.u32 %v595_v38, %v591_v35  ;;  %v626_v50 = vshll.u32 %v3321_v44, 16  ;;  %v625_v56 = vrot.slane %v623_v47, 7 }
  0x5c   : > { %v571_v62 = vsel %vm4182_vm13, %v562_v41, %v570_v30  ;;  %v620_v53 = vor.u32 %v618_v43, %v617_v46  ;;  %v621_v54 = vrot.slane %v617_v46, 4  ;;  %v638_v58 = vld [vmem:[#allocation2 + $0x50] sm:$0x1] }
  0x5d   : > { %572 = vst [vmem:[#allocation2 + $0x3c] sm:$0x7] %v571_v62  ;;  %v592_v55 = vsel %vm4195_vm15, %v587_v51, %v591_v35  ;;  %v597_v52 = vrot.slane %v596_v45, 4  ;;  %v628_v59 = vor.u32 %v626_v50, %v625_v56  ;;  %v630_v60 = vrot.slane %v625_v56, 4 }
  0x5e   : > { %604 = vst.msk [vmem:[#allocation2 + $0x40] sm:$0xf] %vm265_vm0, %v592_v55  ;;  %v635_v2 = vsel %vm4202_vm4, %v620_v53, %v634_v49  ;;  %645 = sbr.rel (%p3322_p13) target bundleno = 111 (0x6f), region = 44 }
  0x5f   : > { %v606_v57 = vsel %vm4208_vm10, %v597_v52, %v605_v48  ;;  %636 = vst [vmem:[#allocation2 + $0x48] sm:$0xf] %v635_v2  ;;  %v629_v16 = vsel %vm4225_vm12, %v621_v54, %v628_v59  ;;  %v639_v61 = vsel %vm4216_vm1, %v630_v60, %v638_v58 }
  0x60   : > { %607 = vst [vmem:[#allocation2 + $0x44] sm:$0xf] %v606_v57 }
  0x61   : > { %637 = vst.msk [vmem:[#allocation2 + $0x4c] sm:$0xf] %vm265_vm0, %v629_v16 }
  0x62   : > { %640 = vst [vmem:[#allocation2 + $0x50] sm:$0x1] %v639_v61 }
  0x63   : > { %v3325_v21 = vld [vmem:[%s4126_s8 + $0x40] sm:$0xf]  ;;  %v3326_v23 = vld [vmem:[%s4126_s8 + $0x44] sm:$0xf]  ;;  %v673_v6 = vld [vmem:[#allocation2 + $0x50] sm:$0xe] }
  0x64   : > { %v652_v63 = vshrl.u32 %v3325_v21, 16  ;;  %v655_v0 = vshll.u32 %v3325_v21, 16  ;;  %v661_v1 = vshrl.u32 %v3326_v23, 16  ;;  %v664_v3 = vshll.u32 %v3326_v23, 16  ;;  %v677_v9 = vld [vmem:[#allocation2 + $0x58] sm:$0x3] }
  0x66   : > { %v654_v36 = vrot.slane %v652_v63, 6  ;;  %v657_v4 = vrot.slane %v655_v0, 7  ;;  %v663_v5 = vrot.slane %v661_v1, 6  ;;  %v666_v32 = vrot.slane %v664_v3, 7 }
  0x68   : > { %v658_v7 = vor.u32 %v657_v4, %v654_v36  ;;  %v667_v8 = vor.u32 %v666_v32, %v663_v5 }
  0x6a   : > { %v674_v10 = vsel %vm4134_vm3, %v658_v7, %v673_v6  ;;  %v659_v11 = vrot.slane %v658_v7, 4  ;;  %v669_v12 = vrot.slane %v667_v8, 4 }
  0x6b   : > { %675 = vst [vmem:[#allocation2 + $0x50] sm:$0xe] %v674_v10 }
  0x6c   : > { %v668_v13 = vsel %vm4141_vm5, %v659_v11, %v667_v8  ;;  %v678_v14 = vsel %vm4148_vm7, %v669_v12, %v677_v9 }
  0x6d   : > { %676 = vst.msk [vmem:[#allocation2 + $0x54] sm:$0xf] %vm265_vm0, %v668_v13 }
  0x6e   : > { %679 = vst [vmem:[#allocation2 + $0x58] sm:$0x3] %v678_v14 }
  0x6f PF: > { %v698_v15 = vld [vmem:[%s5092_s3] sm:$0xf]  ;;  %vm772_vm8 = vcmask 1043456   ;;  %v3771_v31 = vld [vmem:[#allocation2 + $0x8] sm:$0xff]  ;;  %v3372_v37 = vld [vmem:[%s5092_s3 + $0x4] sm:$0xf] }
  0x70   : > { %v774_v17 = vsel %vm772_vm8, %v698_v15, 0  ;;  %v3774_v18 = vld [vmem:[#allocation2 + $0x20] sm:$0xff]  ;;  %v3418_v42 = vld [vmem:[%s5092_s3 + $0x8] sm:$0xf]  ;;  %vm744_vm0 = vcmask 64512   ;;  %v1023_v19 = vsel %vm772_vm8, %v3372_v37, 0 }
  0x71   : > { %3851 = vmatpush.bf16.msra.mxu1 %v774_v17  ;;  %3852 = vmatpush.bf16.msra.mxu2 %v774_v17  ;;  %v1250_v20 = vsel %vm772_vm8, %v3418_v42, 0  ;;  %v3464_v22 = vld [vmem:[%s5092_s3 + $0xc] sm:$0xf]  ;;  %v3777_v24 = vld [vmem:[#allocation2 + $0x38] sm:$0xff]  ;;  %v3770_v26 = vld [vmem:[#allocation2] sm:$0xff]  ;;  %vm1202_vm3 = vcmask 1046528  }
  0x72   : > { %v1476_v25 = vsel %vm772_vm8, %v3464_v22, 0  ;;  %3853 = vmatpush.bf16.msra.mxu3 %v774_v17  ;;  %783 = vmatpush.bf16.msra.mxu0 %v774_v17  ;;  %v3772_v27 = vld [vmem:[#allocation2 + $0x10] sm:$0xff]  ;;  %v3775_v28 = vld [vmem:[#allocation2 + $0x28] sm:$0xff]  ;;  %v3602_v33 = vld [vmem:[%s5092_s3 + $0x18] sm:$0xf]  ;;  %vm830_vm9 = vcmask 130048  }
  0x73   : > { %v3778_v29 = vld [vmem:[#allocation2 + $0x40] sm:$0xff]  ;;  %v3556_v30 = vld [vmem:[%s5092_s3 + $0x14] sm:$0xf]  ;;  %v2226_v35 = vsel %vm772_vm8, %v3602_v33, 0  ;;  %v3510_v38 = vld [vmem:[%s5092_s3 + $0x10] sm:$0xf] }
  0x74   : > { %3364 = vmatmul.msk.bf16.vlgmr.msra.gmra.mxu1 %vm744_vm0, %v3771_v31  ;;  %3367 = vmatmul.msk.bf16.vlgmr.msra.gmra.mxu2 %vm744_vm0, %v3774_v18  ;;  %v2000_v34 = vsel %vm772_vm8, %v3556_v30, 0  ;;  %v3648_v39 = vld [vmem:[%s5092_s3 + $0x1c] sm:$0xf]  ;;  %v1773_v40 = vsel %vm772_vm8, %v3510_v38, 0  ;;  %v3467_v43 = vld [vmem:[#allocation2 + $0x8] sm:$0xe] }
  0x75   : > { %1032 = vmatpush.bf16.msrb.mxu1 %v1023_v19  ;;  %1259 = vmatpush.bf16.msrb.mxu2 %v1250_v20  ;;  %v2523_v41 = vsel %vm772_vm8, %v3648_v39, 0  ;;  %v3797_v44 = vld [vmem:[#allocation2 + $0x8] sm:$0xf0]  ;;  %v3798_v51 = vld [vmem:[#allocation2 + $0x10] sm:$0xff]  ;;  %v3773_v46 = vld [vmem:[#allocation2 + $0x18] sm:$0xff]  ;;  %vm2702_vm13 = vcmask 1044480  }
  0x76   : > { %1485 = vmatpush.bf16.msrb.mxu3 %v1476_v25  ;;  %3363 = vmatmul.msk.bf16.vlgmr.msra.gmra.mxu0 %vm744_vm0, %v3770_v26  ;;  %v3468_v45 = vor.u32 %v3797_v44, %v3467_v43  ;;  %v3776_v47 = vld [vmem:[#allocation2 + $0x30] sm:$0xff]  ;;  %v1430_v48 = vrot.slane %v3798_v51, 1  ;;  %v3779_v49 = vld [vmem:[#allocation2] sm:$0xff]  ;;  %v3513_v50 = vld [vmem:[#allocation2 + $0x8] sm:$0xe]  ;;  %vm1952_vm15 = vcmask 1045504  }
  0x77   : > { %3370 = vmatmul.msk.bf16.vlgmr.msra.gmra.mxu3 %vm744_vm0, %v3777_v24  ;;  %1782 = vmatpush.bf16.msrb.mxu0 %v1773_v40  ;;  %v3806_v55 = vld [vmem:[#allocation2 + $0x8] sm:$0xf0]  ;;  %v3807_v52 = vld [vmem:[#allocation2 + $0x10] sm:$0xff]  ;;  %v922_v58 = vshll.u32 %v3779_v49, 16  ;;  %v3694_v60 = vld [vmem:[%s5092_s3 + $0x20] sm:$0xf] }
  0x78   : > { %v1429_v62 = vrot.slane %v3468_v45, 1  ;;  %v3514_v53 = vor.u32 %v3806_v55, %v3513_v50  ;;  %v1665_v2 = vshrl.u32 %v3807_v52, 16  ;;  %v1668_v59 = vshll.u32 %v3807_v52, 16  ;;  %v3780_v16 = vld [vmem:[#allocation2 + $0x8] sm:$0xff]  ;;  %v3421_v0 = vld [vmem:[#allocation2] sm:$0xe] }
  0x79   : > { %2009 = vmatpush.bf16.msra.mxu1 %v2000_v34  ;;  %2235 = vmatpush.bf16.msra.mxu2 %v2226_v35  ;;  %v2750_v63 = vsel %vm772_vm8, %v3694_v60, 0  ;;  %v3788_v1 = vld [vmem:[#allocation2] sm:$0xf0]  ;;  %vm1655_vm5 = vsmask.f32 6400  ;;  %v920_v5 = vshrl.u32 %v3779_v49, 16 }
  0x7a   : > { %2532 = vmatpush.bf16.msra.mxu3 %v2523_v41  ;;  %v1431_v54 = vsel %vm1202_vm3, %v1429_v62, %v1430_v48  ;;  %v1657_v56 = vshrl.u32 %v3514_v53, 16  ;;  %v1660_v57 = vshll.u32 %v3514_v53, 16  ;;  %v1667_v23 = vrot.slane %v1665_v2, 1  ;;  %v3789_v7 = vld [vmem:[#allocation2 + $0x8] sm:$0xff]  ;;  %v3799_v10 = vld [vmem:[#allocation2 + $0x18] sm:$0xff]  ;;  %v3781_v20 = vld [vmem:[#allocation2 + $0x10] sm:$0xff] }
  0x7b   : > { %v1670_v3 = vrot.slane %v1668_v59, 2  ;;  %2759 = vmatpush.bf16.msra.mxu0 %v2750_v63  ;;  %v924_v32 = vrot.slane %v922_v58, 1  ;;  %v927_v6 = vshll.u32 %v3780_v16, 16  ;;  %v3422_v8 = vor.u32 %v3788_v1, %v3421_v0  ;;  %v3808_v18 = vld [vmem:[#allocation2 + $0x18] sm:$0xff]  ;;  %v3800_v30 = vld [vmem:[#allocation2 + $0x20] sm:$0xff]  ;;  %v3801_v52 = vld [vmem:[#allocation2 + $0x28] sm:$0xff] }
  0x7c   : > { %v1659_v61 = vrot.slane %v1657_v56, 1  ;;  %v1662_v21 = vrot.slane %v1660_v57, 2  ;;  %v1204_v14 = vrot.slane %v3789_v7, 1  ;;  %vm918_vm7 = vsmask.f32 7424  ;;  %v3809_v41 = vld [vmem:[#allocation2 + $0x20] sm:$0xff] }
  0x7d   : > { %v1671_v4 = vor.u32 %v1670_v3, %v1667_v23  ;;  %v925_v11 = vor.u32 %v924_v32, %v920_v5  ;;  %v929_v12 = vrot.slane %v927_v6, 1  ;;  %v1203_v13 = vrot.slane %v3422_v8, 1  ;;  %v3782_v45 = vld [vmem:[#allocation2 + $0x18] sm:$0xff]  ;;  %v3810_v59 = vld [vmem:[#allocation2 + $0x28] sm:$0xff]  ;;  %v3802_v5 = vld [vmem:[#allocation2 + $0x30] sm:$0xff]  ;;  %s3107_s25 = scalar_lea.sflag [#allocation5], %s244_s30 }
  0x7e   : > { %v1663_v36 = vor.u32 %v1662_v21, %v1659_v61  ;;  %v1432_v15 = vrot.slane %v3799_v10, 1  ;;  %v1674_v42 = vshrl.u32 %v3808_v18, 16  ;;  %v1677_v19 = vshll.u32 %v3808_v18, 16  ;;  %v3791_v50 = vld [vmem:[#allocation2 + $0x18] sm:$0xff]  ;;  %v3783_v21 = vld [vmem:[#allocation2 + $0x20] sm:$0xff]  ;;  %s3930_s10 = scalar_lea.hbm %s5094_s5, 8 }
  0x7f   : > { %v930_v31 = vsel %vm918_vm7, %v925_v11, %v929_v12  ;;  %v1205_v17 = vsel %vm1202_vm3, %v1203_v13, %v1204_v14  ;;  %v931_v26 = vshrl.u32 %v3780_v16, 16  ;;  %v1434_v38 = vrot.slane %v3800_v30, 1  ;;  %v3811_v11 = vld [vmem:[#allocation2 + $0x30] sm:$0xff]  ;;  %v3812_v30 = vld [vmem:[#allocation2 + $0x38] sm:$0xff] }
  0x80   : > { %v1672_v9 = vsel %vm1655_vm5, %v1663_v36, %v1671_v4  ;;  %v1433_v37 = vsel %vm1202_vm3, %v1430_v48, %v1432_v15  ;;  %v1676_v22 = vrot.slane %v1674_v42, 1  ;;  %v1679_v24 = vrot.slane %v1677_v19, 2  ;;  %v3792_v36 = vld [vmem:[#allocation2 + $0x20] sm:$0xff]  ;;  %v3793_v19 = vld [vmem:[#allocation2 + $0x28] sm:$0xff] }
  0x81   : > { %v933_v33 = vor.u32 %v931_v26, %v929_v12  ;;  %v1435_v43 = vsel %vm1202_vm3, %v1432_v15, %v1434_v38  ;;  %v1683_v44 = vshrl.u32 %v3809_v41, 16  ;;  %v1686_v51 = vshll.u32 %v3809_v41, 16  ;;  %v3784_v15 = vld [vmem:[#allocation2 + $0x28] sm:$0xff] }
  0x82   : > { %v1680_v25 = vor.u32 %v1679_v24, %v1676_v22  ;;  %v939_v48 = vshrl.u32 %v3781_v20, 16  ;;  %v943_v49 = vshll.u32 %v3782_v45, 16  ;;  %v1208_v56 = vrot.slane %v3791_v50, 1  ;;  %v3803_v22 = vld [vmem:[#allocation2 + $0x38] sm:$0xff] }
  0x83   : > { %v1436_v57 = vrot.slane %v3801_v52, 1  ;;  %v1692_v16 = vshrl.u32 %v3810_v59, 16  ;;  %v1695_v61 = vshll.u32 %v3810_v59, 16  ;;  %v947_v1 = vshrl.u32 %v3782_v45, 16 }
  0x84   : > { %3365 = vmatmul.msk.bf16.gmra.mxu1 %vm744_vm0, %v3772_v27  ;;  %3368 = vmatmul.msk.bf16.gmra.mxu2 %vm744_vm0, %v3775_v28  ;;  %v935_v27 = vshll.u32 %v3781_v20, 16  ;;  %v3790_v28 = vld [vmem:[#allocation2 + $0x10] sm:$0xff]  ;;  %v951_v3 = vshll.u32 %v3783_v21, 16  ;;  %v1210_v7 = vrot.slane %v3792_v36, 1  ;;  %v1438_v8 = vrot.slane %v3802_v5, 1  ;;  %v4383_v36 = vld [vmem:[#allocation2 + $0x48] sm:$0xff] }
  0x85   : > { %v1206_v35 = vrot.slane %v3790_v28, 1  ;;  %v1437_v60 = vsel %vm1202_vm3, %v1434_v38, %v1436_v57  ;;  %v1694_v23 = vrot.slane %v1692_v16, 1  ;;  %v1697_v63 = vrot.slane %v1695_v61, 2  ;;  %v3785_v38 = vld [vmem:[#allocation2 + $0x30] sm:$0xff] }
  0x86   : > { %3547 = vmatmul.msk.bf16.vlgmr.msrb.gmra.mxu0 %vm744_vm0, %v1672_v9  ;;  %v937_v34 = vrot.slane %v935_v27, 1  ;;  %v953_v6 = vrot.slane %v951_v3, 1  ;;  %v1211_v10 = vsel %vm1202_vm3, %v1208_v56, %v1210_v7  ;;  %v1439_v12 = vsel %vm1202_vm3, %v1436_v57, %v1438_v8 }
  0x87   : > { %3371 = vmatmul.msk.bf16.gmra.mxu3 %vm744_vm0, %v3778_v29  ;;  %v1681_v29 = vsel %vm1655_vm5, %v1671_v4, %v1680_v25  ;;  %v1207_v40 = vsel %vm1202_vm3, %v1204_v14, %v1206_v35  ;;  %v1209_v58 = vsel %vm1202_vm3, %v1206_v35, %v1208_v56  ;;  %v1698_v0 = vor.u32 %v1697_v63, %v1694_v23 }
  0x88   : > { %v938_v39 = vsel %vm918_vm7, %v933_v33, %v937_v34  ;;  %v941_v53 = vor.u32 %v939_v48, %v937_v34  ;;  %v1701_v13 = vshrl.u32 %v3811_v11, 16  ;;  %v1704_v14 = vshll.u32 %v3811_v11, 16 }
  0x89   : > { %v959_v42 = vshll.u32 %v3784_v15, 16  ;;  %v1212_v26 = vrot.slane %v3793_v19, 1  ;;  %v1440_v27 = vrot.slane %v3803_v22, 1  ;;  %v1710_v34 = vshrl.u32 %v3812_v30, 16 }
  0x8a   : > { %v1713_v35 = vshll.u32 %v3812_v30, 16  ;;  %v971_v23 = vshrl.u32 %v3785_v38, 16  ;;  %vm2405_vm11 = vsmask.f32 5376  ;;  %vm2864_vm2 = vcmask 125952  }
  0x8b   : > { %v1441_v33 = vsel %vm1202_vm3, %v1438_v8, %v1440_v27  ;;  %vm3092_vm4 = vcmask 1040384   ;;  %vm3094_vm6 = vcmask 123904  }
  0x94   : > { %3366 = vmatmul.msk.bf16.gmra.mxu1 %vm744_vm0, %v3773_v46  ;;  %3369 = vmatmul.msk.bf16.gmra.mxu2 %vm744_vm0, %v3776_v47  ;;  %v1685_v46 = vrot.slane %v1683_v44, 1  ;;  %v1688_v47 = vrot.slane %v1686_v51, 2  ;;  %v967_v44 = vshll.u32 %v3785_v38, 16  ;;  %v3794_v51 = vld [vmem:[#allocation2 + $0x30] sm:$0xff]  ;;  %v867_v38 = vld [vmem:[#allocation2 + $0x48] sm:$0x1] }
  0x95   : > { %v1214_v48 = vrot.slane %v3794_v51, 1 }
  0x96   : > { %3548 = vmatmul.msk.bf16.gmra.mxu0 %vm744_vm0, %v1681_v29  ;;  %v1689_v62 = vor.u32 %v1688_v47, %v1685_v46  ;;  %v1213_v29 = vsel %vm1202_vm3, %v1210_v7, %v1212_v26  ;;  %v3804_v46 = vld [vmem:[#allocation2 + $0x40] sm:$0xff]  ;;  %v1444_v7 = vrot.slane %v4383_v36, 1 }
  0x97   : > { %3501 = vmatmul.msk.bf16.vlgmr.msrb.gmra.mxu3 %vm744_vm0, %v1431_v54  ;;  %v945_v54 = vrot.slane %v943_v49, 1  ;;  %v1442_v49 = vrot.slane %v3804_v46, 1  ;;  %v1215_v52 = vsel %vm1202_vm3, %v1212_v26, %v1214_v48  ;;  %v907_v46 = vunpack.c.l.b16 %v867_v38 }
  0x98   : > { %v1690_v55 = vsel %vm1655_vm5, %v1680_v25, %v1689_v62  ;;  %v1699_v4 = vsel %vm1655_vm5, %v1689_v62, %v1698_v0  ;;  %v961_v25 = vrot.slane %v959_v42, 1  ;;  %v969_v62 = vrot.slane %v967_v44, 1 }
  0x99   : > { %v946_v2 = vsel %vm918_vm7, %v941_v53, %v945_v54  ;;  %v949_v32 = vor.u32 %v947_v1, %v945_v54  ;;  %v3813_v53 = vld [vmem:[#allocation2 + $0x40] sm:$0xff]  ;;  %v1443_v54 = vsel %vm1202_vm3, %v1440_v27, %v1442_v49 }
  0x9a   : > { %v1719_v56 = vshrl.u32 %v3813_v53, 16  ;;  %v1722_v57 = vshll.u32 %v3813_v53, 16  ;;  %v4401_v27 = vld [vmem:[#allocation2 + $0x40] sm:$0xff] }
  0x9b   : > { %v954_v9 = vsel %vm918_vm7, %v949_v32, %v953_v6 }
  0x9c   : > { %v1724_v59 = vrot.slane %v1722_v57, 2 }
  0xa4   : > { %3409 = vmatmul.msk.bf16.vlgmr.msrb.gmra.mxu1 %vm744_vm0, %v930_v31  ;;  %3455 = vmatmul.msk.bf16.vlgmr.msrb.gmra.mxu2 %vm744_vm0, %v1205_v17  ;;  %v1703_v31 = vrot.slane %v1701_v13, 1  ;;  %v1706_v17 = vrot.slane %v1704_v14, 2  ;;  %v3814_v13 = vld [vmem:[#allocation2 + $0x48] sm:$0xff]  ;;  %v1445_v14 = vsel %vm1202_vm3, %v1442_v49, %v1444_v7 }
  0xa5   : > { %v1151_v49 = vld [vmem:[#allocation2 + $0x48] sm:$0x1] }
  0xa6   : > { %3549 = vmatmul.msk.bf16.gmra.mxu0 %vm744_vm0, %v1690_v55  ;;  %v1707_v18 = vor.u32 %v1706_v17, %v1703_v31  ;;  %v1378_v31 = vld [vmem:[#allocation2 + $0x50] sm:$0x1]  ;;  %v1731_v17 = vshll.u32 %v3814_v13, 16 }
  0xa7   : > { %3502 = vmatmul.msk.bf16.gmra.mxu3 %vm744_vm0, %v1433_v37  ;;  %v955_v37 = vshrl.u32 %v3783_v21, 16 }
  0xa8   : > { %v1708_v20 = vsel %vm1655_vm5, %v1698_v0, %v1707_v18  ;;  %v3795_v0 = vld [vmem:[#allocation2 + $0x38] sm:$0xff]  ;;  %v1733_v42 = vrot.slane %v1731_v17, 2 }
  0xa9   : > { %v957_v24 = vor.u32 %v955_v37, %v953_v6  ;;  %v1216_v32 = vrot.slane %v3795_v0, 1 }
  0xab   : > { %v962_v28 = vsel %vm918_vm7, %v957_v24, %v961_v25  ;;  %v1217_v11 = vsel %vm1202_vm3, %v1214_v48, %v1216_v32  ;;  %v3833_v48 = vld [vmem:[#allocation2 + $0x10] sm:$0xf0] }
  0xb4   : > { %3410 = vmatmul.msk.bf16.gmra.mxu1 %vm744_vm0, %v938_v39  ;;  %3456 = vmatmul.msk.bf16.gmra.mxu2 %vm744_vm0, %v1207_v40  ;;  %v1712_v39 = vrot.slane %v1710_v34, 1  ;;  %v1715_v40 = vrot.slane %v1713_v35, 2  ;;  %v1218_v35 = vrot.slane %v4401_v27, 1  ;;  %v3824_v27 = vld [vmem:[#allocation2 + $0x10] sm:$0xf0] }
  0xb6   : > { %3550 = vmatmul.msk.bf16.gmra.mxu0 %vm744_vm0, %v1699_v4  ;;  %v1716_v41 = vor.u32 %v1715_v40, %v1712_v39  ;;  %v973_v4 = vor.u32 %v971_v23, %v969_v62 }
  0xb7   : > { %3503 = vmatmul.msk.bf16.gmra.mxu3 %vm744_vm0, %v1435_v43  ;;  %v963_v43 = vshrl.u32 %v3784_v15, 16  ;;  %v1728_v15 = vshrl.u32 %v3814_v13, 16 }
  0xb8   : > { %v1717_v45 = vsel %vm1655_vm5, %v1707_v18, %v1716_v41  ;;  %v4396_v18 = vld [vmem:[#allocation2 + $0x40] sm:$0xff] }
  0xb9   : > { %v965_v47 = vor.u32 %v963_v43, %v961_v25  ;;  %v1730_v37 = vrot.slane %v1728_v15, 1  ;;  %v983_v26 = vshll.u32 %v4396_v18, 16  ;;  %v3651_v43 = vld [vmem:[#allocation2 + $0x10] sm:$0xc] }
  0xba   : > { %v3652_v53 = vor.u32 %v3833_v48, %v3651_v43 }
  0xbb   : > { %v970_v55 = vsel %vm918_vm7, %v965_v47, %v969_v62  ;;  %v1734_v22 = vor.u32 %v1733_v42, %v1730_v37  ;;  %v985_v34 = vrot.slane %v983_v26, 1  ;;  %v3815_v26 = vld [vmem:[#allocation2 + $0x8] sm:$0xf0] }
  0xbc   : > { %v2410_v23 = vshll.u32 %v3652_v53, 16 }
  0xc4   : > { %3411 = vmatmul.msk.bf16.gmra.mxu1 %vm744_vm0, %v946_v2  ;;  %3457 = vmatmul.msk.bf16.gmra.mxu2 %vm744_vm0, %v1209_v58  ;;  %v3786_v2 = vld [vmem:[#allocation2 + $0x38] sm:$0xff]  ;;  %v1721_v58 = vrot.slane %v1719_v56, 1  ;;  %v1191_v56 = vunpack.c.l.b16 %v1151_v49 }
  0xc5   : > { %v975_v63 = vshll.u32 %v3786_v2, 16  ;;  %v979_v25 = vshrl.u32 %v3786_v2, 16 }
  0xc6   : > { %3551 = vmatmul.msk.bf16.gmra.mxu0 %vm744_vm0, %v1708_v20  ;;  %v1725_v16 = vor.u32 %v1724_v59, %v1721_v58  ;;  %v1418_v20 = vunpack.c.l.b16 %v1378_v31  ;;  %v1201_v36 = vpack.c.b16 %v1191_v56, %v1191_v56 }
  0xc7   : > { %3504 = vmatmul.msk.bf16.gmra.mxu3 %vm744_vm0, %v1437_v60  ;;  %v977_v5 = vrot.slane %v975_v63, 1 }
  0xc8   : > { %v1726_v3 = vsel %vm1655_vm5, %v1716_v41, %v1725_v16  ;;  %v1428_v30 = vpack.c.b16 %v1418_v20, %v1418_v20  ;;  %v1604_v41 = vld [vmem:[#allocation2 + $0x50] sm:$0x3] }
  0xc9   : > { %v1644_v62 = vunpack.c.l.b16 %v1604_v41 }
  0xca   : > { %v1446_v40 = vrot.slane %v1428_v30, 1  ;;  %v3605_v30 = vld [vmem:[#allocation2 + $0x10] sm:$0xc] }
  0xd4   : > { %3412 = vmatmul.msk.bf16.gmra.mxu1 %vm744_vm0, %v954_v9  ;;  %3458 = vmatmul.msk.bf16.gmra.mxu2 %vm744_vm0, %v1211_v10  ;;  %v978_v10 = vsel %vm918_vm7, %v973_v4, %v977_v5 }
  0xd6   : > { %3552 = vmatmul.msk.bf16.gmra.mxu0 %vm744_vm0, %v1717_v45  ;;  %v1219_v45 = vsel %vm1202_vm3, %v1216_v32, %v1218_v35 }
  0xd7   : > { %3505 = vmatmul.msk.bf16.gmra.mxu3 %vm744_vm0, %v1439_v12 }
  0xe4   : > { %3413 = vmatmul.msk.bf16.gmra.mxu1 %vm744_vm0, %v962_v28  ;;  %3459 = vmatmul.msk.bf16.gmra.mxu2 %vm744_vm0, %v1213_v29  ;;  %v1735_v29 = vsel %vm1655_vm5, %v1725_v16, %v1734_v22 }
  0xe6   : > { %3553 = vmatmul.msk.bf16.gmra.mxu0 %vm744_vm0, %v1726_v3 }
  0xe7   : > { %3506 = vmatmul.msk.bf16.gmra.mxu3 %vm744_vm0, %v1441_v33  ;;  %v981_v33 = vor.u32 %v979_v25, %v977_v5  ;;  %v3559_v25 = vld [vmem:[#allocation2 + $0x8] sm:$0xc] }
  0xe9   : > { %v986_v51 = vsel %vm918_vm7, %v981_v33, %v985_v34  ;;  %v4442_v33 = vld [vmem:[#allocation2 + $0x18] sm:$0xff] }
  0xf1   : > { %v790_v50 = vpop.f32.mrf.mxu1 }
  0xf2   : > { %833 = vst.msk [vmem:[#allocation3 + $0x10] sm:$0xff] %vm830_vm9, %v790_v50  ;;  %v3834_v50 = vld [vmem:[#allocation2 + $0x18] sm:$0xff] }
  0xf3   : > { %v785_v61 = vpop.f32.mrf.mxu0  ;;  %v2415_v58 = vshrl.u32 %v3834_v50, 16  ;;  %v2418_v59 = vshll.u32 %v3834_v50, 16 }
  0xf4   : > { %3414 = vmatmul.msk.bf16.gmra.mxu1 %vm744_vm0, %v970_v55  ;;  %3460 = vmatmul.msk.bf16.gmra.mxu2 %vm744_vm0, %v1215_v52  ;;  %831 = vst.msk [vmem:[#allocation3] sm:$0xff] %vm830_vm9, %v785_v61  ;;  %v1447_v55 = vsel %vm1202_vm3, %v1444_v7, %v1446_v40  ;;  %v1654_v52 = vpack.c.b16 %v1644_v62, %v1644_v62 }
  0xf5   : > { %v2417_v32 = vrot.slane %v2415_v58, 2  ;;  %v3606_v62 = vor.u32 %v3824_v27, %v3605_v30 }
  0xf6   : > { %3554 = vmatmul.msk.bf16.gmra.mxu0 %vm744_vm0, %v1735_v29  ;;  %v1737_v57 = vshrl.u32 %v1654_v52, 16  ;;  %v1740_v2 = vshll.u32 %v1654_v52, 16  ;;  %v3842_v29 = vld [vmem:[#allocation2 + $0x10] sm:$0xf0] }
  0xf7   : > { %3507 = vmatmul.msk.bf16.gmra.mxu3 %vm744_vm0, %v1443_v54  ;;  %v805_v60 = vpop.f32.mrf.mxu2  ;;  %v917_v54 = vpack.c.b16 %v907_v46, %v907_v46  ;;  %v3560_v46 = vor.u32 %v3815_v26, %v3559_v25 }
  0xf8   : > { %839 = vst.msk [vmem:[#allocation3 + $0x40] sm:$0xff] %vm830_vm9, %v805_v60  ;;  %v1739_v16 = vrot.slane %v1737_v57, 1  ;;  %v1742_v61 = vrot.slane %v1740_v2, 2  ;;  %v2179_v2 = vrot.slane %v3606_v62, 2 }
  0xf9   : > { %v792_v21 = vpop.f32.mrf.mxu1  ;;  %v991_v3 = vshll.u32 %v917_v54, 16  ;;  %v1953_v56 = vrot.slane %v3560_v46, 2 }
  0xfa   : > { %v820_v1 = vpop.f32.mrf.mxu3  ;;  %834 = vst.msk [vmem:[#allocation3 + $0x18] sm:$0xff] %vm830_vm9, %v792_v21  ;;  %v2407_v21 = vshrl.u32 %v3652_v53, 16  ;;  %v1743_v5 = vor.u32 %v1742_v61, %v1739_v16 }
  0xfb   : > { %845 = vst.msk [vmem:[#allocation3 + $0x70] sm:$0xff] %vm830_vm9, %v820_v1  ;;  %v787_v8 = vpop.f32.mrf.mxu0  ;;  %v987_v1 = vshrl.u32 %v4396_v18, 16 }
  0xfc   : > { %832 = vst.msk [vmem:[#allocation3 + $0x8] sm:$0xff] %vm830_vm9, %v787_v8  ;;  %v2409_v7 = vrot.slane %v2407_v21, 2  ;;  %v2412_v8 = vrot.slane %v2410_v23, 3  ;;  %v1081_v21 = vld [vmem:[#allocation3 + $0x10] sm:$0xff] }
  0xfe   : > { %v2413_v15 = vor.u32 %v2412_v8, %v2409_v7 }
  0xff   : > { %v807_v6 = vpop.f32.mrf.mxu2 }
 0x100   : > { %840 = vst.msk [vmem:[#allocation3 + $0x48] sm:$0xff] %vm830_vm9, %v807_v6  ;;  %v1744_v6 = vsel %vm1655_vm5, %v1734_v22, %v1743_v5 }
 0x101   : > { %v795_v9 = vpop.f32.mrf.mxu1 }
 0x102   : > { %v822_v12 = vpop.f32.mrf.mxu3  ;;  %835 = vst.msk [vmem:[#allocation3 + $0x20] sm:$0xff] %vm830_vm9, %v795_v9  ;;  %v2420_v9 = vrot.slane %v2418_v59, 3 }
 0x103   : > { %846 = vst.msk [vmem:[#allocation3 + $0x78] sm:$0xff] %vm830_vm9, %v822_v12  ;;  %v4420_v63 = vpop.f32.mrf.mxu0  ;;  %v1220_v12 = vrot.slane %v1201_v36, 1  ;;  %v1080_v38 = vld [vmem:[#allocation3 + $0x8] sm:$0xff] }
 0x104   : > { %3415 = vmatmul.msk.bf16.gmra.mxu1 %vm744_vm0, %v978_v10  ;;  %3461 = vmatmul.msk.bf16.gmra.mxu2 %vm744_vm0, %v1217_v11  ;;  %v989_v10 = vor.u32 %v987_v1, %v985_v34  ;;  %v993_v11 = vrot.slane %v991_v3, 1  ;;  %v2421_v31 = vor.u32 %v2420_v9, %v2417_v32  ;;  %v3836_v32 = vld [vmem:[#allocation2 + $0x28] sm:$0xff]  ;;  %v4472_v9 = vld [vmem:[#allocation2 + $0x20] sm:$0xff] }
 0x105   : > { %v1221_v42 = vsel %vm1202_vm3, %v1218_v35, %v1220_v12  ;;  %v2436_v12 = vshll.u32 %v3836_v32, 16 }
 0x106   : > { %3555 = vmatmul.msk.bf16.gmra.mxu0 %vm744_vm0, %v1744_v6  ;;  %v994_v37 = vsel %vm918_vm7, %v989_v10, %v993_v11  ;;  %v2422_v22 = vsel %vm2405_vm11, %v2413_v15, %v2421_v31  ;;  %v2433_v11 = vshrl.u32 %v3836_v32, 16 }
 0x107   : > { %3508 = vmatmul.msk.bf16.gmra.mxu3 %vm744_vm0, %v1445_v14  ;;  %v810_v19 = vpop.f32.mrf.mxu2  ;;  %v1079_v14 = vld [vmem:[#allocation3] sm:$0xff]  ;;  %v2438_v25 = vrot.slane %v2436_v12, 3 }
 0x108   : > { %841 = vst.msk [vmem:[#allocation3 + $0x50] sm:$0xff] %vm830_vm9, %v810_v19 }
 0x109   : > { %v797_v24 = vpop.f32.mrf.mxu1 }
 0x10a   : > { %v825_v28 = vpop.f32.mrf.mxu3  ;;  %836 = vst.msk [vmem:[#allocation3 + $0x28] sm:$0xff] %vm830_vm9, %v797_v24  ;;  %v3835_v24 = vld [vmem:[#allocation2 + $0x20] sm:$0xff] }
 0x10b   : > { %847 = vst.msk [vmem:[#allocation3 + $0x80] sm:$0xff] %vm830_vm9, %v825_v28  ;;  %v4429_v17 = vpop.f32.mrf.mxu0  ;;  %v3697_v28 = vld [vmem:[#allocation2 + $0x10] sm:$0x8]  ;;  %v2427_v40 = vshll.u32 %v3835_v24, 16 }
 0x10c   : > { %v3698_v34 = vor.u32 %v3842_v29, %v3697_v28 }
 0x10d   : > { %v2429_v53 = vrot.slane %v2427_v40, 3 }
 0x10e   : > { %v2703_v43 = vrot.slane %v3698_v34, 3 }
 0x10f   : > { %v812_v39 = vpop.f32.mrf.mxu2 }
 0x110   : > { %842 = vst.msk [vmem:[#allocation3 + $0x58] sm:$0xff] %vm830_vm9, %v812_v39  ;;  %v2424_v39 = vshrl.u32 %v3835_v24, 16  ;;  %v2435_v24 = vrot.slane %v2433_v11, 2 }
 0x111   : > { %v800_v44 = vpop.f32.mrf.mxu1 }
 0x112   : > { %v827_v47 = vpop.f32.mrf.mxu3  ;;  %837 = vst.msk [vmem:[#allocation3 + $0x30] sm:$0xff] %vm830_vm9, %v800_v44  ;;  %v2704_v44 = vrot.slane %v4442_v33, 3  ;;  %v2426_v52 = vrot.slane %v2424_v39, 2 }
 0x113   : > { %848 = vst.msk [vmem:[#allocation3 + $0x88] sm:$0xff] %vm830_vm9, %v827_v47  ;;  %v4444_v41 = vpop.f32.mrf.mxu0  ;;  %v4449_v47 = vld [vmem:[#allocation2 + $0x18] sm:$0xff] }
 0x114   : > { %3416 = vmatmul.msk.bf16.gmra.mxu1 %vm744_vm0, %v986_v51  ;;  %3462 = vmatmul.msk.bf16.gmra.mxu2 %vm744_vm0, %v1219_v45  ;;  %v4447_v45 = vld [vmem:[#allocation2 + $0x10] sm:$0xff]  ;;  %v2705_v50 = vsel %vm2702_vm13, %v2703_v43, %v2704_v44  ;;  %v2180_v58 = vrot.slane %v4449_v47, 2  ;;  %v1083_v43 = vld [vmem:[#allocation3 + $0x20] sm:$0xff] }
 0x115   : > { %v1954_v57 = vrot.slane %v4447_v45, 2  ;;  %v3837_v47 = vld [vmem:[#allocation2 + $0x30] sm:$0xff] }
 0x116   : > { %3731 = vmatmul.msk.bf16.vlgmr.msra.gmra.mxu0 %vm744_vm0, %v2705_v50 }
 0x117   : > { %3509 = vmatmul.msk.bf16.gmra.mxu3 %vm744_vm0, %v1447_v55  ;;  %v815_v60 = vpop.f32.mrf.mxu2  ;;  %v1955_v23 = vsel %vm1952_vm15, %v1953_v56, %v1954_v57  ;;  %v2445_v56 = vshll.u32 %v3837_v47, 16 }
 0x118   : > { %843 = vst.msk [vmem:[#allocation3 + $0x60] sm:$0xff] %vm830_vm9, %v815_v60  ;;  %v2430_v60 = vor.u32 %v2429_v53, %v2426_v52 }
 0x119   : > { %v802_v0 = vpop.f32.mrf.mxu1 }
 0x11a   : > { %v4423_v4 = vpop.f32.mrf.mxu3  ;;  %838 = vst.msk [vmem:[#allocation3 + $0x38] sm:$0xff] %vm830_vm9, %v802_v0  ;;  %v2181_v0 = vsel %vm1952_vm15, %v2179_v2, %v2180_v58  ;;  %v2431_v5 = vsel %vm2405_vm11, %v2421_v31, %v2430_v60  ;;  %v1082_v31 = vld [vmem:[#allocation3 + $0x18] sm:$0xff] }
 0x11b   : > { %v4459_v16 = vpop.f32.mrf.mxu0 }
 0x11f   : > { %v817_v13 = vpop.f32.mrf.mxu2 }
 0x120   : > { %844 = vst.msk [vmem:[#allocation3 + $0x68] sm:$0xff] %vm830_vm9, %v817_v13 }
 0x121   : > { %v1034_v18 = vpop.f32.mrf.mxu1 }
 0x122   : > { %v4435_v19 = vpop.f32.mrf.mxu3  ;;  %v1097_v20 = vadd.f32 %v1079_v14, %v1034_v18  ;;  %v2706_v14 = vrot.slane %v4472_v9, 3  ;;  %v4478_v18 = vld [vmem:[#allocation2 + $0x18] sm:$0xff] }
 0x123   : > { %v4475_v13 = vpop.f32.mrf.mxu0  ;;  %v1956_v29 = vrot.slane %v4478_v18, 2 }
 0x124   : > { %1115 = vst.msk [vmem:[#allocation3] sm:$0xff] %vm830_vm9, %v1097_v20  ;;  %3417 = vmatmul.msk.bf16.gmra.mxu1 %vm744_vm0, %v994_v37  ;;  %3463 = vmatmul.msk.bf16.gmra.mxu2 %vm744_vm0, %v1221_v42  ;;  %v2707_v20 = vsel %vm2702_vm13, %v2704_v44, %v2706_v14 }
 0x125   : > { %v1957_v44 = vsel %vm1952_vm15, %v1954_v57, %v1956_v29 }
 0x126   : > { %3732 = vmatmul.msk.bf16.gmra.mxu0 %vm744_vm0, %v2707_v20 }
 0x127   : > { %3685 = vmatmul.msk.bf16.vlgmr.msra.gmra.mxu3 %vm744_vm0, %v2422_v22  ;;  %v1261_v35 = vpop.f32.mrf.mxu2 }
 0x129   : > { %v1036_v51 = vpop.f32.mrf.mxu1 }
 0x12a   : > { %v4451_v48 = vpop.f32.mrf.mxu3  ;;  %v1098_v49 = vadd.f32 %v1080_v38, %v1036_v51 }
 0x12b   : > { %v1306_v55 = vld [vmem:[#allocation3] sm:$0xff]  ;;  %v4495_v39 = vpop.f32.mrf.mxu0 }
 0x12c   : > { %v1324_v54 = vadd.f32 %v1306_v55, %v1261_v35  ;;  %1116 = vst.msk [vmem:[#allocation3 + $0x8] sm:$0xff] %vm830_vm9, %v1098_v49  ;;  %v4491_v35 = vor.u32 %v2438_v25, %v2435_v24  ;;  %v4514_v55 = vld [vmem:[#allocation2 + $0x28] sm:$0xff]  ;;  %v3838_v25 = vld [vmem:[#allocation2 + $0x38] sm:$0xff] }
 0x12e   : > { %1342 = vst.msk [vmem:[#allocation3] sm:$0xff] %vm830_vm9, %v1324_v54  ;;  %v2442_v54 = vshrl.u32 %v3837_v47, 16 }
 0x12f   : > { %v1263_v59 = vpop.f32.mrf.mxu2 }
 0x131   : > { %v1039_v61 = vpop.f32.mrf.mxu1 }
 0x132   : > { %v4463_v1 = vpop.f32.mrf.mxu3  ;;  %v1099_v3 = vadd.f32 %v1081_v21, %v1039_v61  ;;  %v4523_v61 = vld [vmem:[#allocation2 + $0x28] sm:$0xff] }
 0x133   : > { %v1307_v36 = vld [vmem:[#allocation3 + $0x8] sm:$0xff]  ;;  %v4518_v2 = vpop.f32.mrf.mxu0 }
 0x134   : > { %v1325_v6 = vadd.f32 %v1307_v36, %v1263_v59  ;;  %1117 = vst.msk [vmem:[#allocation3 + $0x10] sm:$0xff] %vm830_vm9, %v1099_v3  ;;  %3593 = vmatmul.msk.bf16.vlgmr.msra.gmra.mxu1 %vm744_vm0, %v1955_v23  ;;  %3639 = vmatmul.msk.bf16.vlgmr.msra.gmra.mxu2 %vm744_vm0, %v2181_v0  ;;  %v2444_v36 = vrot.slane %v2442_v54, 2 }
 0x135   : > { %v1532_v7 = vld [vmem:[#allocation3] sm:$0xff] }
 0x136   : > { %v1550_v8 = vadd.f32 %v1532_v7, %v4423_v4  ;;  %1343 = vst.msk [vmem:[#allocation3 + $0x8] sm:$0xff] %vm830_vm9, %v1325_v6  ;;  %v4480_v4 = vld [vmem:[#allocation2 + $0x20] sm:$0xff]  ;;  %v2184_v7 = vrot.slane %v4523_v61, 2 }
 0x137   : > { %3686 = vmatmul.msk.bf16.gmra.mxu3 %vm744_vm0, %v2431_v5  ;;  %v1266_v10 = vpop.f32.mrf.mxu2  ;;  %v2182_v30 = vrot.slane %v4480_v4, 2 }
 0x138   : > { %1568 = vst.msk [vmem:[#allocation3] sm:$0xff] %vm830_vm9, %v1550_v8 }
 0x139   : > { %v1041_v15 = vpop.f32.mrf.mxu1 }
 0x13a   : > { %v4482_v37 = vpop.f32.mrf.mxu3  ;;  %v1100_v42 = vadd.f32 %v1082_v31, %v1041_v15  ;;  %v1085_v31 = vld [vmem:[#allocation3 + $0x30] sm:$0xff] }
 0x13b   : > { %v1308_v22 = vld [vmem:[#allocation3 + $0x10] sm:$0xff] }
 0x13c   : > { %v1326_v26 = vadd.f32 %v1308_v22, %v1266_v10  ;;  %1118 = vst.msk [vmem:[#allocation3 + $0x18] sm:$0xff] %vm830_vm9, %v1100_v42  ;;  %v2185_v42 = vsel %vm1952_vm15, %v2182_v30, %v2184_v7 }
 0x13d   : > { %v1533_v28 = vld [vmem:[#allocation3 + $0x8] sm:$0xff] }
 0x13e   : > { %v1551_v27 = vadd.f32 %v1533_v28, %v4435_v19  ;;  %1344 = vst.msk [vmem:[#allocation3 + $0x10] sm:$0xff] %vm830_vm9, %v1326_v26  ;;  %v2183_v19 = vsel %vm1952_vm15, %v2180_v58, %v2182_v30  ;;  %v2708_v58 = vrot.slane %v4514_v55, 3  ;;  %v4563_v28 = vld [vmem:[#allocation2 + $0x30] sm:$0xff] }
 0x13f   : > { %v1829_v33 = vld [vmem:[#allocation3] sm:$0xff]  ;;  %v1268_v34 = vpop.f32.mrf.mxu2 }
 0x140   : > { %1569 = vst.msk [vmem:[#allocation3 + $0x8] sm:$0xff] %vm830_vm9, %v1551_v27  ;;  %v1847_v38 = vadd.f32 %v1829_v33, %v4420_v63  ;;  %v2440_v63 = vsel %vm2405_vm11, %v2430_v60, %v4491_v35  ;;  %v4521_v60 = vld [vmem:[#allocation2 + $0x20] sm:$0xff]  ;;  %v2709_v0 = vsel %vm2702_vm13, %v2706_v14, %v2708_v58  ;;  %v4539_v14 = vpop.f32.mrf.mxu0  ;;  %v2451_v27 = vshrl.u32 %v3838_v25, 16 }
 0x141   : > { %v1044_v40 = vpop.f32.mrf.mxu1  ;;  %3733 = vmatmul.msk.bf16.gmra.mxu0 %vm744_vm0, %v2709_v0  ;;  %v1958_v6 = vrot.slane %v4521_v60, 2  ;;  %v2454_v33 = vshll.u32 %v3838_v25, 16 }
 0x142   : > { %v4503_v51 = vpop.f32.mrf.mxu3  ;;  %1865 = vst.msk [vmem:[#allocation3] sm:$0xff] %vm830_vm9, %v1847_v38  ;;  %v1101_v45 = vadd.f32 %v1083_v43, %v1044_v40  ;;  %v2710_v38 = vrot.slane %v4563_v28, 3  ;;  %v4570_v43 = vld [vmem:[#allocation2 + $0x28] sm:$0xff]  ;;  %v2453_v47 = vrot.slane %v2451_v27, 2 }
 0x143   : > { %v1309_v46 = vld [vmem:[#allocation3 + $0x18] sm:$0xff] }
 0x144   : > { %v1327_v62 = vadd.f32 %v1309_v46, %v1268_v34  ;;  %1119 = vst.msk [vmem:[#allocation3 + $0x20] sm:$0xff] %vm830_vm9, %v1101_v45  ;;  %3594 = vmatmul.msk.bf16.gmra.mxu1 %vm744_vm0, %v1957_v44  ;;  %3640 = vmatmul.msk.bf16.gmra.mxu2 %vm744_vm0, %v2183_v19  ;;  %v4572_v44 = vld [vmem:[#allocation2 + $0x30] sm:$0xff]  ;;  %v2711_v46 = vsel %vm2702_vm13, %v2708_v58, %v2710_v38 }
 0x145   : > { %v1534_v49 = vld [vmem:[#allocation3 + $0x10] sm:$0xff]  ;;  %v2186_v55 = vrot.slane %v4572_v44, 2 }
 0x146   : > { %v1552_v50 = vadd.f32 %v1534_v49, %v4451_v48  ;;  %1345 = vst.msk [vmem:[#allocation3 + $0x18] sm:$0xff] %vm830_vm9, %v1327_v62  ;;  %v1084_v48 = vld [vmem:[#allocation3 + $0x28] sm:$0xff] }
 0x147   : > { %3687 = vmatmul.msk.bf16.gmra.mxu3 %vm744_vm0, %v2440_v63  ;;  %v1830_v52 = vld [vmem:[#allocation3 + $0x8] sm:$0xff]  ;;  %v1271_v53 = vpop.f32.mrf.mxu2 }
 0x148   : > { %1570 = vst.msk [vmem:[#allocation3 + $0x10] sm:$0xff] %vm830_vm9, %v1552_v50  ;;  %v1848_v57 = vadd.f32 %v1830_v52, %v4429_v17  ;;  %v2447_v17 = vrot.slane %v2445_v56, 3  ;;  %v1960_v50 = vrot.slane %v4570_v43, 2 }
 0x149   : > { %v1046_v59 = vpop.f32.mrf.mxu1 }
 0x14a   : > { %v4525_v21 = vpop.f32.mrf.mxu3  ;;  %1866 = vst.msk [vmem:[#allocation3 + $0x8] sm:$0xff] %vm830_vm9, %v1848_v57  ;;  %v1102_v23 = vadd.f32 %v1084_v48, %v1046_v59  ;;  %v4535_v11 = vor.u32 %v2447_v17, %v2444_v36  ;;  %v1087_v48 = vld [vmem:[#allocation3 + $0x40] sm:$0xff] }
 0x14b   : > { %v1310_v3 = vld [vmem:[#allocation3 + $0x20] sm:$0xff] }
 0x14c   : > { %v1328_v5 = vadd.f32 %v1310_v3, %v1271_v53  ;;  %1120 = vst.msk [vmem:[#allocation3 + $0x28] sm:$0xff] %vm830_vm9, %v1102_v23  ;;  %v2449_v24 = vsel %vm2405_vm11, %v4491_v35, %v4535_v11  ;;  %v4567_v35 = vpop.f32.mrf.mxu0  ;;  %v2187_v23 = vsel %vm1952_vm15, %v2184_v7, %v2186_v55  ;;  %v3839_v17 = vld [vmem:[#allocation2 + $0x40] sm:$0xff] }
 0x14d   : > { %v1535_v32 = vld [vmem:[#allocation3 + $0x18] sm:$0xff] }
 0x14e   : > { %v1553_v8 = vadd.f32 %v1535_v32, %v4463_v1  ;;  %1346 = vst.msk [vmem:[#allocation3 + $0x20] sm:$0xff] %vm830_vm9, %v1328_v5  ;;  %v1959_v1 = vsel %vm1952_vm15, %v1956_v29, %v1958_v6  ;;  %v4612_v32 = vld [vmem:[#allocation2 + $0x38] sm:$0xff] }
 0x14f   : > { %v1831_v9 = vld [vmem:[#allocation3 + $0x10] sm:$0xff]  ;;  %v1273_v10 = vpop.f32.mrf.mxu2 }
 0x150   : > { %1571 = vst.msk [vmem:[#allocation3 + $0x18] sm:$0xff] %vm830_vm9, %v1553_v8  ;;  %v1849_v12 = vadd.f32 %v1831_v9, %v4444_v41  ;;  %v2460_v8 = vshrl.u32 %v3839_v17, 16  ;;  %v2463_v9 = vshll.u32 %v3839_v17, 16 }
 0x151   : > { %v1049_v15 = vpop.f32.mrf.mxu1  ;;  %3734 = vmatmul.msk.bf16.gmra.mxu0 %vm744_vm0, %v2711_v46 }
 0x152   : > { %v4551_v20 = vpop.f32.mrf.mxu3  ;;  %1867 = vst.msk [vmem:[#allocation3 + $0x10] sm:$0xff] %vm830_vm9, %v1849_v12  ;;  %v1103_v41 = vadd.f32 %v1085_v31, %v1049_v15  ;;  %v2712_v12 = vrot.slane %v4612_v32, 3  ;;  %v4619_v31 = vld [vmem:[#allocation2 + $0x30] sm:$0xff]  ;;  %v2462_v25 = vrot.slane %v2460_v8, 2 }
 0x153   : > { %v1311_v22 = vld [vmem:[#allocation3 + $0x28] sm:$0xff] }
 0x154   : > { %v1329_v18 = vadd.f32 %v1311_v22, %v1273_v10  ;;  %1121 = vst.msk [vmem:[#allocation3 + $0x30] sm:$0xff] %vm830_vm9, %v1103_v41  ;;  %3595 = vmatmul.msk.bf16.gmra.mxu1 %vm744_vm0, %v1959_v1  ;;  %3641 = vmatmul.msk.bf16.gmra.mxu2 %vm744_vm0, %v2185_v42  ;;  %v4588_v58 = vpop.f32.mrf.mxu0  ;;  %v4621_v1 = vld [vmem:[#allocation2 + $0x38] sm:$0xff]  ;;  %v2713_v22 = vsel %vm2702_vm13, %v2710_v38, %v2712_v12 }
 0x155   : > { %v1536_v4 = vld [vmem:[#allocation3 + $0x20] sm:$0xff]  ;;  %v2188_v28 = vrot.slane %v4621_v1, 2 }
 0x156   : > { %v1554_v26 = vadd.f32 %v1536_v4, %v4482_v37  ;;  %1347 = vst.msk [vmem:[#allocation3 + $0x28] sm:$0xff] %vm830_vm9, %v1329_v18  ;;  %v1086_v37 = vld [vmem:[#allocation3 + $0x38] sm:$0xff] }
 0x157   : > { %3688 = vmatmul.msk.bf16.gmra.mxu3 %vm744_vm0, %v2449_v24  ;;  %v1832_v29 = vld [vmem:[#allocation3 + $0x18] sm:$0xff]  ;;  %v1276_v30 = vpop.f32.mrf.mxu2 }
 0x158   : > { %1572 = vst.msk [vmem:[#allocation3 + $0x20] sm:$0xff] %vm830_vm9, %v1554_v26  ;;  %v1850_v34 = vadd.f32 %v1832_v29, %v4459_v16  ;;  %v2456_v16 = vrot.slane %v2454_v33, 3  ;;  %v1962_v26 = vrot.slane %v4619_v31, 2 }
 0x159   : > { %v1051_v40 = vpop.f32.mrf.mxu1 }
 0x15a   : > { %v4574_v19 = vpop.f32.mrf.mxu3  ;;  %1868 = vst.msk [vmem:[#allocation3 + $0x18] sm:$0xff] %vm830_vm9, %v1850_v34  ;;  %v1104_v45 = vadd.f32 %v1086_v37, %v1051_v40  ;;  %v4584_v56 = vor.u32 %v2456_v16, %v2453_v47  ;;  %v1089_v37 = vld [vmem:[#allocation3 + $0x50] sm:$0xff] }
 0x15b   : > { %v1312_v63 = vld [vmem:[#allocation3 + $0x30] sm:$0xff] }
 0x15c   : > { %v1330_v62 = vadd.f32 %v1312_v63, %v1276_v30  ;;  %1122 = vst.msk [vmem:[#allocation3 + $0x38] sm:$0xff] %vm830_vm9, %v1104_v45  ;;  %v2458_v36 = vsel %vm2405_vm11, %v4535_v11, %v4584_v56  ;;  %v4616_v11 = vpop.f32.mrf.mxu0  ;;  %v2189_v45 = vsel %vm1952_vm15, %v2186_v55, %v2188_v28  ;;  %v3840_v16 = vld [vmem:[#allocation2 + $0x48] sm:$0xff] }
 0x15d   : > { %v1537_v49 = vld [vmem:[#allocation3 + $0x28] sm:$0xff] }
 0x15e   : > { %v1555_v52 = vadd.f32 %v1537_v49, %v4503_v51  ;;  %1348 = vst.msk [vmem:[#allocation3 + $0x30] sm:$0xff] %vm830_vm9, %v1330_v62  ;;  %v1961_v51 = vsel %vm1952_vm15, %v1958_v6, %v1960_v50  ;;  %v4661_v49 = vld [vmem:[#allocation2 + $0x40] sm:$0xff] }
 0x15f   : > { %v1833_v53 = vld [vmem:[#allocation3 + $0x20] sm:$0xff]  ;;  %v1278_v54 = vpop.f32.mrf.mxu2 }
 0x160   : > { %1573 = vst.msk [vmem:[#allocation3 + $0x28] sm:$0xff] %vm830_vm9, %v1555_v52  ;;  %v1851_v57 = vadd.f32 %v1833_v53, %v4475_v13  ;;  %v2469_v52 = vshrl.u32 %v3840_v16, 16  ;;  %v2472_v53 = vshll.u32 %v3840_v16, 16 }
 0x161   : > { %v1054_v59 = vpop.f32.mrf.mxu1  ;;  %3735 = vmatmul.msk.bf16.gmra.mxu0 %vm744_vm0, %v2713_v22 }
 0x162   : > { %v4600_v0 = vpop.f32.mrf.mxu3  ;;  %1869 = vst.msk [vmem:[#allocation3 + $0x20] sm:$0xff] %vm830_vm9, %v1851_v57  ;;  %v1105_v13 = vadd.f32 %v1087_v48, %v1054_v59  ;;  %v2714_v57 = vrot.slane %v4661_v49, 3  ;;  %v4668_v48 = vld [vmem:[#allocation2 + $0x38] sm:$0xff]  ;;  %v2471_v17 = vrot.slane %v2469_v52, 2 }
 0x163   : > { %v1313_v3 = vld [vmem:[#allocation3 + $0x38] sm:$0xff] }
 0x164   : > { %v1331_v60 = vadd.f32 %v1313_v3, %v1278_v54  ;;  %1123 = vst.msk [vmem:[#allocation3 + $0x40] sm:$0xff] %vm830_vm9, %v1105_v13  ;;  %3596 = vmatmul.msk.bf16.gmra.mxu1 %vm744_vm0, %v1961_v51  ;;  %3642 = vmatmul.msk.bf16.gmra.mxu2 %vm744_vm0, %v2187_v23  ;;  %v4637_v38 = vpop.f32.mrf.mxu0  ;;  %v4670_v51 = vld [vmem:[#allocation2 + $0x40] sm:$0xff]  ;;  %v2715_v3 = vsel %vm2702_vm13, %v2712_v12, %v2714_v57 }
 0x165   : > { %v1538_v61 = vld [vmem:[#allocation3 + $0x30] sm:$0xff]  ;;  %v2190_v32 = vrot.slane %v4670_v51, 2 }
 0x166   : > { %v1556_v5 = vadd.f32 %v1538_v61, %v4525_v21  ;;  %1349 = vst.msk [vmem:[#allocation3 + $0x38] sm:$0xff] %vm830_vm9, %v1331_v60  ;;  %v1088_v21 = vld [vmem:[#allocation3 + $0x48] sm:$0xff] }
 0x167   : > { %3689 = vmatmul.msk.bf16.gmra.mxu3 %vm744_vm0, %v2458_v36  ;;  %v1834_v6 = vld [vmem:[#allocation3 + $0x28] sm:$0xff]  ;;  %v1281_v7 = vpop.f32.mrf.mxu2 }
 0x168   : > { %1574 = vst.msk [vmem:[#allocation3 + $0x30] sm:$0xff] %vm830_vm9, %v1556_v5  ;;  %v1852_v10 = vadd.f32 %v1834_v6, %v4495_v39  ;;  %v2465_v39 = vrot.slane %v2463_v9, 3  ;;  %v1964_v5 = vrot.slane %v4668_v48, 2 }
 0x169   : > { %v1056_v15 = vpop.f32.mrf.mxu1 }
 0x16a   : > { %v4623_v42 = vpop.f32.mrf.mxu3  ;;  %1870 = vst.msk [vmem:[#allocation3 + $0x28] sm:$0xff] %vm830_vm9, %v1852_v10  ;;  %v1106_v41 = vadd.f32 %v1088_v21, %v1056_v15  ;;  %v4633_v33 = vor.u32 %v2465_v39, %v2462_v25  ;;  %v1091_v21 = vld [vmem:[#allocation3 + $0x60] sm:$0xff]  ;;  %v3841_v39 = vld [vmem:[#allocation2 + $0x50] sm:$0xff] }
 0x16b   : > { %v1314_v24 = vld [vmem:[#allocation3 + $0x40] sm:$0xff] }
 0x16c   : > { %v1332_v18 = vadd.f32 %v1314_v24, %v1281_v7  ;;  %1124 = vst.msk [vmem:[#allocation3 + $0x48] sm:$0xff] %vm830_vm9, %v1106_v41  ;;  %v2467_v47 = vsel %vm2405_vm11, %v4584_v56, %v4633_v33  ;;  %v4665_v56 = vpop.f32.mrf.mxu0  ;;  %v2191_v41 = vsel %vm1952_vm15, %v2188_v28, %v2190_v32 }
 0x16d   : > { %v1539_v4 = vld [vmem:[#allocation3 + $0x38] sm:$0xff] }
 0x16e   : > { %v1557_v29 = vadd.f32 %v1539_v4, %v4551_v20  ;;  %1350 = vst.msk [vmem:[#allocation3 + $0x40] sm:$0xff] %vm830_vm9, %v1332_v18  ;;  %v1963_v20 = vsel %vm1952_vm15, %v1960_v50, %v1962_v26  ;;  %v4710_v4 = vld [vmem:[#allocation2 + $0x48] sm:$0xff] }
 0x16f   : > { %v1835_v30 = vld [vmem:[#allocation3 + $0x30] sm:$0xff]  ;;  %v1283_v27 = vpop.f32.mrf.mxu2 }
 0x170   : > { %1575 = vst.msk [vmem:[#allocation3 + $0x38] sm:$0xff] %vm830_vm9, %v1557_v29  ;;  %v1853_v34 = vadd.f32 %v1835_v30, %v4518_v2  ;;  %v2478_v29 = vshrl.u32 %v3841_v39, 16  ;;  %v2481_v30 = vshll.u32 %v3841_v39, 16 }
 0x171   : > { %v1059_v40 = vpop.f32.mrf.mxu1  ;;  %3736 = vmatmul.msk.bf16.gmra.mxu0 %vm744_vm0, %v2715_v3  ;;  %v1093_v3 = vld [vmem:[#allocation3 + $0x70] sm:$0xff] }
 0x172   : > { %v4649_v46 = vpop.f32.mrf.mxu3  ;;  %1871 = vst.msk [vmem:[#allocation3 + $0x30] sm:$0xff] %vm830_vm9, %v1853_v34  ;;  %v1107_v2 = vadd.f32 %v1089_v37, %v1059_v40  ;;  %v2716_v34 = vrot.slane %v4710_v4, 3  ;;  %v4717_v37 = vld [vmem:[#allocation2 + $0x40] sm:$0xff]  ;;  %v2483_v16 = vrot.slane %v2481_v30, 3 }
 0x173   : > { %v1315_v63 = vld [vmem:[#allocation3 + $0x48] sm:$0xff] }
 0x174   : > { %v1333_v43 = vadd.f32 %v1315_v63, %v1283_v27  ;;  %1125 = vst.msk [vmem:[#allocation3 + $0x50] sm:$0xff] %vm830_vm9, %v1107_v2  ;;  %3597 = vmatmul.msk.bf16.gmra.mxu1 %vm744_vm0, %v1963_v20  ;;  %3643 = vmatmul.msk.bf16.gmra.mxu2 %vm744_vm0, %v2189_v45  ;;  %v4686_v12 = vpop.f32.mrf.mxu0  ;;  %v4719_v20 = vld [vmem:[#allocation2 + $0x48] sm:$0xff]  ;;  %v2717_v63 = vsel %vm2702_vm13, %v2714_v57, %v2716_v34 }
 0x175   : > { %v1540_v44 = vld [vmem:[#allocation3 + $0x40] sm:$0xff]  ;;  %v2192_v49 = vrot.slane %v4719_v20, 2 }
 0x176   : > { %v1558_v62 = vadd.f32 %v1540_v44, %v4574_v19  ;;  %1351 = vst.msk [vmem:[#allocation3 + $0x48] sm:$0xff] %vm830_vm9, %v1333_v43  ;;  %v1090_v19 = vld [vmem:[#allocation3 + $0x58] sm:$0xff] }
 0x177   : > { %3690 = vmatmul.msk.bf16.gmra.mxu3 %vm744_vm0, %v2467_v47  ;;  %v1836_v50 = vld [vmem:[#allocation3 + $0x38] sm:$0xff]  ;;  %v1286_v55 = vpop.f32.mrf.mxu2  ;;  %v2480_v47 = vrot.slane %v2478_v29, 2 }
 0x178   : > { %1576 = vst.msk [vmem:[#allocation3 + $0x40] sm:$0xff] %vm830_vm9, %v1558_v62  ;;  %v1854_v54 = vadd.f32 %v1836_v50, %v4539_v14  ;;  %v2474_v14 = vrot.slane %v2472_v53, 3  ;;  %v1966_v62 = vrot.slane %v4717_v37, 2 }
 0x179   : > { %v1061_v59 = vpop.f32.mrf.mxu1  ;;  %v4733_v53 = vor.u32 %v2483_v16, %v2480_v47  ;;  %v2128_v16 = vld [vmem:[#allocation2 + $0x58] sm:$0x3] }
 0x17a   : > { %v4672_v23 = vpop.f32.mrf.mxu3  ;;  %1872 = vst.msk [vmem:[#allocation3 + $0x38] sm:$0xff] %vm830_vm9, %v1854_v54  ;;  %v1108_v13 = vadd.f32 %v1090_v19, %v1061_v59  ;;  %v4682_v9 = vor.u32 %v2474_v14, %v2471_v17  ;;  %v2354_v54 = vld [vmem:[#allocation2 + $0x58] sm:$0x7] }
 0x17b   : > { %v1316_v36 = vld [vmem:[#allocation3 + $0x50] sm:$0xff]  ;;  %v2394_v19 = vunpack.c.l.b16 %v2354_v54 }
 0x17c   : > { %v1334_v60 = vadd.f32 %v1316_v36, %v1286_v55  ;;  %1126 = vst.msk [vmem:[#allocation3 + $0x58] sm:$0xff] %vm830_vm9, %v1108_v13  ;;  %v2476_v25 = vsel %vm2405_vm11, %v4633_v33, %v4682_v9  ;;  %v4714_v33 = vpop.f32.mrf.mxu0  ;;  %v2193_v36 = vsel %vm1952_vm15, %v2190_v32, %v2192_v49  ;;  %v4761_v32 = vld [vmem:[#allocation2 + $0x50] sm:$0xff] }
 0x17d   : > { %v1541_v61 = vld [vmem:[#allocation3 + $0x48] sm:$0xff] }
 0x17e   : > { %v1559_v6 = vadd.f32 %v1541_v61, %v4600_v0  ;;  %1352 = vst.msk [vmem:[#allocation3 + $0x50] sm:$0xff] %vm830_vm9, %v1334_v60  ;;  %v1965_v0 = vsel %vm1952_vm15, %v1962_v26, %v1964_v5  ;;  %v2485_v60 = vsel %vm2405_vm11, %v4682_v9, %v4733_v53  ;;  %v2404_v61 = vpack.c.b16 %v2394_v19, %v2394_v19 }
 0x17f   : > { %v1837_v7 = vld [vmem:[#allocation3 + $0x40] sm:$0xff]  ;;  %v1288_v8 = vpop.f32.mrf.mxu2 }
 0x180   : > { %1577 = vst.msk [vmem:[#allocation3 + $0x48] sm:$0xff] %vm830_vm9, %v1559_v6  ;;  %v1855_v10 = vadd.f32 %v1837_v7, %v4567_v35  ;;  %v2490_v9 = vshll.u32 %v2404_v61, 16 }
 0x181   : > { %v1064_v15 = vpop.f32.mrf.mxu1  ;;  %3737 = vmatmul.msk.bf16.gmra.mxu0 %vm744_vm0, %v2717_v63 }
 0x182   : > { %v4698_v22 = vpop.f32.mrf.mxu3  ;;  %1873 = vst.msk [vmem:[#allocation3 + $0x40] sm:$0xff] %vm830_vm9, %v1855_v10  ;;  %v1109_v35 = vadd.f32 %v1091_v21, %v1064_v15  ;;  %v2718_v15 = vrot.slane %v4761_v32, 3 }
 0x183   : > { %v1317_v24 = vld [vmem:[#allocation3 + $0x58] sm:$0xff] }
 0x184   : > { %v1335_v31 = vadd.f32 %v1317_v24, %v1288_v8  ;;  %1127 = vst.msk [vmem:[#allocation3 + $0x60] sm:$0xff] %vm830_vm9, %v1109_v35  ;;  %3598 = vmatmul.msk.bf16.gmra.mxu1 %vm744_vm0, %v1965_v0  ;;  %3644 = vmatmul.msk.bf16.gmra.mxu2 %vm744_vm0, %v2191_v41  ;;  %v4737_v59 = vpop.f32.mrf.mxu0  ;;  %v2487_v8 = vshrl.u32 %v2404_v61, 16  ;;  %v1094_v0 = vld [vmem:[#allocation3 + $0x78] sm:$0xff]  ;;  %v4766_v41 = vld [vmem:[#allocation2 + $0x48] sm:$0xff] }
 0x185   : > { %v1542_v1 = vld [vmem:[#allocation3 + $0x50] sm:$0xff] }
 0x186   : > { %v1560_v18 = vadd.f32 %v1542_v1, %v4623_v42  ;;  %1353 = vst.msk [vmem:[#allocation3 + $0x58] sm:$0xff] %vm830_vm9, %v1335_v31  ;;  %v1092_v42 = vld [vmem:[#allocation3 + $0x68] sm:$0xff]  ;;  %v2489_v31 = vrot.slane %v2487_v8, 2  ;;  %v2492_v1 = vrot.slane %v2490_v9, 3 }
 0x187   : > { %3691 = vmatmul.msk.bf16.gmra.mxu3 %vm744_vm0, %v2476_v25  ;;  %v1838_v26 = vld [vmem:[#allocation3 + $0x48] sm:$0xff]  ;;  %v1291_v28 = vpop.f32.mrf.mxu2 }
 0x188   : > { %1578 = vst.msk [vmem:[#allocation3 + $0x50] sm:$0xff] %vm830_vm9, %v1560_v18  ;;  %v1856_v27 = vadd.f32 %v1838_v26, %v4588_v58 }
 0x189   : > { %v1066_v40 = vpop.f32.mrf.mxu1 }
 0x18a   : > { %v4721_v45 = vpop.f32.mrf.mxu3  ;;  %1874 = vst.msk [vmem:[#allocation3 + $0x48] sm:$0xff] %vm830_vm9, %v1856_v27  ;;  %v1110_v2 = vadd.f32 %v1092_v42, %v1066_v40 }
 0x18b   : > { %v1318_v58 = vld [vmem:[#allocation3 + $0x60] sm:$0xff] }
 0x18c   : > { %v1336_v43 = vadd.f32 %v1318_v58, %v1291_v28  ;;  %1128 = vst.msk [vmem:[#allocation3 + $0x68] sm:$0xff] %vm830_vm9, %v1110_v2  ;;  %v4773_v25 = vpop.f32.mrf.mxu0  ;;  %v1968_v28 = vrot.slane %v4766_v41, 2  ;;  %v1095_v2 = vld [vmem:[#allocation3 + $0x80] sm:$0xff] }
 0x18d   : > { %v1543_v44 = vld [vmem:[#allocation3 + $0x58] sm:$0xff] }
 0x18e   : > { %v1561_v50 = vadd.f32 %v1543_v44, %v4649_v46  ;;  %1354 = vst.msk [vmem:[#allocation3 + $0x60] sm:$0xff] %vm830_vm9, %v1336_v43  ;;  %v1967_v46 = vsel %vm1952_vm15, %v1964_v5, %v1966_v62  ;;  %v1969_v63 = vsel %vm1952_vm15, %v1966_v62, %v1968_v28  ;;  %v2651_v62 = vld [vmem:[#allocation2 + $0x58] sm:$0x7] }
 0x18f   : > { %v1839_v55 = vld [vmem:[#allocation3 + $0x50] sm:$0xff]  ;;  %v1293_v52 = vpop.f32.mrf.mxu2  ;;  %v2691_v20 = vunpack.c.l.b16 %v2651_v62 }
 0x190   : > { %1579 = vst.msk [vmem:[#allocation3 + $0x58] sm:$0xff] %vm830_vm9, %v1561_v50  ;;  %v1857_v57 = vadd.f32 %v1839_v55, %v4616_v11 }
 0x191   : > { %v1069_v13 = vpop.f32.mrf.mxu1 }
 0x192   : > { %v4749_v17 = vpop.f32.mrf.mxu3  ;;  %1875 = vst.msk [vmem:[#allocation3 + $0x50] sm:$0xff] %vm830_vm9, %v1857_v57  ;;  %v1111_v11 = vadd.f32 %v1093_v3, %v1069_v13  ;;  %v2701_v57 = vpack.c.b16 %v2691_v20, %v2691_v20 }
 0x193   : > { %v1319_v14 = vld [vmem:[#allocation3 + $0x68] sm:$0xff] }
 0x194   : > { %v1337_v48 = vadd.f32 %v1319_v14, %v1293_v52  ;;  %1129 = vst.msk [vmem:[#allocation3 + $0x70] sm:$0xff] %vm830_vm9, %v1111_v11  ;;  %3599 = vmatmul.msk.bf16.gmra.mxu1 %vm744_vm0, %v1967_v46  ;;  %3645 = vmatmul.msk.bf16.gmra.mxu2 %vm744_vm0, %v2193_v36  ;;  %v4801_v43 = vpop.f32.mrf.mxu0  ;;  %v2168_v52 = vunpack.c.l.b16 %v2128_v16  ;;  %v2720_v3 = vrot.slane %v2701_v57, 3  ;;  %v1096_v36 = vld [vmem:[#allocation3 + $0x88] sm:$0xff] }
 0x195   : > { %v1544_v51 = vld [vmem:[#allocation3 + $0x60] sm:$0xff] }
 0x196   : > { %v1562_v5 = vadd.f32 %v1544_v51, %v4672_v23  ;;  %1355 = vst.msk [vmem:[#allocation3 + $0x68] sm:$0xff] %vm830_vm9, %v1337_v48  ;;  %v4768_v23 = vld [vmem:[#allocation2 + $0x50] sm:$0xff]  ;;  %v2178_v14 = vpack.c.b16 %v2168_v52, %v2168_v52  ;;  %v2721_v61 = vsel %vm2702_vm13, %v2718_v15, %v2720_v3 }
 0x197   : > { %3692 = vmatmul.msk.bf16.gmra.mxu3 %vm744_vm0, %v2485_v60  ;;  %v1840_v6 = vld [vmem:[#allocation3 + $0x58] sm:$0xff]  ;;  %v1296_v7 = vpop.f32.mrf.mxu2  ;;  %v2194_v29 = vrot.slane %v4768_v23, 2 }
 0x198   : > { %1580 = vst.msk [vmem:[#allocation3 + $0x60] sm:$0xff] %vm830_vm9, %v1562_v5  ;;  %v1858_v10 = vadd.f32 %v1840_v6, %v4637_v38  ;;  %v2719_v38 = vsel %vm2702_vm13, %v2716_v34, %v2718_v15  ;;  %v2493_v34 = vor.u32 %v2492_v1, %v2489_v31 }
 0x199   : > { %v1071_v21 = vpop.f32.mrf.mxu1  ;;  %3738 = vmatmul.msk.bf16.gmra.mxu0 %vm744_vm0, %v2719_v38 }
 0x19a   : > { %v4770_v35 = vpop.f32.mrf.mxu3  ;;  %1876 = vst.msk [vmem:[#allocation3 + $0x58] sm:$0xff] %vm830_vm9, %v1858_v10  ;;  %v1112_v24 = vadd.f32 %v1094_v0, %v1071_v21  ;;  %v2494_v37 = vsel %vm2405_vm11, %v4733_v53, %v2493_v34  ;;  %v2056_v21 = vld [vmem:[#allocation3] sm:$0xff] }
 0x19b   : > { %v1320_v39 = vld [vmem:[#allocation3 + $0x70] sm:$0xff] }
 0x19c   : > { %v1338_v18 = vadd.f32 %v1320_v39, %v1296_v7  ;;  %1130 = vst.msk [vmem:[#allocation3 + $0x78] sm:$0xff] %vm830_vm9, %v1112_v24  ;;  %v4820_v5 = vpop.f32.mrf.mxu0  ;;  %v2196_v7 = vrot.slane %v2178_v14, 2  ;;  %v2060_v14 = vld [vmem:[#allocation3 + $0x20] sm:$0xff] }
 0x19d   : > { %v1545_v26 = vld [vmem:[#allocation3 + $0x68] sm:$0xff] }
 0x19e   : > { %v1563_v30 = vadd.f32 %v1545_v26, %v4698_v22  ;;  %1356 = vst.msk [vmem:[#allocation3 + $0x70] sm:$0xff] %vm830_vm9, %v1338_v18  ;;  %v2195_v22 = vsel %vm1952_vm15, %v2192_v49, %v2194_v29  ;;  %v2197_v24 = vsel %vm1952_vm15, %v2194_v29, %v2196_v7  ;;  %v2057_v29 = vld [vmem:[#allocation3 + $0x8] sm:$0xff] }
 0x19f   : > { %v1841_v4 = vld [vmem:[#allocation3 + $0x60] sm:$0xff]  ;;  %v1298_v27 = vpop.f32.mrf.mxu2 }
 0x1a0   : > { %1581 = vst.msk [vmem:[#allocation3 + $0x68] sm:$0xff] %vm830_vm9, %v1563_v30  ;;  %v1859_v40 = vadd.f32 %v1841_v4, %v4665_v56  ;;  %v1901_v56 = vld [vmem:[#allocation2 + $0x50] sm:$0x3] }
 0x1a1   : > { %v1074_v42 = vpop.f32.mrf.mxu1  ;;  %v1941_v55 = vunpack.c.l.b16 %v1901_v56 }
 0x1a2   : > { %v4798_v58 = vpop.f32.mrf.mxu3  ;;  %1877 = vst.msk [vmem:[#allocation3 + $0x60] sm:$0xff] %vm830_vm9, %v1859_v40  ;;  %v1113_v47 = vadd.f32 %v1095_v2, %v1074_v42 }
 0x1a3   : > { %v1321_v44 = vld [vmem:[#allocation3 + $0x78] sm:$0xff]  ;;  %v1951_v11 = vpack.c.b16 %v1941_v55, %v1941_v55 }
 0x1a4   : > { %v1339_v50 = vadd.f32 %v1321_v44, %v1298_v27  ;;  %1131 = vst.msk [vmem:[#allocation3 + $0x80] sm:$0xff] %vm830_vm9, %v1113_v47  ;;  %3600 = vmatmul.msk.bf16.gmra.mxu1 %vm744_vm0, %v1969_v63  ;;  %3646 = vmatmul.msk.bf16.gmra.mxu2 %vm744_vm0, %v2195_v22  ;;  %v4839_v23 = vpop.f32.mrf.mxu0  ;;  %v2058_v47 = vld [vmem:[#allocation3 + $0x10] sm:$0xff]  ;;  %v2059_v55 = vld [vmem:[#allocation3 + $0x18] sm:$0xff] }
 0x1a5   : > { %v1546_v49 = vld [vmem:[#allocation3 + $0x70] sm:$0xff]  ;;  %v1970_v6 = vrot.slane %v1951_v11, 2 }
 0x1a6   : > { %v1564_v54 = vadd.f32 %v1546_v49, %v4721_v45  ;;  %1357 = vst.msk [vmem:[#allocation3 + $0x78] sm:$0xff] %vm830_vm9, %v1339_v50 }
 0x1a7   : > { %3693 = vmatmul.msk.bf16.gmra.mxu3 %vm744_vm0, %v2494_v37  ;;  %v1842_v53 = vld [vmem:[#allocation3 + $0x68] sm:$0xff]  ;;  %v1301_v19 = vpop.f32.mrf.mxu2  ;;  %v1971_v0 = vsel %vm1952_vm15, %v1968_v28, %v1970_v6 }
 0x1a8   : > { %1582 = vst.msk [vmem:[#allocation3 + $0x70] sm:$0xff] %vm830_vm9, %v1564_v54  ;;  %v1860_v13 = vadd.f32 %v1842_v53, %v4686_v12 }
 0x1a9   : > { %v1076_v46 = vpop.f32.mrf.mxu1  ;;  %3739 = vmatmul.msk.bf16.gmra.mxu0 %vm744_vm0, %v2721_v61 }
 0x1aa   : > { %v4813_v60 = vpop.f32.mrf.mxu3  ;;  %1878 = vst.msk [vmem:[#allocation3 + $0x68] sm:$0xff] %vm830_vm9, %v1860_v13  ;;  %v1114_v45 = vadd.f32 %v1096_v36, %v1076_v46 }
 0x1ab   : > { %v1322_v48 = vld [vmem:[#allocation3 + $0x80] sm:$0xff] }
 0x1ac   : > { %v1340_v51 = vadd.f32 %v1322_v48, %v1301_v19  ;;  %1132 = vst.msk [vmem:[#allocation3 + $0x88] sm:$0xff] %vm830_vm9, %v1114_v45  ;;  %v4849_v63 = vpop.f32.mrf.mxu0 }
 0x1ad   : > { %v1547_v12 = vld [vmem:[#allocation3 + $0x78] sm:$0xff] }
 0x1ae   : > { %v1565_v8 = vadd.f32 %v1547_v12, %v4749_v17  ;;  %1358 = vst.msk [vmem:[#allocation3 + $0x80] sm:$0xff] %vm830_vm9, %v1340_v51 }
 0x1af   : > { %v1843_v9 = vld [vmem:[#allocation3 + $0x70] sm:$0xff]  ;;  %v1303_v10 = vpop.f32.mrf.mxu2 }
 0x1b0   : > { %1583 = vst.msk [vmem:[#allocation3 + $0x78] sm:$0xff] %vm830_vm9, %v1565_v8  ;;  %v1861_v32 = vadd.f32 %v1843_v9, %v4714_v33 }
 0x1b1   : > { %v2011_v15 = vpop.f32.mrf.mxu1 }
 0x1b2   : > { %v2536_v38 = vpop.f32.mrf.mxu3  ;;  %1879 = vst.msk [vmem:[#allocation3 + $0x70] sm:$0xff] %vm830_vm9, %v1861_v32  ;;  %v2074_v17 = vadd.f32 %v2056_v21, %v2011_v15 }
 0x1b3   : > { %v1323_v39 = vld [vmem:[#allocation3 + $0x88] sm:$0xff] }
 0x1b4   : > { %v1341_v31 = vadd.f32 %v1323_v39, %v1303_v10  ;;  %2092 = vst.msk [vmem:[#allocation3] sm:$0xff] %vm830_vm9, %v2074_v17  ;;  %3601 = vmatmul.msk.bf16.gmra.mxu1 %vm744_vm0, %v1971_v0  ;;  %3647 = vmatmul.msk.bf16.gmra.mxu2 %vm744_vm0, %v2197_v24  ;;  %v4860_v57 = vpop.f32.mrf.mxu0  ;;  %v2061_v10 = vld [vmem:[#allocation3 + $0x28] sm:$0xff] }
 0x1b5   : > { %v1548_v33 = vld [vmem:[#allocation3 + $0x80] sm:$0xff] }
 0x1b6   : > { %v1566_v41 = vadd.f32 %v1548_v33, %v4770_v35  ;;  %1359 = vst.msk [vmem:[#allocation3 + $0x88] sm:$0xff] %vm830_vm9, %v1341_v31 }
 0x1b7   : > { %v1844_v1 = vld [vmem:[#allocation3 + $0x78] sm:$0xff]  ;;  %v2237_v18 = vpop.f32.mrf.mxu2 }
 0x1b8   : > { %1584 = vst.msk [vmem:[#allocation3 + $0x80] sm:$0xff] %vm830_vm9, %v1566_v41  ;;  %v1862_v26 = vadd.f32 %v1844_v1, %v4737_v59 }
 0x1b9   : > { %v2013_v28 = vpop.f32.mrf.mxu1 }
 0x1ba   : > { %v2539_v30 = vpop.f32.mrf.mxu3  ;;  %1880 = vst.msk [vmem:[#allocation3 + $0x78] sm:$0xff] %vm830_vm9, %v1862_v26  ;;  %v2075_v4 = vadd.f32 %v2057_v29, %v2013_v28  ;;  %v2062_v26 = vld [vmem:[#allocation3 + $0x30] sm:$0xff] }
 0x1bb   : > { %v2282_v27 = vld [vmem:[#allocation3] sm:$0xff] }
 0x1bc   : > { %v2300_v34 = vadd.f32 %v2282_v27, %v2237_v18  ;;  %2093 = vst.msk [vmem:[#allocation3 + $0x8] sm:$0xff] %vm830_vm9, %v2075_v4 }
 0x1bd   : > { %v1549_v35 = vld [vmem:[#allocation3 + $0x88] sm:$0xff] }
 0x1be   : > { %v1567_v40 = vadd.f32 %v1549_v35, %v4798_v58  ;;  %2318 = vst.msk [vmem:[#allocation3] sm:$0xff] %vm830_vm9, %v2300_v34  ;;  %v4870_v51 = vpop.f32.mrf.mxu0 }
 0x1bf   : > { %v1845_v42 = vld [vmem:[#allocation3 + $0x80] sm:$0xff]  ;;  %v2239_v2 = vpop.f32.mrf.mxu2 }
 0x1c0   : > { %1585 = vst.msk [vmem:[#allocation3 + $0x88] sm:$0xff] %vm830_vm9, %v1567_v40  ;;  %v1863_v59 = vadd.f32 %v1845_v42, %v4773_v25 }
 0x1c1   : > { %v2016_v22 = vpop.f32.mrf.mxu1 }
 0x1c2   : > { %v2541_v56 = vpop.f32.mrf.mxu3  ;;  %1881 = vst.msk [vmem:[#allocation3 + $0x80] sm:$0xff] %vm830_vm9, %v1863_v59  ;;  %v2076_v16 = vadd.f32 %v2058_v47, %v2016_v22 }
 0x1c3   : > { %v2283_v44 = vld [vmem:[#allocation3 + $0x8] sm:$0xff] }
 0x1c4   : > { %v2301_v37 = vadd.f32 %v2283_v44, %v2239_v2  ;;  %2094 = vst.msk [vmem:[#allocation3 + $0x10] sm:$0xff] %vm830_vm9, %v2076_v16 }
 0x1c5   : > { %v2579_v58 = vld [vmem:[#allocation3] sm:$0xff] }
 0x1c6   : > { %v2597_v62 = vadd.f32 %v2579_v58, %v4813_v60  ;;  %2319 = vst.msk [vmem:[#allocation3 + $0x8] sm:$0xff] %vm830_vm9, %v2301_v37  ;;  %v4880_v31 = vpop.f32.mrf.mxu0 }
 0x1c7   : > { %v1846_v50 = vld [vmem:[#allocation3 + $0x88] sm:$0xff]  ;;  %v2242_v20 = vpop.f32.mrf.mxu2 }
 0x1c8   : > { %2615 = vst.msk [vmem:[#allocation3] sm:$0xff] %vm830_vm9, %v2597_v62  ;;  %v1864_v25 = vadd.f32 %v1846_v50, %v4801_v43  ;;  %v2063_v50 = vld [vmem:[#allocation3 + $0x38] sm:$0xff] }
 0x1c9   : > { %v2018_v49 = vpop.f32.mrf.mxu1 }
 0x1ca   : > { %1882 = vst.msk [vmem:[#allocation3 + $0x88] sm:$0xff] %vm830_vm9, %v1864_v25  ;;  %v2077_v52 = vadd.f32 %v2059_v55, %v2018_v49  ;;  %v4858_v54 = vpop.f32.mrf.mxu3 }
 0x1cb   : > { %v2284_v53 = vld [vmem:[#allocation3 + $0x10] sm:$0xff] }
 0x1cc   : > { %v2302_v19 = vadd.f32 %v2284_v53, %v2242_v20  ;;  %2095 = vst.msk [vmem:[#allocation3 + $0x18] sm:$0xff] %vm830_vm9, %v2077_v52 }
 0x1cd   : > { %v2580_v13 = vld [vmem:[#allocation3 + $0x8] sm:$0xff] }
 0x1ce   : > { %v2598_v3 = vadd.f32 %v2580_v13, %v2536_v38  ;;  %2320 = vst.msk [vmem:[#allocation3 + $0x10] sm:$0xff] %vm830_vm9, %v2302_v19  ;;  %v4898_v58 = vpop.f32.mrf.mxu0  ;;  %v2064_v13 = vld [vmem:[#allocation3 + $0x40] sm:$0xff] }
 0x1cf   : > { %v2806_v46 = vld [vmem:[#allocation3] sm:$0xff]  ;;  %v2244_v36 = vpop.f32.mrf.mxu2 }
 0x1d0   : > { %2616 = vst.msk [vmem:[#allocation3 + $0x8] sm:$0xff] %vm830_vm9, %v2598_v3  ;;  %v2824_v43 = vadd.f32 %v2806_v46, %v4820_v5 }
 0x1d1   : > { %v2021_v11 = vpop.f32.mrf.mxu1 }
 0x1d2   : > { %2842 = vst.msk [vmem:[#allocation3] sm:$0xff] %vm830_vm9, %v2824_v43  ;;  %v2078_v60 = vadd.f32 %v2060_v14, %v2021_v11  ;;  %v4868_v48 = vpop.f32.mrf.mxu3 }
 0x1d3   : > { %v2285_v45 = vld [vmem:[#allocation3 + $0x18] sm:$0xff] }
 0x1d4   : > { %v2303_v61 = vadd.f32 %v2285_v45, %v2244_v36  ;;  %2096 = vst.msk [vmem:[#allocation3 + $0x20] sm:$0xff] %vm830_vm9, %v2078_v60 }
 0x1d5   : > { %v2581_v12 = vld [vmem:[#allocation3 + $0x10] sm:$0xff] }
 0x1d6   : > { %v2599_v6 = vadd.f32 %v2581_v12, %v2539_v30  ;;  %2321 = vst.msk [vmem:[#allocation3 + $0x18] sm:$0xff] %vm830_vm9, %v2303_v61  ;;  %v4909_v43 = vpop.f32.mrf.mxu0 }
 0x1d7   : > { %v2807_v7 = vld [vmem:[#allocation3 + $0x8] sm:$0xff]  ;;  %v2247_v5 = vpop.f32.mrf.mxu2 }
 0x1d8   : > { %2617 = vst.msk [vmem:[#allocation3 + $0x10] sm:$0xff] %vm830_vm9, %v2599_v6  ;;  %v2825_v8 = vadd.f32 %v2807_v7, %v4839_v23 }
 0x1d9   : > { %v2023_v9 = vpop.f32.mrf.mxu1  ;;  %v2860_v32 = vld [vmem:[#allocation3] sm:$0xff] }
 0x1da   : > { %2843 = vst.msk [vmem:[#allocation3 + $0x8] sm:$0xff] %vm830_vm9, %v2825_v8  ;;  %v2079_v15 = vadd.f32 %v2061_v10, %v2023_v9  ;;  %v2862_v21 = vpack.c.bf16 %v2860_v32, %v2860_v32  ;;  %v2549_v39 = vpop.f32.mrf.mxu3  ;;  %v2877_v1 = vmul.f32 %v2860_v32, %v2860_v32  ;;  %v2867_v29 = vsel %vm830_vm9, %v2860_v32, 0.0  ;;  %v2065_v10 = vld [vmem:[#allocation3 + $0x48] sm:$0xff] }
 0x1db   : > { %v2286_v0 = vld [vmem:[#allocation3 + $0x20] sm:$0xff] }
 0x1dc   : > { %v2304_v24 = vadd.f32 %v2286_v0, %v2247_v5  ;;  %2097 = vst.msk [vmem:[#allocation3 + $0x28] sm:$0xff] %vm830_vm9, %v2079_v15  ;;  %v2879_v2 = vsel %vm830_vm9, %v2877_v1, 0.0 }
 0x1dd   : > { %v2582_v38 = vld [vmem:[#allocation3 + $0x18] sm:$0xff]  ;;  %2865 = vst.msk [vmem:[%s4094_s12] sm:$0xf] %vm2864_vm2, %v2862_v21 }
 0x1de   : > { %v2600_v17 = vadd.f32 %v2582_v38, %v2541_v56  ;;  %2322 = vst.msk [vmem:[#allocation3 + $0x20] sm:$0xff] %vm830_vm9, %v2304_v24  ;;  %v4923_v1 = vpop.f32.mrf.mxu0 }
 0x1df   : > { %v2808_v33 = vld [vmem:[#allocation3 + $0x10] sm:$0xff]  ;;  %v2249_v41 = vpop.f32.mrf.mxu2 }
 0x1e0   : > { %2618 = vst.msk [vmem:[#allocation3 + $0x18] sm:$0xff] %vm830_vm9, %v2600_v17  ;;  %v2826_v23 = vadd.f32 %v2808_v33, %v4849_v63 }
 0x1e1   : > { %v2026_v18 = vpop.f32.mrf.mxu1  ;;  %v2861_v28 = vld [vmem:[#allocation3 + $0x8] sm:$0xff] }
 0x1e2   : > { %2844 = vst.msk [vmem:[#allocation3 + $0x10] sm:$0xff] %vm830_vm9, %v2826_v23  ;;  %v2080_v30 = vadd.f32 %v2062_v26, %v2026_v18  ;;  %v2863_v4 = vpack.c.bf16 %v2861_v28, %v2861_v28  ;;  %v2868_v27 = vsel %vm830_vm9, %v2861_v28, 0.0  ;;  %v2878_v34 = vmul.f32 %v2861_v28, %v2861_v28  ;;  %v4896_v37 = vpop.f32.mrf.mxu3 }
 0x1e3   : > { %v2287_v35 = vld [vmem:[#allocation3 + $0x28] sm:$0xff]  ;;  %v2869_v40 = vadd.f32 %v2868_v27, %v2867_v29 }
 0x1e4   : > { %v2305_v42 = vadd.f32 %v2287_v35, %v2249_v41  ;;  %2098 = vst.msk [vmem:[#allocation3 + $0x30] sm:$0xff] %vm830_vm9, %v2080_v30  ;;  %v2880_v59 = vsel %vm830_vm9, %v2878_v34, 0.0 }
 0x1e5   : > { %v2583_v63 = vld [vmem:[#allocation3 + $0x20] sm:$0xff]  ;;  %2866 = vst.msk [vmem:[%s4094_s12 + $0x4] sm:$0xf] %vm2864_vm2, %v2863_v4  ;;  %v2881_v22 = vadd.f32 %v2880_v59, %v2879_v2  ;;  %v2870_v60 = vrot.slane %v2869_v40, 4 }
 0x1e6   : > { %v2601_v47 = vadd.f32 %v2583_v63, %v4858_v54  ;;  %2323 = vst.msk [vmem:[#allocation3 + $0x28] sm:$0xff] %vm830_vm9, %v2305_v42 }
 0x1e7   : > { %v2809_v56 = vld [vmem:[#allocation3 + $0x18] sm:$0xff]  ;;  %v2252_v16 = vpop.f32.mrf.mxu2  ;;  %v2871_v7 = vadd.f32 %v2870_v60, %v2869_v40 }
 0x1e8   : > { %2619 = vst.msk [vmem:[#allocation3 + $0x20] sm:$0xff] %vm830_vm9, %v2601_v47  ;;  %v2827_v44 = vadd.f32 %v2809_v56, %v4860_v57 }
 0x1e9   : > { %v2028_v62 = vpop.f32.mrf.mxu1  ;;  %v2872_v33 = vrot.slane %v2871_v7, 2 }
 0x1ea   : > { %2845 = vst.msk [vmem:[#allocation3 + $0x18] sm:$0xff] %vm830_vm9, %v2827_v44  ;;  %v2081_v20 = vadd.f32 %v2063_v50, %v2028_v62  ;;  %v4907_v36 = vpop.f32.mrf.mxu3 }
 0x1eb   : > { %v2288_v25 = vld [vmem:[#allocation3 + $0x30] sm:$0xff]  ;;  %v2873_v40 = vadd.f32 %v2872_v33, %v2871_v7 }
 0x1ec   : > { %v2306_v49 = vadd.f32 %v2288_v25, %v2252_v16  ;;  %2099 = vst.msk [vmem:[#allocation3 + $0x38] sm:$0xff] %vm830_vm9, %v2081_v20 }
 0x1ed   : > { %v2584_v55 = vld [vmem:[#allocation3 + $0x28] sm:$0xff]  ;;  %v2874_v20 = vrot.slane %v2873_v40, 1 }
 0x1ee   : > { %v2602_v52 = vadd.f32 %v2584_v55, %v4868_v48  ;;  %2324 = vst.msk [vmem:[#allocation3 + $0x30] sm:$0xff] %vm830_vm9, %v2306_v49  ;;  %v2882_v48 = vrot.slane %v2881_v22, 4 }
 0x1ef   : > { %v2810_v54 = vld [vmem:[#allocation3 + $0x20] sm:$0xff]  ;;  %v2254_v57 = vpop.f32.mrf.mxu2 }
 0x1f0   : > { %2620 = vst.msk [vmem:[#allocation3 + $0x28] sm:$0xff] %vm830_vm9, %v2602_v52  ;;  %v2828_v53 = vadd.f32 %v2810_v54, %v4870_v51  ;;  %v2883_v32 = vadd.f32 %v2882_v48, %v2881_v22  ;;  %v2066_v22 = vld [vmem:[#allocation3 + $0x50] sm:$0xff] }
 0x1f1   : > { %v2031_v19 = vpop.f32.mrf.mxu1  ;;  %v2889_v3 = vld [vmem:[#allocation3 + $0x12] sm:$0xff] }
 0x1f2   : > { %2846 = vst.msk [vmem:[#allocation3 + $0x20] sm:$0xff] %vm830_vm9, %v2828_v53  ;;  %v2082_v46 = vadd.f32 %v2064_v13, %v2031_v19  ;;  %v2891_v11 = vpack.c.bf16 %v2889_v3, %v2889_v3  ;;  %v2906_v8 = vmul.f32 %v2889_v3, %v2889_v3  ;;  %v2896_v21 = vsel %vm830_vm9, %v2889_v3, 0.0  ;;  %v4939_v13 = vpop.f32.mrf.mxu0 }
 0x1f3   : > { %v2289_v14 = vld [vmem:[#allocation3 + $0x38] sm:$0xff]  ;;  %v2884_v29 = vrot.slane %v2883_v32, 2 }
 0x1f4   : > { %v2307_v45 = vadd.f32 %v2289_v14, %v2254_v57  ;;  %2100 = vst.msk [vmem:[#allocation3 + $0x40] sm:$0xff] %vm830_vm9, %v2082_v46  ;;  %v2908_v18 = vsel %vm830_vm9, %v2906_v8, 0.0 }
 0x1f5   : > { %v2585_v61 = vld [vmem:[#allocation3 + $0x30] sm:$0xff]  ;;  %3740 = vst.msk [vmem:[%s4094_s12 + $0x8] sm:$0xf] %vm2864_vm2, %v2891_v11  ;;  %v2885_v47 = vadd.f32 %v2884_v29, %v2883_v32  ;;  %v2875_v11 = vadd.f32 %v2874_v20, %v2873_v40 }
 0x1f6   : > { %v2603_v51 = vadd.f32 %v2585_v61, %v2549_v39  ;;  %2325 = vst.msk [vmem:[#allocation3 + $0x38] sm:$0xff] %vm830_vm9, %v2307_v45 }
 0x1f7   : > { %v2811_v12 = vld [vmem:[#allocation3 + $0x28] sm:$0xff]  ;;  %v2257_v6 = vpop.f32.mrf.mxu2 }
 0x1f8   : > { %2621 = vst.msk [vmem:[#allocation3 + $0x30] sm:$0xff] %vm830_vm9, %v2603_v51  ;;  %v2829_v5 = vadd.f32 %v2811_v12, %v4880_v31  ;;  %v4921_v31 = vpop.f32.mrf.mxu3  ;;  %v2067_v51 = vld [vmem:[#allocation3 + $0x58] sm:$0xff] }
 0x1f9   : > { %v2033_v9 = vpop.f32.mrf.mxu1  ;;  %v2890_v15 = vld [vmem:[#allocation3 + $0x1a] sm:$0xff] }
 0x1fa   : > { %2847 = vst.msk [vmem:[#allocation3 + $0x28] sm:$0xff] %vm830_vm9, %v2829_v5  ;;  %v2083_v0 = vadd.f32 %v2065_v10, %v2033_v9  ;;  %v2892_v24 = vpack.c.bf16 %v2890_v15, %v2890_v15  ;;  %v2897_v38 = vsel %vm830_vm9, %v2890_v15, 0.0  ;;  %v2907_v17 = vmul.f32 %v2890_v15, %v2890_v15 }
 0x1fb   : > { %v2290_v39 = vld [vmem:[#allocation3 + $0x40] sm:$0xff]  ;;  %v2898_v41 = vadd.f32 %v2897_v38, %v2896_v21 }
 0x1fc   : > { %v2308_v23 = vadd.f32 %v2290_v39, %v2257_v6  ;;  %2101 = vst.msk [vmem:[#allocation3 + $0x48] sm:$0xff] %vm830_vm9, %v2083_v0  ;;  %v2909_v26 = vsel %vm830_vm9, %v2907_v17, 0.0 }
 0x1fd   : > { %v2586_v28 = vld [vmem:[#allocation3 + $0x38] sm:$0xff]  ;;  %3741 = vst.msk [vmem:[%s4094_s12 + $0xc] sm:$0xf] %vm2864_vm2, %v2892_v24  ;;  %v2899_v30 = vrot.slane %v2898_v41, 4  ;;  %v2910_v4 = vadd.f32 %v2909_v26, %v2908_v18 }
 0x1fe   : > { %v2604_v27 = vadd.f32 %v2586_v28, %v4896_v37  ;;  %2326 = vst.msk [vmem:[#allocation3 + $0x40] sm:$0xff] %vm830_vm9, %v2308_v23 }
 0x1ff   : > { %v2812_v34 = vld [vmem:[#allocation3 + $0x30] sm:$0xff]  ;;  %v2259_v35 = vpop.f32.mrf.mxu2  ;;  %v2900_v42 = vadd.f32 %v2899_v30, %v2898_v41  ;;  %v2911_v2 = vrot.slane %v2910_v4, 4 }
 0x200   : > { %2622 = vst.msk [vmem:[#allocation3 + $0x38] sm:$0xff] %vm830_vm9, %v2604_v27  ;;  %v2830_v59 = vadd.f32 %v2812_v34, %v4898_v58  ;;  %v2886_v58 = vrot.slane %v2885_v47, 1  ;;  %v2559_v19 = vpop.f32.mrf.mxu3  ;;  %v2068_v34 = vld [vmem:[#allocation3 + $0x60] sm:$0xff] }
 0x201   : > { %v2036_v63 = vpop.f32.mrf.mxu1  ;;  %v2901_v56 = vrot.slane %v2900_v42, 2  ;;  %v2912_v16 = vadd.f32 %v2911_v2, %v2910_v4  ;;  %v2918_v44 = vld [vmem:[#allocation3 + $0x24] sm:$0xff]  ;;  %v2786_v4 = vpop.f32.mrf.mxu0 }
 0x202   : > { %2848 = vst.msk [vmem:[#allocation3 + $0x30] sm:$0xff] %vm830_vm9, %v2830_v59  ;;  %v2084_v37 = vadd.f32 %v2066_v22, %v2036_v63  ;;  %v2920_v62 = vpack.c.bf16 %v2918_v44, %v2918_v44  ;;  %v2935_v61 = vmul.f32 %v2918_v44, %v2918_v44  ;;  %v2887_v12 = vadd.f32 %v2886_v58, %v2885_v47 }
 0x203   : > { %v2291_v50 = vld [vmem:[#allocation3 + $0x48] sm:$0xff]  ;;  %v2902_v25 = vadd.f32 %v2901_v56, %v2900_v42  ;;  %v2913_v49 = vrot.slane %v2912_v16, 2  ;;  %v2925_v5 = vsel %vm830_vm9, %v2918_v44, 0.0 }
 0x204   : > { %v2309_v55 = vadd.f32 %v2291_v50, %v2259_v35  ;;  %2102 = vst.msk [vmem:[#allocation3 + $0x50] sm:$0xff] %vm830_vm9, %v2084_v37  ;;  %v2937_v24 = vsel %vm830_vm9, %v2935_v61, 0.0 }
 0x205   : > { %v2587_v52 = vld [vmem:[#allocation3 + $0x40] sm:$0xff]  ;;  %v2903_v54 = vrot.slane %v2902_v25, 1  ;;  %v2914_v57 = vadd.f32 %v2913_v49, %v2912_v16  ;;  %3742 = vst.msk [vmem:[%s4094_s12 + $0x10] sm:$0xf] %vm2864_vm2, %v2920_v62 }
 0x206   : > { %v2605_v53 = vadd.f32 %v2587_v52, %v4907_v36  ;;  %2327 = vst.msk [vmem:[#allocation3 + $0x48] sm:$0xff] %vm830_vm9, %v2309_v55  ;;  %v2069_v52 = vld [vmem:[#allocation3 + $0x68] sm:$0xff] }
 0x207   : > { %v2813_v3 = vld [vmem:[#allocation3 + $0x38] sm:$0xff]  ;;  %v2262_v46 = vpop.f32.mrf.mxu2  ;;  %v2904_v14 = vadd.f32 %v2903_v54, %v2902_v25  ;;  %v2915_v60 = vrot.slane %v2914_v57, 1 }
 0x208   : > { %2623 = vst.msk [vmem:[#allocation3 + $0x40] sm:$0xff] %vm830_vm9, %v2605_v53  ;;  %v2831_v45 = vadd.f32 %v2813_v3, %v4909_v43  ;;  %v2561_v30 = vpop.f32.mrf.mxu3 }
 0x209   : > { %v2038_v48 = vpop.f32.mrf.mxu1  ;;  %v2905_v6 = vadd.f32 %v2904_v14, %v2875_v11  ;;  %v2916_v36 = vadd.f32 %v2915_v60, %v2914_v57  ;;  %v2919_v7 = vld [vmem:[#allocation3 + $0x2c] sm:$0xff] }
 0x20a   : > { %2849 = vst.msk [vmem:[#allocation3 + $0x38] sm:$0xff] %vm830_vm9, %v2831_v45  ;;  %v2085_v8 = vadd.f32 %v2067_v51, %v2038_v48  ;;  %v2921_v9 = vpack.c.bf16 %v2919_v7, %v2919_v7  ;;  %v2926_v10 = vsel %vm830_vm9, %v2919_v7, 0.0  ;;  %v2936_v32 = vmul.f32 %v2919_v7, %v2919_v7 }
 0x20b   : > { %v2292_v15 = vld [vmem:[#allocation3 + $0x50] sm:$0xff]  ;;  %v2917_v21 = vadd.f32 %v2916_v36, %v2887_v12  ;;  %v2927_v43 = vadd.f32 %v2926_v10, %v2925_v5 }
 0x20c   : > { %v2310_v0 = vadd.f32 %v2292_v15, %v2262_v46  ;;  %2103 = vst.msk [vmem:[#allocation3 + $0x58] sm:$0xff] %vm830_vm9, %v2085_v8  ;;  %v2938_v38 = vsel %vm830_vm9, %v2936_v32, 0.0  ;;  %v2788_v46 = vpop.f32.mrf.mxu0 }
 0x20d   : > { %v2588_v17 = vld [vmem:[#allocation3 + $0x48] sm:$0xff]  ;;  %3743 = vst.msk [vmem:[%s4094_s12 + $0x14] sm:$0xf] %vm2864_vm2, %v2921_v9  ;;  %v2928_v39 = vrot.slane %v2927_v43, 4  ;;  %v2939_v33 = vadd.f32 %v2938_v38, %v2937_v24 }
 0x20e   : > { %v2606_v41 = vadd.f32 %v2588_v17, %v4921_v31  ;;  %2328 = vst.msk [vmem:[#allocation3 + $0x50] sm:$0xff] %vm830_vm9, %v2310_v0 }
 0x20f   : > { %v2814_v23 = vld [vmem:[#allocation3 + $0x40] sm:$0xff]  ;;  %v2264_v18 = vpop.f32.mrf.mxu2  ;;  %v2929_v26 = vadd.f32 %v2928_v39, %v2927_v43  ;;  %v2940_v28 = vrot.slane %v2939_v33, 4  ;;  %v2070_v43 = vld [vmem:[#allocation3 + $0x70] sm:$0xff] }
 0x210   : > { %2624 = vst.msk [vmem:[#allocation3 + $0x48] sm:$0xff] %vm830_vm9, %v2606_v41  ;;  %v2832_v29 = vadd.f32 %v2814_v23, %v4923_v1  ;;  %v2564_v3 = vpop.f32.mrf.mxu3 }
 0x211   : > { %v2041_v27 = vpop.f32.mrf.mxu1  ;;  %v2930_v35 = vrot.slane %v2929_v26, 2  ;;  %v2941_v40 = vadd.f32 %v2940_v28, %v2939_v33  ;;  %v2947_v42 = vld [vmem:[#allocation3 + $0x36] sm:$0xff] }
 0x212   : > { %2850 = vst.msk [vmem:[#allocation3 + $0x40] sm:$0xff] %vm830_vm9, %v2832_v29  ;;  %v2086_v31 = vadd.f32 %v2068_v34, %v2041_v27  ;;  %v2949_v2 = vpack.c.bf16 %v2947_v42, %v2947_v42  ;;  %v2964_v49 = vmul.f32 %v2947_v42, %v2947_v42  ;;  %v2954_v53 = vsel %vm830_vm9, %v2947_v42, 0.0 }
 0x213   : > { %v2293_v59 = vld [vmem:[#allocation3 + $0x58] sm:$0xff]  ;;  %v2931_v63 = vadd.f32 %v2930_v35, %v2929_v26  ;;  %v2942_v22 = vrot.slane %v2941_v40, 2 }
 0x214   : > { %v2311_v47 = vadd.f32 %v2293_v59, %v2264_v18  ;;  %2104 = vst.msk [vmem:[#allocation3 + $0x60] sm:$0xff] %vm830_vm9, %v2086_v31  ;;  %v2966_v51 = vsel %vm830_vm9, %v2964_v49, 0.0  ;;  %v2791_v28 = vpop.f32.mrf.mxu0  ;;  %v2071_v59 = vld [vmem:[#allocation3 + $0x78] sm:$0xff] }
 0x215   : > { %v2589_v56 = vld [vmem:[#allocation3 + $0x50] sm:$0xff]  ;;  %v2932_v1 = vrot.slane %v2931_v63, 1  ;;  %v2943_v16 = vadd.f32 %v2942_v22, %v2941_v40  ;;  %3744 = vst.msk [vmem:[%s4094_s12 + $0x18] sm:$0xf] %vm2864_vm2, %v2949_v2 }
 0x216   : > { %v2607_v44 = vadd.f32 %v2589_v56, %v2559_v19  ;;  %2329 = vst.msk [vmem:[#allocation3 + $0x58] sm:$0xff] %vm830_vm9, %v2311_v47 }
 0x217   : > { %v2815_v37 = vld [vmem:[#allocation3 + $0x48] sm:$0xff]  ;;  %v2267_v62 = vpop.f32.mrf.mxu2  ;;  %v2933_v50 = vadd.f32 %v2932_v1, %v2931_v63  ;;  %v2944_v20 = vrot.slane %v2943_v16, 1 }
 0x218   : > { %2625 = vst.msk [vmem:[#allocation3 + $0x50] sm:$0xff] %vm830_vm9, %v2607_v44  ;;  %v2833_v25 = vadd.f32 %v2815_v37, %v4939_v13  ;;  %v2566_v26 = vpop.f32.mrf.mxu3 }
 0x219   : > { %v2043_v55 = vpop.f32.mrf.mxu1  ;;  %v2934_v58 = vadd.f32 %v2933_v50, %v2905_v6  ;;  %v2945_v54 = vadd.f32 %v2944_v20, %v2943_v16  ;;  %v2948_v57 = vld [vmem:[#allocation3 + $0x3e] sm:$0xff] }
 0x21a   : > { %2851 = vst.msk [vmem:[#allocation3 + $0x48] sm:$0xff] %vm830_vm9, %v2833_v25  ;;  %v2087_v19 = vadd.f32 %v2069_v52, %v2043_v55  ;;  %v2950_v11 = vpack.c.bf16 %v2948_v57, %v2948_v57  ;;  %v2955_v14 = vsel %vm830_vm9, %v2948_v57, 0.0  ;;  %v2965_v60 = vmul.f32 %v2948_v57, %v2948_v57 }
 0x21b   : > { %v2294_v45 = vld [vmem:[#allocation3 + $0x60] sm:$0xff]  ;;  %v2946_v13 = vadd.f32 %v2945_v54, %v2917_v21  ;;  %v2956_v61 = vadd.f32 %v2955_v14, %v2954_v53 }
 0x21c   : > { %v2312_v48 = vadd.f32 %v2294_v45, %v2267_v62  ;;  %2105 = vst.msk [vmem:[#allocation3 + $0x68] sm:$0xff] %vm830_vm9, %v2087_v19  ;;  %v2967_v12 = vsel %vm830_vm9, %v2965_v60, 0.0  ;;  %v2793_v25 = vpop.f32.mrf.mxu0  ;;  %v2072_v54 = vld [vmem:[#allocation3 + $0x80] sm:$0xff] }
 0x21d   : > { %v2590_v6 = vld [vmem:[#allocation3 + $0x58] sm:$0xff]  ;;  %3745 = vst.msk [vmem:[%s4094_s12 + $0x1c] sm:$0xf] %vm2864_vm2, %v2950_v11  ;;  %v2957_v36 = vrot.slane %v2956_v61, 4  ;;  %v2968_v7 = vadd.f32 %v2967_v12, %v2966_v51 }
 0x21e   : > { %v2608_v5 = vadd.f32 %v2590_v6, %v2561_v30  ;;  %2330 = vst.msk [vmem:[#allocation3 + $0x60] sm:$0xff] %vm830_vm9, %v2312_v48  ;;  %v2073_v48 = vld [vmem:[#allocation3 + $0x88] sm:$0xff] }
 0x21f   : > { %v2816_v8 = vld [vmem:[#allocation3 + $0x50] sm:$0xff]  ;;  %v2269_v9 = vpop.f32.mrf.mxu2  ;;  %v2958_v10 = vadd.f32 %v2957_v36, %v2956_v61  ;;  %v2969_v32 = vrot.slane %v2968_v7, 4 }
 0x220   : > { %2626 = vst.msk [vmem:[#allocation3 + $0x58] sm:$0xff] %vm830_vm9, %v2608_v5  ;;  %v2834_v15 = vadd.f32 %v2816_v8, %v2786_v4  ;;  %v2569_v20 = vpop.f32.mrf.mxu3 }
 0x221   : > { %v2046_v21 = vpop.f32.mrf.mxu1  ;;  %v2959_v0 = vrot.slane %v2958_v10, 2  ;;  %v2970_v24 = vadd.f32 %v2969_v32, %v2968_v7  ;;  %v4972_v38 = vld [vmem:[#allocation3 + $0x48] sm:$0xff] }
 0x222   : > { %2852 = vst.msk [vmem:[#allocation3 + $0x50] sm:$0xff] %vm830_vm9, %v2834_v15  ;;  %v2088_v17 = vadd.f32 %v2070_v43, %v2046_v21  ;;  %v2978_v39 = vpack.c.bf16 %v4972_v38, %v4972_v38 }
 0x223   : > { %v2295_v33 = vld [vmem:[#allocation3 + $0x68] sm:$0xff]  ;;  %v2960_v41 = vadd.f32 %v2959_v0, %v2958_v10  ;;  %v2971_v23 = vrot.slane %v2970_v24, 2 }
 0x224   : > { %v2313_v18 = vadd.f32 %v2295_v33, %v2269_v9  ;;  %2106 = vst.msk [vmem:[#allocation3 + $0x70] sm:$0xff] %vm830_vm9, %v2088_v17  ;;  %v2796_v45 = vpop.f32.mrf.mxu0 }
 0x225   : > { %v2591_v29 = vld [vmem:[#allocation3 + $0x60] sm:$0xff]  ;;  %v2961_v30 = vrot.slane %v2960_v41, 1  ;;  %v2972_v4 = vadd.f32 %v2971_v23, %v2970_v24  ;;  %3746 = vst.msk [vmem:[%s4094_s12 + $0x20] sm:$0xf] %vm2864_vm2, %v2978_v39 }
 0x226   : > { %v2609_v27 = vadd.f32 %v2591_v29, %v2564_v3  ;;  %2331 = vst.msk [vmem:[#allocation3 + $0x68] sm:$0xff] %vm830_vm9, %v2313_v18 }
 0x227   : > { %v2817_v34 = vld [vmem:[#allocation3 + $0x58] sm:$0xff]  ;;  %v2272_v35 = vpop.f32.mrf.mxu2  ;;  %v2962_v40 = vadd.f32 %v2961_v30, %v2960_v41  ;;  %v2973_v42 = vrot.slane %v2972_v4, 1 }
 0x228   : > { %2627 = vst.msk [vmem:[#allocation3 + $0x60] sm:$0xff] %vm830_vm9, %v2609_v27  ;;  %v2835_v31 = vadd.f32 %v2817_v34, %v2788_v46  ;;  %v2571_v60 = vpop.f32.mrf.mxu3 }
 0x229   : > { %v2048_v2 = vpop.f32.mrf.mxu1  ;;  %v4982_v63 = vadd.f32 %v2962_v40, %v2934_v58  ;;  %v2974_v22 = vadd.f32 %v2973_v42, %v2972_v4  ;;  %v4984_v47 = vld [vmem:[#allocation3 + $0x50] sm:$0xff] }
 0x22a   : > { %2853 = vst.msk [vmem:[#allocation3 + $0x58] sm:$0xff] %vm830_vm9, %v2835_v31  ;;  %v2089_v56 = vadd.f32 %v2071_v59, %v2048_v2  ;;  %v2979_v1 = vpack.c.bf16 %v4984_v47, %v4984_v47  ;;  %v2994_v18 = vmul.f32 %v4984_v47, %v4984_v47  ;;  %v2984_v30 = vsel %vm830_vm9, %v4984_v47, 0.0 }
 0x22b   : > { %v2296_v16 = vld [vmem:[#allocation3 + $0x70] sm:$0xff]  ;;  %v4989_v44 = vadd.f32 %v2974_v22, %v2946_v13  ;;  %v2983_v31 = vsel %vm830_vm9, %v4972_v38, 0.0 }
 0x22c   : > { %v2314_v37 = vadd.f32 %v2296_v16, %v2272_v35  ;;  %2107 = vst.msk [vmem:[#allocation3 + $0x78] sm:$0xff] %vm830_vm9, %v2089_v56  ;;  %v2798_v15 = vpop.f32.mrf.mxu0  ;;  %v2996_v4 = vsel %vm830_vm9, %v2994_v18, 0.0  ;;  %v2985_v56 = vadd.f32 %v2984_v30, %v2983_v31 }
 0x22d   : > { %v2592_v62 = vld [vmem:[#allocation3 + $0x68] sm:$0xff]  ;;  %3747 = vst.msk [vmem:[%s4094_s12 + $0x24] sm:$0xf] %vm2864_vm2, %v2979_v1 }
 0x22e   : > { %v2610_v50 = vadd.f32 %v2592_v62, %v2566_v26  ;;  %2332 = vst.msk [vmem:[#allocation3 + $0x70] sm:$0xff] %vm830_vm9, %v2314_v37 }
 0x22f   : > { %v2818_v49 = vld [vmem:[#allocation3 + $0x60] sm:$0xff]  ;;  %v2274_v55 = vpop.f32.mrf.mxu2 }
 0x230   : > { %2628 = vst.msk [vmem:[#allocation3 + $0x68] sm:$0xff] %vm830_vm9, %v2610_v50  ;;  %v2836_v52 = vadd.f32 %v2818_v49, %v2791_v28  ;;  %v2574_v43 = vpop.f32.mrf.mxu3  ;;  %v2993_v28 = vmul.f32 %v4972_v38, %v4972_v38 }
 0x231   : > { %v2051_v58 = vpop.f32.mrf.mxu1 }
 0x232   : > { %2854 = vst.msk [vmem:[#allocation3 + $0x60] sm:$0xff] %vm830_vm9, %v2836_v52  ;;  %v2090_v57 = vadd.f32 %v2072_v54, %v2051_v58  ;;  %v2995_v2 = vsel %vm830_vm9, %v2993_v28, 0.0  ;;  %v2986_v52 = vrot.slane %v2985_v56, 4 }
 0x233   : > { %v2297_v53 = vld [vmem:[#allocation3 + $0x78] sm:$0xff]  ;;  %v2997_v1 = vadd.f32 %v2996_v4, %v2995_v2 }
 0x234   : > { %v2315_v19 = vadd.f32 %v2297_v53, %v2274_v55  ;;  %2108 = vst.msk [vmem:[#allocation3 + $0x80] sm:$0xff] %vm830_vm9, %v2090_v57  ;;  %v2801_v40 = vpop.f32.mrf.mxu0 }
 0x235   : > { %v2593_v3 = vld [vmem:[#allocation3 + $0x70] sm:$0xff]  ;;  %v2998_v57 = vrot.slane %v2997_v1, 4 }
 0x236   : > { %v2611_v46 = vadd.f32 %v2593_v3, %v2569_v20  ;;  %2333 = vst.msk [vmem:[#allocation3 + $0x78] sm:$0xff] %vm830_vm9, %v2315_v19 }
 0x237   : > { %v2819_v11 = vld [vmem:[#allocation3 + $0x68] sm:$0xff]  ;;  %v2277_v13 = vpop.f32.mrf.mxu2 }
 0x238   : > { %2629 = vst.msk [vmem:[#allocation3 + $0x70] sm:$0xff] %vm830_vm9, %v2611_v46  ;;  %v2837_v14 = vadd.f32 %v2819_v11, %v2793_v25  ;;  %v2576_v34 = vpop.f32.mrf.mxu3 }
 0x239   : > { %v2053_v61 = vpop.f32.mrf.mxu1  ;;  %v3005_v51 = vld [vmem:[#allocation3 + $0x5a] sm:$0xff] }
 0x23a   : > { %2855 = vst.msk [vmem:[#allocation3 + $0x68] sm:$0xff] %vm830_vm9, %v2837_v14  ;;  %v2091_v12 = vadd.f32 %v2073_v48, %v2053_v61  ;;  %v3007_v6 = vpack.c.bf16 %v3005_v51, %v3005_v51  ;;  %v3022_v59 = vmul.f32 %v3005_v51, %v3005_v51  ;;  %v3012_v50 = vsel %vm830_vm9, %v3005_v51, 0.0 }
 0x23b   : > { %v2298_v36 = vld [vmem:[#allocation3 + $0x80] sm:$0xff]  ;;  %v2987_v48 = vadd.f32 %v2986_v52, %v2985_v56  ;;  %v2999_v51 = vadd.f32 %v2998_v57, %v2997_v1 }
 0x23c   : > { %v2316_v7 = vadd.f32 %v2298_v36, %v2277_v13  ;;  %2109 = vst.msk [vmem:[#allocation3 + $0x88] sm:$0xff] %vm830_vm9, %v2091_v12  ;;  %v3024_v38 = vsel %vm830_vm9, %v3022_v59, 0.0  ;;  %v2803_v14 = vpop.f32.mrf.mxu0 }
 0x23d   : > { %v2594_v5 = vld [vmem:[#allocation3 + $0x78] sm:$0xff]  ;;  %3748 = vst.msk [vmem:[%s4094_s12 + $0x28] sm:$0xf] %vm2864_vm2, %v3007_v6 }
 0x23e   : > { %v2612_v8 = vadd.f32 %v2594_v5, %v2571_v60  ;;  %2334 = vst.msk [vmem:[#allocation3 + $0x80] sm:$0xff] %vm830_vm9, %v2316_v7 }
 0x23f   : > { %v2820_v9 = vld [vmem:[#allocation3 + $0x70] sm:$0xff]  ;;  %v2279_v0 = vpop.f32.mrf.mxu2 }
 0x240   : > { %2630 = vst.msk [vmem:[#allocation3 + $0x78] sm:$0xff] %vm830_vm9, %v2612_v8  ;;  %v2838_v10 = vadd.f32 %v2820_v9, %v2796_v45  ;;  %v2988_v9 = vrot.slane %v2987_v48, 2 }
 0x241   : > { %v3006_v32 = vld [vmem:[#allocation3 + $0x62] sm:$0xff] }
 0x242   : > { %2856 = vst.msk [vmem:[#allocation3 + $0x70] sm:$0xff] %vm830_vm9, %v2838_v10  ;;  %v3008_v21 = vpack.c.bf16 %v3006_v32, %v3006_v32  ;;  %v3023_v27 = vmul.f32 %v3006_v32, %v3006_v32  ;;  %v3013_v16 = vsel %vm830_vm9, %v3006_v32, 0.0  ;;  %v3000_v10 = vrot.slane %v2999_v51, 2 }
 0x243   : > { %v2299_v24 = vld [vmem:[#allocation3 + $0x88] sm:$0xff]  ;;  %v3014_v58 = vadd.f32 %v3013_v16, %v3012_v50 }
 0x244   : > { %v2317_v17 = vadd.f32 %v2299_v24, %v2279_v0  ;;  %3749 = vst.msk [vmem:[%s4094_s12 + $0x2c] sm:$0xf] %vm2864_vm2, %v3008_v21  ;;  %v3025_v37 = vsel %vm830_vm9, %v3023_v27, 0.0  ;;  %v2989_v0 = vadd.f32 %v2988_v9, %v2987_v48  ;;  %v3001_v24 = vadd.f32 %v3000_v10, %v2999_v51 }
 0x245   : > { %v2595_v39 = vld [vmem:[#allocation3 + $0x80] sm:$0xff]  ;;  %v3026_v54 = vadd.f32 %v3025_v37, %v3024_v38  ;;  %v3015_v45 = vrot.slane %v3014_v58, 4 }
 0x246   : > { %v2613_v33 = vadd.f32 %v2595_v39, %v2574_v43  ;;  %2335 = vst.msk [vmem:[#allocation3 + $0x88] sm:$0xff] %vm830_vm9, %v2317_v17  ;;  %v2990_v27 = vrot.slane %v2989_v0, 1 }
 0x247   : > { %v2821_v41 = vld [vmem:[#allocation3 + $0x78] sm:$0xff]  ;;  %v3027_v13 = vrot.slane %v3026_v54, 4  ;;  %v3016_v5 = vadd.f32 %v3015_v45, %v3014_v58 }
 0x248   : > { %2631 = vst.msk [vmem:[#allocation3 + $0x80] sm:$0xff] %vm830_vm9, %v2613_v33  ;;  %v2839_v23 = vadd.f32 %v2821_v41, %v2798_v15  ;;  %v2991_v16 = vadd.f32 %v2990_v27, %v2989_v0 }
 0x249   : > { %v3034_v26 = vld [vmem:[#allocation3 + $0x6c] sm:$0xff]  ;;  %v3028_v8 = vadd.f32 %v3027_v13, %v3026_v54  ;;  %v3017_v21 = vrot.slane %v3016_v5, 2 }
 0x24a   : > { %2857 = vst.msk [vmem:[#allocation3 + $0x78] sm:$0xff] %vm830_vm9, %v2839_v23  ;;  %v3036_v29 = vpack.c.bf16 %v3034_v26, %v3034_v26  ;;  %v3051_v62 = vmul.f32 %v3034_v26, %v3034_v26  ;;  %v3041_v53 = vsel %vm830_vm9, %v3034_v26, 0.0  ;;  %v2992_v58 = vadd.f32 %v2991_v16, %v4982_v63 }
 0x24b   : > { %v3029_v43 = vrot.slane %v3028_v8, 2 }
 0x24c   : > { %3750 = vst.msk [vmem:[%s4094_s12 + $0x30] sm:$0xf] %vm2864_vm2, %v3036_v29  ;;  %v3053_v19 = vsel %vm830_vm9, %v3051_v62, 0.0  ;;  %v3018_v29 = vadd.f32 %v3017_v21, %v3016_v5 }
 0x24d   : > { %v2596_v35 = vld [vmem:[#allocation3 + $0x88] sm:$0xff]  ;;  %v3030_v30 = vadd.f32 %v3029_v43, %v3028_v8 }
 0x24e   : > { %v2614_v42 = vadd.f32 %v2596_v35, %v2576_v34  ;;  %v3002_v34 = vrot.slane %v3001_v24, 1 }
 0x24f   : > { %v2822_v22 = vld [vmem:[#allocation3 + $0x80] sm:$0xff]  ;;  %v3031_v56 = vrot.slane %v3030_v30, 1 }
 0x250   : > { %2632 = vst.msk [vmem:[#allocation3 + $0x88] sm:$0xff] %vm830_vm9, %v2614_v42  ;;  %v2840_v47 = vadd.f32 %v2822_v22, %v2801_v40  ;;  %v3019_v22 = vrot.slane %v3018_v29, 1  ;;  %v3003_v37 = vadd.f32 %v3002_v34, %v3001_v24 }
 0x251   : > { %v3035_v20 = vld [vmem:[#allocation3 + $0x74] sm:$0xff] }
 0x252   : > { %2858 = vst.msk [vmem:[#allocation3 + $0x80] sm:$0xff] %vm830_vm9, %v2840_v47  ;;  %v3037_v25 = vpack.c.bf16 %v3035_v20, %v3035_v20  ;;  %v3042_v49 = vsel %vm830_vm9, %v3035_v20, 0.0  ;;  %v3052_v55 = vmul.f32 %v3035_v20, %v3035_v20  ;;  %v3004_v54 = vadd.f32 %v3003_v37, %v4989_v44 }
 0x253   : > { %v3043_v46 = vadd.f32 %v3042_v49, %v3041_v53  ;;  %v3032_v49 = vadd.f32 %v3031_v56, %v3030_v30 }
 0x254   : > { %3751 = vst.msk [vmem:[%s4094_s12 + $0x34] sm:$0xf] %vm2864_vm2, %v3037_v25  ;;  %v3054_v3 = vsel %vm830_vm9, %v3052_v55, 0.0  ;;  %v3020_v25 = vadd.f32 %v3019_v22, %v3018_v29 }
 0x255   : > { %v3055_v11 = vadd.f32 %v3054_v3, %v3053_v19  ;;  %v3044_v12 = vrot.slane %v3043_v46, 4 }
 0x257   : > { %v2823_v60 = vld [vmem:[#allocation3 + $0x88] sm:$0xff]  ;;  %v3056_v6 = vrot.slane %v3055_v11, 4  ;;  %v3045_v32 = vadd.f32 %v3044_v12, %v3043_v46  ;;  %v3021_v46 = vadd.f32 %v3020_v25, %v2992_v58 }
 0x258   : > { %v2841_v61 = vadd.f32 %v2823_v60, %v2803_v14 }
 0x259   : > { %v3063_v36 = vld [vmem:[#allocation3 + $0x7e] sm:$0xff]  ;;  %v3057_v15 = vadd.f32 %v3056_v6, %v3055_v11  ;;  %v3046_v39 = vrot.slane %v3045_v32, 2  ;;  %v3033_v11 = vadd.f32 %v3032_v49, %v3004_v54 }
 0x25a   : > { %2859 = vst.msk [vmem:[#allocation3 + $0x88] sm:$0xff] %vm830_vm9, %v2841_v61  ;;  %v3065_v7 = vpack.c.bf16 %v3063_v36, %v3063_v36  ;;  %v3080_v17 = vmul.f32 %v3063_v36, %v3063_v36  ;;  %v3070_v18 = vsel %vm830_vm9, %v3063_v36, 0.0 }
 0x25b   : > { %v3058_v33 = vrot.slane %v3057_v15, 2  ;;  %v3047_v42 = vadd.f32 %v3046_v39, %v3045_v32 }
 0x25c   : > { %3752 = vst.msk [vmem:[%s4094_s12 + $0x38] sm:$0xf] %vm2864_vm2, %v3065_v7  ;;  %v3082_v35 = vsel %vm830_vm9, %v3080_v17, 0.0 }
 0x25d   : > { %v3059_v31 = vadd.f32 %v3058_v33, %v3057_v15  ;;  %v3048_v62 = vrot.slane %v3047_v42, 1 }
 0x25f   : > { %v3060_v50 = vrot.slane %v3059_v31, 1  ;;  %v3049_v57 = vadd.f32 %v3048_v62, %v3047_v42 }
 0x261   : > { %v3064_v41 = vld [vmem:[#allocation3 + $0x86] sm:$0xff]  ;;  %v3061_v53 = vadd.f32 %v3060_v50, %v3059_v31  ;;  %v3050_v45 = vadd.f32 %v3049_v57, %v3021_v46 }
 0x262   : > { %v3066_v23 = vpack.c.bf16 %v3064_v41, %v3064_v41  ;;  %v3071_v26 = vsel %vm830_vm9, %v3064_v41, 0.0  ;;  %v3081_v28 = vmul.f32 %v3064_v41, %v3064_v41 }
 0x263   : > { %v3072_v4 = vadd.f32 %v3071_v26, %v3070_v18  ;;  %v3062_v13 = vadd.f32 %v3061_v53, %v3033_v11 }
 0x264   : > { %3753 = vst.msk [vmem:[%s4094_s12 + $0x3c] sm:$0xf] %vm2864_vm2, %v3066_v23  ;;  %v3083_v40 = vsel %vm830_vm9, %v3081_v28, 0.0  ;;  %s3755_s12 = sshll.u32 %s3980_s1, 1  ;;  %s3125_s1 = sshll.u32 %s246_s13, 4  ;;  %s3126_s1 = int_to_ptr.vmem [resolvable:$true] %s3125_s1 }
 0x265   : > { %v3073_v2 = vrot.slane %v3072_v4, 4  ;;  %v3084_v59 = vadd.f32 %v3083_v40, %v3082_v35  ;;  %s3123_s22 = scalar_lea.hbm %s5094_s5, %s3755_s12 }
 0x266   : > { %s3127_s23 = sshll.u32 %s3123_s22, 4  ;;  %s3128_s23 = int_to_ptr.hbm [resolvable:$true] %s3127_s23 }
 0x267   : > { %v3074_v1 = vadd.f32 %v3073_v2, %v3072_v4  ;;  %v3085_v47 = vrot.slane %v3084_v59, 4  ;;  %s3924_s27 = sshra.s32 %s3128_s23, 4  ;;  %s3925_s27 = int_to_ptr.hbm [resolvable:$true] %s3924_s27 }
 0x268   : > { %s3926_s8 = scalar_lea.hbm %s3925_s27, 2  ;;  %p3931_p3 = scmp.lt.s32.totalorder %s3925_s27, %s5094_s5 }
 0x269   : > { %v3075_v20 = vrot.slane %v3074_v1, 2  ;;  %v3086_v38 = vadd.f32 %v3085_v47, %v3084_v59  ;;  %p3927_p0 = scmp.ne.s32.totalorder %s3925_s27, %s3926_s8  ;;  %p3932_p5 = scmp.lt.s32.totalorder %s3930_s10, %s3926_s8 }
 0x26b   : > { %v3076_v55 = vadd.f32 %v3075_v20, %v3074_v1  ;;  %v3087_v52 = vrot.slane %v3086_v38, 2  ;;  %p3928_p1 = pnand %p3927_p0, %p4061_p4  ;;  %p3933_p6 = por %p3932_p5, %p3931_p3 }
 0x26d   : > { %v3077_v19 = vrot.slane %v3076_v55, 1  ;;  %v3088_v3 = vadd.f32 %v3087_v52, %v3086_v38  ;;  %p3929_p2 = pneg %p3928_p1 }
 0x26f   : > { %v3078_v14 = vadd.f32 %v3077_v19, %v3076_v55  ;;  %v3089_v60 = vrot.slane %v3088_v3, 1  ;;  %p3934_p7 = pnand %p3933_p6, %p3929_p2 }
 0x271   : > { %v3090_v61 = vadd.f32 %v3089_v60, %v3088_v3  ;;  %v3079_v63 = vadd.f32 %v3078_v14, %v3050_v45 }
 0x273   : > { %v3091_v44 = vadd.f32 %v3090_v61, %v3062_v13 }
 0x275   : > { %v3093_v48 = vsel %vm3092_vm4, %v3079_v63, %v3091_v44 }
 0x276   : > { %3095 = vst.msk [vmem:[%s246_s13] sm:$0x3] %vm3094_vm6, %v3093_v48 }
 0x277   : > { %3937 = shalt.err (!%p3934_p7)
}
 0x278   : > { %3854 = dma.vmem_to_hbm [thread:$0]  (%p4061_p4), %s3126_s1, 32, %s3128_s23, %s3107_s25  }
 0x279 PF: > { %p3860_p9 = scmp.ge.s32.totalorder %s3988_s21, 2  ;;  %s3152_s30 = sand.u32 1, %s3968_s18  }
 0x27a   : > { %s3153_s7 = scalar_lea.sflag [#allocation5], %s3152_s30 }
 0x27b   : > { %p3857_p10 = pnand %p3860_p9, %p4068_p8 }
 0x27d   : > { %p3858_p11 = pneg %p3857_p10 }
 0x27f   : > { %3963 = dma.done.wait (%p3858_p11), %s3153_s7, 32  }
 0x280   : > { %3965 = vsyncadd (%p3858_p11), %s3153_s7, 4294967264  ;;  %s19_s21 = sadd.s32 1, %s3988_s21   ;;  %s5121_s18 = smov %s3972_s19 }
 0x281   : > { %p16_p12 = scmp.ge.s32.totalorder %s19_s21, 6   ;;  %s5122_s19 = smov %s3976_s20 }
 0x282   : > { %s5123_s20 = smov %s4074_s29  ;;  %s5124_s1 = smov %s3984_s2 }
 0x283   : > { %s5125_s2 = smov %s5127_s24  ;;  %18 = sbr.rel (!%p16_p12) target bundleno = 4 (0x4), region = 116 }
 0x288   :  { %3159 = vsyncpa [#allocation5], 1 }
 0x289   :  { %3161 = vsyncpa [#allocation5 + $0x1], 1 }

</bundles_post_ra>
